<compile_context>
chip_gen: v5e
topology: v5e:2x2
jax: 0.10.0
libtpu: 0.0.40
codegen_flags: <defaults>
</compile_context>

<pallas_src>
import functools

import numpy as np
import jax
import jax.numpy as jnp
from jax.experimental import pallas as pl
from jax.experimental.pallas import tpu as pltpu


# ----------------------------- kernel helpers --------------------------------


def _layernorm(x, w, b, eps=1e-5):
    mu = jnp.mean(x, axis=-1, keepdims=True)
    xc = x - mu
    var = jnp.mean(xc * xc, axis=-1, keepdims=True)
    return xc * jax.lax.rsqrt(var + eps) * w + b


def _normalize(x, eps=1e-5):
    # LayerNorm without affine (gamma/beta folded into the following matmul).
    mu = jnp.mean(x, axis=-1, keepdims=True)
    xc = x - mu
    var = jnp.mean(xc * xc, axis=-1, keepdims=True)
    return xc * jax.lax.rsqrt(var + eps)


def _gelu_exact(x):
    # PyTorch nn.GELU() default: 0.5 * x * (1 + erf(x / sqrt(2))).
    # (If VALU ever becomes the binding slot, jax.nn.gelu(approximate=True)
    #  moves this onto the EUP tanh path at a small numerics deviation.)
    return 0.5 * x * (1.0 + jax.lax.erf(x * np.float32(1.0 / np.sqrt(2.0))))


# ----------------------------- fused kernel ----------------------------------


def encoder_stack_kernel(
    x_hbm,                       # (num_tiles, rows, C) raw HBM ref (pl.ANY)
    wqkv_ref,                    # (1, 3, C, C) bf16  (Wq pre-scaled by D^-0.5)
    ln1w_ref, ln1b_ref,          # (1, 1, C) f32
    wproj_ref,                   # (1, C, C) bf16
    bproj_ref,                   # (1, 1, C) f32
    w1_ref,                      # (1, C, Hid) bf16   (gamma2 folded in)
    b1_ref,                      # (1, 1, Hid) f32    (beta2 @ W1 folded in)
    w2_ref,                      # (1, Hid, C) bf16
    b2_ref,                      # (1, 1, C) f32
    o_ref,                       # (rows, C) VMEM-resident residual stream
    attn_ref,                    # scratch (rows, C) bf16: per-head outputs
    *, num_heads, batch_tile, seq_len, dim, hidden_dim, hidden_chunk,
):
    f32, bf16 = jnp.float32, jnp.bfloat16
    t = pl.program_id(0)
    layer = pl.program_id(1)
    H, C = num_heads, dim
    D = C // H
    rows = batch_tile * seq_len

    # First layer of this batch tile: DMA the activation tile from HBM straight
    # into the resident output window (no dedicated input stream in VMEM).
    @pl.when(layer == 0)
    def _():
        pltpu.sync_copy(x_hbm.at[t], o_ref)

    # ---------------- attention: x = x + proj(attn(norm1(x))) ----------------
    x1 = _layernorm(o_ref[...].astype(f32), ln1w_ref[0], ln1b_ref[0]).astype(bf16)
    # Wq already carries the head_dim**-0.5 scale (folded at prep time); the
    # qkv Linear has no bias (DEncoderBlock passes dim_head=None as qkv_bias).
    q = jnp.dot(x1, wqkv_ref[0, 0], preferred_element_type=f32)
    k = jnp.dot(x1, wqkv_ref[0, 1], preferred_element_type=f32)
    v = jnp.dot(x1, wqkv_ref[0, 2], preferred_element_type=f32)
    q3 = q.astype(bf16).reshape(batch_tile, seq_len, C)
    k3 = k.astype(bf16).reshape(batch_tile, seq_len, C)
    v3 = v.astype(bf16).reshape(batch_tile, seq_len, C)

    for h in range(H):                       # static unroll over heads
        sl = slice(h * D, (h + 1) * D)
        s = jnp.einsum('bnd,bmd->bnm', q3[:, :, sl], k3[:, :, sl],
                       preferred_element_type=f32)
        s = s - jnp.max(s, axis=-1, keepdims=True)
        e = jnp.exp(s)
        # approx reciprocal uses the EUP slot; well within the test tolerance.
        p = e * pl.reciprocal(jnp.sum(e, axis=-1, keepdims=True), approx=True)
        oh = jnp.einsum('bnm,bmd->bnd', p.astype(bf16), v3[:, :, sl],
                        preferred_element_type=f32)
        # Park this head's output at its static lane slice of the scratch slab:
        # bounds vreg live ranges and enables ONE full-depth projection matmul.
        attn_ref[:, sl] = oh.reshape(rows, D).astype(bf16)

    # Single K=C projection matmul instead of H per-head K=D matmuls.
    x = (o_ref[...].astype(f32)
         + jnp.dot(attn_ref[...], wproj_ref[0], preferred_element_type=f32)
         + bproj_ref[0])

    # ---------------- MLP: x = x + W2 @ gelu(W1 @ norm2(x)) ------------------
    # gamma2/beta2 were folded into (w1, b1) -> plain normalizer here.
    x2 = _normalize(x).astype(bf16)
    b1v = b1_ref[0]                                            # (1, Hid)
    for c0 in range(0, hidden_dim, hidden_chunk):              # static chunks
        hpart = (jnp.dot(x2, w1_ref[0, :, c0:c0 + hidden_chunk],
                         preferred_element_type=f32)
                 + b1v[:, c0:c0 + hidden_chunk])
        hpart = _gelu_exact(hpart).astype(bf16)
        x = x + jnp.dot(hpart, w2_ref[0, c0:c0 + hidden_chunk, :],
                        preferred_element_type=f32)
    x = x + b2_ref[0]

    # NOTE: residual stored at o_ref.dtype; pass f32 activations if drift from
    # bf16 rounding of the residual stream is a concern.
    o_ref[...] = x.astype(o_ref.dtype)


# ----------------------------- wrapper ---------------------------------------


def _num_tensorcores():
    try:
        return max(1, int(getattr(jax.devices()[0], "num_cores", 1) or 1))
    except Exception:
        return 1


def _vmem_limit_bytes():
    # Stay well under physical VMEM (64 MiB/core on v7x; 128 MiB on v5e/v6e).
    try:
        phys = int(pltpu.get_tpu_info().vmem_capacity_bytes)
    except Exception:
        phys = 64 * 1024 * 1024
    return max(32 * 1024 * 1024, min(int(phys * 0.8), 100 * 1024 * 1024))


def _pick_batch_tile(batch, seq, *, target_rows=1024, min_tiles=1):
    """Largest batch tile whose token count is <= ~target_rows.

    rows-per-tile ~ arithmetic intensity of the weight-streamed layer step
    (bigger is better until VMEM runs out).  Splitting the batch into multiple
    tiles only pays off on chips with >1 TensorCore (min_tiles > 1)."""
    cap = max(1, target_rows // max(seq, 1))
    divisors = [d for d in range(1, batch + 1) if batch % d == 0]
    feasible = [d for d in divisors if d <= cap] or [1]
    if min_tiles > 1:
        multi = [d for d in feasible if batch // d >= min_tiles]
        if multi:
            return max(multi)
    return max(feasible)


def _pick_hidden_chunk(hid, max_chunk=512):
    if hid <= max_chunk:
        return hid
    for c in range(max_chunk, 0, -128):
        if c > 0 and hid % c == 0:
            return c
    return hid


def dtransformer_encoder(x, kernel_params, num_heads, *, batch_tile=None):
    """DTransformerEncoder.forward as one fused pallas_call over (tiles, layers)."""
    B, N, C = x.shape
    assert C % 128 == 0, "channel dim must be a multiple of 128 (lane-dense I/O)"
    assert C % num_heads == 0
    (wqkv, ln1w, ln1b, wproj, bproj, w1, b1, w2, b2) = kernel_params
    num_layers = wqkv.shape[0]
    hid = w1.shape[-1]

    if batch_tile is None:
        batch_tile = _pick_batch_tile(B, N, min_tiles=_num_tensorcores())
    assert B % batch_tile == 0
    rows = batch_tile * N
    assert rows % 8 == 0, "rows per tile must be a multiple of 8 (sublane)"
    num_tiles = B // batch_tile
    hidden_chunk = _pick_hidden_chunk(hid)

    x_tiled = x.reshape(num_tiles, rows, C)      # token-major, lane-dense tiles

    def stacked_spec(arr):
        nd = arr.ndim
        return pl.BlockSpec((1,) + arr.shape[1:],
                            lambda t, l, _nd=nd: (l,) + (0,) * (_nd - 1))

    in_specs = [pl.BlockSpec(memory_space=pl.ANY)]           # x stays in HBM
    in_specs += [stacked_spec(w) for w in kernel_params]
    out_spec = pl.BlockSpec((rows, C), lambda t, l: (t, 0))  # layer-resident

    kernel = functools.partial(
        encoder_stack_kernel,
        num_heads=num_heads, batch_tile=batch_tile, seq_len=N, dim=C,
        hidden_dim=hid, hidden_chunk=hidden_chunk)

    out2d = pl.pallas_call(
        kernel,
        out_shape=jax.ShapeDtypeStruct((B * N, C), x.dtype),
        grid_spec=pltpu.PrefetchScalarGridSpec(
            num_scalar_prefetch=0,
            grid=(num_tiles, num_layers),
            in_specs=in_specs,
            out_specs=out_spec,
            scratch_shapes=[pltpu.VMEM((rows, C), jnp.bfloat16)],
        ),
        compiler_params=pltpu.CompilerParams(
            dimension_semantics=("parallel", "arbitrary"),
            vmem_limit_bytes=_vmem_limit_bytes(),
        ),
    )(x_tiled, *kernel_params)
    return out2d.reshape(B, N, C)


# ------------------------ deterministic params --------------------------------


def _init_raw_block_params(key, dim, hid):
    ks = jax.random.split(key, 9)
    f32 = jnp.float32
    ln1w = 1.0 + 0.1 * jax.random.normal(ks[0], (dim,), f32)
    ln1b = 0.02 * jax.random.normal(ks[1], (dim,), f32)
    wqkv = 0.05 * jax.random.normal(ks[2], (3, dim, dim), f32)   # (q|k|v), (in,out)
    wproj = 0.05 * jax.random.normal(ks[3], (dim, dim), f32)
    bproj = 0.02 * jax.random.normal(ks[4], (dim,), f32)
    ln2w = 1.0 + 0.1 * jax.random.normal(ks[5], (dim,), f32)
    ln2b = 0.02 * jax.random.normal(ks[6], (dim,), f32)
    w1 = 0.05 * jax.random.normal(ks[7], (dim, hid), f32)
    b1 = jnp.zeros((hid,), f32)
    w2 = 0.05 * jax.random.normal(ks[8], (hid, dim), f32)
    b2 = jnp.zeros((dim,), f32)
    return (ln1w, ln1b, wqkv, wproj, bproj, ln2w, ln2b, w1, b1, w2, b2)


def init_raw_params(key, num_blocks, dim, mlp_ratio=4):
    hid = dim * mlp_ratio
    keys = jax.random.split(key, num_blocks)
    per = [_init_raw_block_params(k, dim, hid) for k in keys]
    return tuple(jnp.stack([p[i] for p in per], axis=0) for i in range(len(per[0])))


def fold_params_for_kernel(raw, num_heads):
    """Host-side prep: bf16 MXU weights, softmax scale folded into Wq, and
    LayerNorm2's gamma/beta folded into (W1, b1).

    LayerNorm1's affine is kept in-kernel: folding it would require bias adds
    on q, k AND v, which costs more VPU work than the gamma-mul/beta-add it
    would remove."""
    (ln1w, ln1b, wqkv, wproj, bproj, ln2w, ln2b, w1, b1, w2, b2) = raw
    L, _, C, _ = wqkv.shape
    D = C // num_heads
    f32, bf16 = jnp.float32, jnp.bfloat16

    wqkv_f = wqkv.at[:, 0].multiply(jnp.asarray(D ** -0.5, f32))   # scale -> Wq
    w1_f = w1 * ln2w[:, :, None]                                   # diag(g2) @ W1
    b1_f = b1 + jnp.einsum('lc,lch->lh', ln2b, w1)                 # b1 + b2 @ W1

    return (
        wqkv_f.astype(bf16),                    # (L, 3, C, C)
        ln1w.reshape(L, 1, C).astype(f32),      # (L, 1, C)
        ln1b.reshape(L, 1, C).astype(f32),
        wproj.astype(bf16),                     # (L, C, C)
        bproj.reshape(L, 1, C).astype(f32),
        w1_f.astype(bf16),                      # (L, C, hid)
        b1_f.reshape(L, 1, -1).astype(f32),     # (L, 1, hid)
        w2.astype(bf16),                        # (L, hid, C)
        b2.reshape(L, 1, C).astype(f32),
    )


# ------------------------ plain-JAX f32 reference ------------------------------


def _ref_forward(x, raw, num_heads):
    (ln1w, ln1b, wqkv, wproj, bproj, ln2w, ln2b, w1, b1, w2, b2) = raw
    num_layers = ln1w.shape[0]
    B, N, C = x.shape
    H = num_heads
    D = C // H

    def ln(z, w, b):
        mu = z.mean(-1, keepdims=True)
        var = ((z - mu) ** 2).mean(-1, keepdims=True)
        return (z - mu) / jnp.sqrt(var + 1e-5) * w + b

    for l in range(num_layers):
        x1 = ln(x, ln1w[l], ln1b[l])
        q = (x1 @ wqkv[l, 0]) * (D ** -0.5)
        k = x1 @ wqkv[l, 1]
        v = x1 @ wqkv[l, 2]
        qh = q.reshape(B, N, H, D).transpose(0, 2, 1, 3)
        kh = k.reshape(B, N, H, D).transpose(0, 2, 1, 3)
        vh = v.reshape(B, N, H, D).transpose(0, 2, 1, 3)
        a = jax.nn.softmax(qh @ jnp.swapaxes(kh, -2, -1), axis=-1)
        o = (a @ vh).transpose(0, 2, 1, 3).reshape(B, N, C)
        x = x + o @ wproj[l] + bproj[l]
        x2 = ln(x, ln2w[l], ln2b[l])
        h = jax.nn.gelu(x2 @ w1[l] + b1[l], approximate=False)
        x = x + h @ w2[l] + b2[l]
    return x


# ----------------------------------- main --------------------------------------


if __name__ == "__main__":
    B, N, dim = 2, 8, 128      # dim multiple of 128 -> lane-dense activations
    num_heads = 8              # head_dim = 16
    num_blocks = 2

    key = jax.random.PRNGKey(0)
    kx, kp = jax.random.split(key)
    x = jax.random.normal(kx, (B, N, dim), jnp.float32)
    raw = init_raw_params(kp, num_blocks, dim)
    kparams = fold_params_for_kernel(raw, num_heads)

    out = jax.block_until_ready(dtransformer_encoder(x, kparams, num_heads))
    ref = jax.block_until_ready(_ref_forward(x, raw, num_heads))

    # bf16 matmul inputs in the kernel vs f32 reference -> loosened tolerance.
    np.testing.assert_allclose(np.asarray(out), np.asarray(ref), rtol=3e-2, atol=3e-2)

    print("KERNEL_OK")
</pallas_src>

<mosaic_0001>
module attributes {stable_mosaic.version = 11 : i64} {
  func.func @encoder_stack_kernel(%arg0: i32, %arg1: i32, %arg2: memref<1x16x128xf32, #tpu.memory_space<any>>, %arg3: memref<1x3x128x128xbf16, #tpu.memory_space<vmem>>, %arg4: memref<1x1x128xf32, #tpu.memory_space<vmem>>, %arg5: memref<1x1x128xf32, #tpu.memory_space<vmem>>, %arg6: memref<1x128x128xbf16, #tpu.memory_space<vmem>>, %arg7: memref<1x1x128xf32, #tpu.memory_space<vmem>>, %arg8: memref<1x128x512xbf16, #tpu.memory_space<vmem>>, %arg9: memref<1x1x512xf32, #tpu.memory_space<vmem>>, %arg10: memref<1x512x128xbf16, #tpu.memory_space<vmem>>, %arg11: memref<1x1x128xf32, #tpu.memory_space<vmem>>, %arg12: memref<16x128xf32, #tpu.memory_space<vmem>>, %arg13: memref<16x128xbf16, #tpu.memory_space<vmem>>) attributes {dimension_semantics = [#tpu.dimension_semantics<parallel>, #tpu.dimension_semantics<arbitrary>], iteration_bounds = array<i64: 1, 2>, scalar_prefetch = 0 : i64, scratch_operands = 1 : i64, tpu.core_type = #tpu.core_type<tc>, window_params = [{}, {transform_indices = @transform_1, window_bounds = array<i64: 1, 3, 128, 128>}, {transform_indices = @transform_2, window_bounds = array<i64: 1, 1, 128>}, {transform_indices = @transform_3, window_bounds = array<i64: 1, 1, 128>}, {transform_indices = @transform_4, window_bounds = array<i64: 1, 128, 128>}, {transform_indices = @transform_5, window_bounds = array<i64: 1, 1, 128>}, {transform_indices = @transform_6, window_bounds = array<i64: 1, 128, 512>}, {transform_indices = @transform_7, window_bounds = array<i64: 1, 1, 512>}, {transform_indices = @transform_8, window_bounds = array<i64: 1, 512, 128>}, {transform_indices = @transform_9, window_bounds = array<i64: 1, 1, 128>}, {transform_indices = @transform_10, window_bounds = array<i64: 16, 128>}]} {
    %c0_i32 = arith.constant 0 : i32
    %0 = arith.cmpi eq, %arg1, %c0_i32 : i32
    %1 = arith.extui %0 : i1 to i32
    %c0_i32_0 = arith.constant 0 : i32
    %2 = arith.cmpi ne, %1, %c0_i32_0 : i32
    scf.if %2 {
      "tpu.region"() ({
        %248 = tpu.sem_alloc : memref<!tpu.dma_semaphore, #tpu.memory_space<semaphore_mem>>
        %c0_i32_101 = arith.constant 0 : i32
        %c0_i32_102 = arith.constant 0 : i32
        %249 = tpu.memref_slice %arg2[%arg0, %c0_i32_101, %c0_i32_102] : memref<1x16x128xf32, #tpu.memory_space<any>> -> memref<1x16x128xf32, #tpu.memory_space<any>>
        %250 = tpu.memref_squeeze %249 : memref<1x16x128xf32, #tpu.memory_space<any>> -> memref<16x128xf32, #tpu.memory_space<any>>
        tpu.enqueue_dma source(%250 : memref<16x128xf32, #tpu.memory_space<any>>) target(%arg12 : memref<16x128xf32, #tpu.memory_space<vmem>>) target_semaphore(%248 : memref<!tpu.dma_semaphore, #tpu.memory_space<semaphore_mem>>)
        %c0_i32_103 = arith.constant 0 : i32
        %c0_i32_104 = arith.constant 0 : i32
        %251 = tpu.memref_slice %arg2[%arg0, %c0_i32_103, %c0_i32_104] : memref<1x16x128xf32, #tpu.memory_space<any>> -> memref<1x16x128xf32, #tpu.memory_space<any>>
        %252 = tpu.memref_squeeze %251 : memref<1x16x128xf32, #tpu.memory_space<any>> -> memref<16x128xf32, #tpu.memory_space<any>>
        tpu.wait_dma2 semaphore(%248 : memref<!tpu.dma_semaphore, #tpu.memory_space<semaphore_mem>>) src(%252 : memref<16x128xf32, #tpu.memory_space<any>>) dst(%arg12 : memref<16x128xf32, #tpu.memory_space<vmem>>)
        tpu.yield
      }) : () -> ()
    } else {
    }
    %c0 = arith.constant 0 : index
    %c0_1 = arith.constant 0 : index
    %3 = vector.load %arg12[%c0, %c0_1] : memref<16x128xf32, #tpu.memory_space<vmem>>, vector<16x128xf32>
    %c0_2 = arith.constant 0 : index
    %c0_3 = arith.constant 0 : index
    %c0_4 = arith.constant 0 : index
    %4 = vector.load %arg4[%c0_2, %c0_3, %c0_4] : memref<1x1x128xf32, #tpu.memory_space<vmem>>, vector<1x1x128xf32>
    %5 = vector.shape_cast %4 : vector<1x1x128xf32> to vector<1x128xf32>
    %c0_5 = arith.constant 0 : index
    %c0_6 = arith.constant 0 : index
    %c0_7 = arith.constant 0 : index
    %6 = vector.load %arg5[%c0_5, %c0_6, %c0_7] : memref<1x1x128xf32, #tpu.memory_space<vmem>>, vector<1x1x128xf32>
    %7 = vector.shape_cast %6 : vector<1x1x128xf32> to vector<1x128xf32>
    %cst = arith.constant dense<0.000000e+00> : vector<16xf32>
    %8 = vector.multi_reduction <add>, %3, %cst [1] : vector<16x128xf32> to vector<16xf32>
    %9 = vector.shape_cast %8 : vector<16xf32> to vector<16x1xf32>
    %cst_8 = arith.constant 1.280000e+02 : f32
    %10 = vector.broadcast %cst_8 : f32 to vector<16x1xf32>
    %11 = arith.divf %9, %10 : vector<16x1xf32>
    %12 = vector.broadcast %11 : vector<16x1xf32> to vector<16x128xf32>
    %13 = arith.subf %3, %12 : vector<16x128xf32>
    %14 = arith.mulf %13, %13 : vector<16x128xf32>
    %cst_9 = arith.constant dense<0.000000e+00> : vector<16xf32>
    %15 = vector.multi_reduction <add>, %14, %cst_9 [1] : vector<16x128xf32> to vector<16xf32>
    %16 = vector.shape_cast %15 : vector<16xf32> to vector<16x1xf32>
    %cst_10 = arith.constant 1.280000e+02 : f32
    %17 = vector.broadcast %cst_10 : f32 to vector<16x1xf32>
    %18 = arith.divf %16, %17 : vector<16x1xf32>
    %cst_11 = arith.constant 9.99999974E-6 : f32
    %19 = vector.broadcast %cst_11 : f32 to vector<16x1xf32>
    %20 = arith.addf %18, %19 : vector<16x1xf32>
    %21 = math.rsqrt %20 : vector<16x1xf32>
    %22 = vector.broadcast %21 : vector<16x1xf32> to vector<16x128xf32>
    %23 = arith.mulf %13, %22 : vector<16x128xf32>
    %24 = vector.broadcast %5 : vector<1x128xf32> to vector<16x128xf32>
    %25 = arith.mulf %23, %24 : vector<16x128xf32>
    %26 = vector.broadcast %7 : vector<1x128xf32> to vector<16x128xf32>
    %27 = arith.addf %25, %26 : vector<16x128xf32>
    %28 = arith.truncf %27 : vector<16x128xf32> to vector<16x128xbf16>
    %c0_12 = arith.constant 0 : index
    %c0_13 = arith.constant 0 : index
    %c0_14 = arith.constant 0 : index
    %c0_15 = arith.constant 0 : index
    %29 = vector.load %arg3[%c0_12, %c0_13, %c0_14, %c0_15] : memref<1x3x128x128xbf16, #tpu.memory_space<vmem>>, vector<1x1x128x128xbf16>
    %30 = vector.shape_cast %29 : vector<1x1x128x128xbf16> to vector<128x128xbf16>
    %cst_16 = arith.constant dense<0.000000e+00> : vector<16x128xf32>
    %31 = tpu.matmul %28, %30, %cst_16 {dimension_numbers = #tpu.dot_dimension_numbers<[1], [0], [0], [1], [0, 0, 1, 1], [], []>} : vector<16x128xbf16>, vector<128x128xbf16>, vector<16x128xf32> -> vector<16x128xf32>
    %c0_17 = arith.constant 0 : index
    %c1 = arith.constant 1 : index
    %c0_18 = arith.constant 0 : index
    %c0_19 = arith.constant 0 : index
    %32 = vector.load %arg3[%c0_17, %c1, %c0_18, %c0_19] : memref<1x3x128x128xbf16, #tpu.memory_space<vmem>>, vector<1x1x128x128xbf16>
    %33 = vector.shape_cast %32 : vector<1x1x128x128xbf16> to vector<128x128xbf16>
    %cst_20 = arith.constant dense<0.000000e+00> : vector<16x128xf32>
    %34 = tpu.matmul %28, %33, %cst_20 {dimension_numbers = #tpu.dot_dimension_numbers<[1], [0], [0], [1], [0, 0, 1, 1], [], []>} : vector<16x128xbf16>, vector<128x128xbf16>, vector<16x128xf32> -> vector<16x128xf32>
    %c0_21 = arith.constant 0 : index
    %c2 = arith.constant 2 : index
    %c0_22 = arith.constant 0 : index
    %c0_23 = arith.constant 0 : index
    %35 = vector.load %arg3[%c0_21, %c2, %c0_22, %c0_23] : memref<1x3x128x128xbf16, #tpu.memory_space<vmem>>, vector<1x1x128x128xbf16>
    %36 = vector.shape_cast %35 : vector<1x1x128x128xbf16> to vector<128x128xbf16>
    %cst_24 = arith.constant dense<0.000000e+00> : vector<16x128xf32>
    %37 = tpu.matmul %28, %36, %cst_24 {dimension_numbers = #tpu.dot_dimension_numbers<[1], [0], [0], [1], [0, 0, 1, 1], [], []>} : vector<16x128xbf16>, vector<128x128xbf16>, vector<16x128xf32> -> vector<16x128xf32>
    %38 = arith.truncf %31 : vector<16x128xf32> to vector<16x128xbf16>
    %39 = vector.shape_cast %38 : vector<16x128xbf16> to vector<2x8x128xbf16>
    %40 = arith.truncf %34 : vector<16x128xf32> to vector<16x128xbf16>
    %41 = vector.shape_cast %40 : vector<16x128xbf16> to vector<2x8x128xbf16>
    %42 = arith.truncf %37 : vector<16x128xf32> to vector<16x128xbf16>
    %43 = vector.shape_cast %42 : vector<16x128xbf16> to vector<2x8x128xbf16>
    %44 = vector.extract_strided_slice %39 {offsets = [0, 0, 0], sizes = [2, 8, 16], strides = [1, 1, 1]} : vector<2x8x128xbf16> to vector<2x8x16xbf16>
    %45 = vector.extract_strided_slice %41 {offsets = [0, 0, 0], sizes = [2, 8, 16], strides = [1, 1, 1]} : vector<2x8x128xbf16> to vector<2x8x16xbf16>
    "tpu.trace_start"() <{level = 10 : i32, message = "bnd,bmd->bnm"}> : () -> ()
    %cst_25 = arith.constant dense<0.000000e+00> : vector<2x8x8xf32>
    %46 = tpu.matmul %44, %45, %cst_25 {dimension_numbers = #tpu.dot_dimension_numbers<[2], [2], [1], [1], [0, 0, 0, 1, 1, 1], [0], [0]>} : vector<2x8x16xbf16>, vector<2x8x16xbf16>, vector<2x8x8xf32> -> vector<2x8x8xf32>
    "tpu.trace_stop"() : () -> ()
    %cst_26 = arith.constant dense<0xFF800000> : vector<2x8xf32>
    %47 = vector.multi_reduction <maximumf>, %46, %cst_26 [2] : vector<2x8x8xf32> to vector<2x8xf32>
    %48 = vector.shape_cast %47 : vector<2x8xf32> to vector<2x8x1xf32>
    %49 = vector.broadcast %48 : vector<2x8x1xf32> to vector<2x8x8xf32>
    %50 = arith.subf %46, %49 : vector<2x8x8xf32>
    %51 = math.exp %50 : vector<2x8x8xf32>
    %cst_27 = arith.constant dense<0.000000e+00> : vector<2x8xf32>
    %52 = vector.multi_reduction <add>, %51, %cst_27 [2] : vector<2x8x8xf32> to vector<2x8xf32>
    %53 = vector.shape_cast %52 : vector<2x8xf32> to vector<2x8x1xf32>
    %54 = tpu.reciprocal %53 {approx = true} : vector<2x8x1xf32> -> vector<2x8x1xf32>
    %55 = vector.broadcast %54 : vector<2x8x1xf32> to vector<2x8x8xf32>
    %56 = arith.mulf %51, %55 : vector<2x8x8xf32>
    %57 = arith.truncf %56 : vector<2x8x8xf32> to vector<2x8x8xbf16>
    %58 = vector.extract_strided_slice %43 {offsets = [0, 0, 0], sizes = [2, 8, 16], strides = [1, 1, 1]} : vector<2x8x128xbf16> to vector<2x8x16xbf16>
    "tpu.trace_start"() <{level = 10 : i32, message = "bnm,bmd->bnd"}> : () -> ()
    %cst_28 = arith.constant dense<0.000000e+00> : vector<2x8x16xf32>
    %59 = tpu.matmul %57, %58, %cst_28 {dimension_numbers = #tpu.dot_dimension_numbers<[2], [1], [1], [2], [0, 0, 0, 1, 1, 2], [0], [0]>} : vector<2x8x8xbf16>, vector<2x8x16xbf16>, vector<2x8x16xf32> -> vector<2x8x16xf32>
    "tpu.trace_stop"() : () -> ()
    %60 = vector.shape_cast %59 : vector<2x8x16xf32> to vector<16x16xf32>
    %61 = arith.truncf %60 : vector<16x16xf32> to vector<16x16xbf16>
    %c0_29 = arith.constant 0 : index
    %c0_30 = arith.constant 0 : index
    %62 = vector.load %arg13[%c0_29, %c0_30] : memref<16x128xbf16, #tpu.memory_space<vmem>>, vector<16x16xbf16>
    tpu.vector_store %arg13[%c0_29, %c0_30], %61 {strides = array<i32>} : memref<16x128xbf16, #tpu.memory_space<vmem>>, vector<16x16xbf16>,
    %63 = vector.extract_strided_slice %39 {offsets = [0, 0, 16], sizes = [2, 8, 16], strides = [1, 1, 1]} : vector<2x8x128xbf16> to vector<2x8x16xbf16>
    %64 = vector.extract_strided_slice %41 {offsets = [0, 0, 16], sizes = [2, 8, 16], strides = [1, 1, 1]} : vector<2x8x128xbf16> to vector<2x8x16xbf16>
    "tpu.trace_start"() <{level = 10 : i32, message = "bnd,bmd->bnm"}> : () -> ()
    %cst_31 = arith.constant dense<0.000000e+00> : vector<2x8x8xf32>
    %65 = tpu.matmul %63, %64, %cst_31 {dimension_numbers = #tpu.dot_dimension_numbers<[2], [2], [1], [1], [0, 0, 0, 1, 1, 1], [0], [0]>} : vector<2x8x16xbf16>, vector<2x8x16xbf16>, vector<2x8x8xf32> -> vector<2x8x8xf32>
    "tpu.trace_stop"() : () -> ()
    %cst_32 = arith.constant dense<0xFF800000> : vector<2x8xf32>
    %66 = vector.multi_reduction <maximumf>, %65, %cst_32 [2] : vector<2x8x8xf32> to vector<2x8xf32>
    %67 = vector.shape_cast %66 : vector<2x8xf32> to vector<2x8x1xf32>
    %68 = vector.broadcast %67 : vector<2x8x1xf32> to vector<2x8x8xf32>
    %69 = arith.subf %65, %68 : vector<2x8x8xf32>
    %70 = math.exp %69 : vector<2x8x8xf32>
    %cst_33 = arith.constant dense<0.000000e+00> : vector<2x8xf32>
    %71 = vector.multi_reduction <add>, %70, %cst_33 [2] : vector<2x8x8xf32> to vector<2x8xf32>
    %72 = vector.shape_cast %71 : vector<2x8xf32> to vector<2x8x1xf32>
    %73 = tpu.reciprocal %72 {approx = true} : vector<2x8x1xf32> -> vector<2x8x1xf32>
    %74 = vector.broadcast %73 : vector<2x8x1xf32> to vector<2x8x8xf32>
    %75 = arith.mulf %70, %74 : vector<2x8x8xf32>
    %76 = arith.truncf %75 : vector<2x8x8xf32> to vector<2x8x8xbf16>
    %77 = vector.extract_strided_slice %43 {offsets = [0, 0, 16], sizes = [2, 8, 16], strides = [1, 1, 1]} : vector<2x8x128xbf16> to vector<2x8x16xbf16>
    "tpu.trace_start"() <{level = 10 : i32, message = "bnm,bmd->bnd"}> : () -> ()
    %cst_34 = arith.constant dense<0.000000e+00> : vector<2x8x16xf32>
    %78 = tpu.matmul %76, %77, %cst_34 {dimension_numbers = #tpu.dot_dimension_numbers<[2], [1], [1], [2], [0, 0, 0, 1, 1, 2], [0], [0]>} : vector<2x8x8xbf16>, vector<2x8x16xbf16>, vector<2x8x16xf32> -> vector<2x8x16xf32>
    "tpu.trace_stop"() : () -> ()
    %79 = vector.shape_cast %78 : vector<2x8x16xf32> to vector<16x16xf32>
    %80 = arith.truncf %79 : vector<16x16xf32> to vector<16x16xbf16>
    %c0_35 = arith.constant 0 : index
    %c16 = arith.constant 16 : index
    %81 = vector.load %arg13[%c0_35, %c16] : memref<16x128xbf16, #tpu.memory_space<vmem>>, vector<16x16xbf16>
    tpu.vector_store %arg13[%c0_35, %c16], %80 {strides = array<i32>} : memref<16x128xbf16, #tpu.memory_space<vmem>>, vector<16x16xbf16>,
    %82 = vector.extract_strided_slice %39 {offsets = [0, 0, 32], sizes = [2, 8, 16], strides = [1, 1, 1]} : vector<2x8x128xbf16> to vector<2x8x16xbf16>
    %83 = vector.extract_strided_slice %41 {offsets = [0, 0, 32], sizes = [2, 8, 16], strides = [1, 1, 1]} : vector<2x8x128xbf16> to vector<2x8x16xbf16>
    "tpu.trace_start"() <{level = 10 : i32, message = "bnd,bmd->bnm"}> : () -> ()
    %cst_36 = arith.constant dense<0.000000e+00> : vector<2x8x8xf32>
    %84 = tpu.matmul %82, %83, %cst_36 {dimension_numbers = #tpu.dot_dimension_numbers<[2], [2], [1], [1], [0, 0, 0, 1, 1, 1], [0], [0]>} : vector<2x8x16xbf16>, vector<2x8x16xbf16>, vector<2x8x8xf32> -> vector<2x8x8xf32>
    "tpu.trace_stop"() : () -> ()
    %cst_37 = arith.constant dense<0xFF800000> : vector<2x8xf32>
    %85 = vector.multi_reduction <maximumf>, %84, %cst_37 [2] : vector<2x8x8xf32> to vector<2x8xf32>
    %86 = vector.shape_cast %85 : vector<2x8xf32> to vector<2x8x1xf32>
    %87 = vector.broadcast %86 : vector<2x8x1xf32> to vector<2x8x8xf32>
    %88 = arith.subf %84, %87 : vector<2x8x8xf32>
    %89 = math.exp %88 : vector<2x8x8xf32>
    %cst_38 = arith.constant dense<0.000000e+00> : vector<2x8xf32>
    %90 = vector.multi_reduction <add>, %89, %cst_38 [2] : vector<2x8x8xf32> to vector<2x8xf32>
    %91 = vector.shape_cast %90 : vector<2x8xf32> to vector<2x8x1xf32>
    %92 = tpu.reciprocal %91 {approx = true} : vector<2x8x1xf32> -> vector<2x8x1xf32>
    %93 = vector.broadcast %92 : vector<2x8x1xf32> to vector<2x8x8xf32>
    %94 = arith.mulf %89, %93 : vector<2x8x8xf32>
    %95 = arith.truncf %94 : vector<2x8x8xf32> to vector<2x8x8xbf16>
    %96 = vector.extract_strided_slice %43 {offsets = [0, 0, 32], sizes = [2, 8, 16], strides = [1, 1, 1]} : vector<2x8x128xbf16> to vector<2x8x16xbf16>
    "tpu.trace_start"() <{level = 10 : i32, message = "bnm,bmd->bnd"}> : () -> ()
    %cst_39 = arith.constant dense<0.000000e+00> : vector<2x8x16xf32>
    %97 = tpu.matmul %95, %96, %cst_39 {dimension_numbers = #tpu.dot_dimension_numbers<[2], [1], [1], [2], [0, 0, 0, 1, 1, 2], [0], [0]>} : vector<2x8x8xbf16>, vector<2x8x16xbf16>, vector<2x8x16xf32> -> vector<2x8x16xf32>
    "tpu.trace_stop"() : () -> ()
    %98 = vector.shape_cast %97 : vector<2x8x16xf32> to vector<16x16xf32>
    %99 = arith.truncf %98 : vector<16x16xf32> to vector<16x16xbf16>
    %c0_40 = arith.constant 0 : index
    %c32 = arith.constant 32 : index
    %100 = vector.load %arg13[%c0_40, %c32] : memref<16x128xbf16, #tpu.memory_space<vmem>>, vector<16x16xbf16>
    tpu.vector_store %arg13[%c0_40, %c32], %99 {strides = array<i32>} : memref<16x128xbf16, #tpu.memory_space<vmem>>, vector<16x16xbf16>,
    %101 = vector.extract_strided_slice %39 {offsets = [0, 0, 48], sizes = [2, 8, 16], strides = [1, 1, 1]} : vector<2x8x128xbf16> to vector<2x8x16xbf16>
    %102 = vector.extract_strided_slice %41 {offsets = [0, 0, 48], sizes = [2, 8, 16], strides = [1, 1, 1]} : vector<2x8x128xbf16> to vector<2x8x16xbf16>
    "tpu.trace_start"() <{level = 10 : i32, message = "bnd,bmd->bnm"}> : () -> ()
    %cst_41 = arith.constant dense<0.000000e+00> : vector<2x8x8xf32>
    %103 = tpu.matmul %101, %102, %cst_41 {dimension_numbers = #tpu.dot_dimension_numbers<[2], [2], [1], [1], [0, 0, 0, 1, 1, 1], [0], [0]>} : vector<2x8x16xbf16>, vector<2x8x16xbf16>, vector<2x8x8xf32> -> vector<2x8x8xf32>
    "tpu.trace_stop"() : () -> ()
    %cst_42 = arith.constant dense<0xFF800000> : vector<2x8xf32>
    %104 = vector.multi_reduction <maximumf>, %103, %cst_42 [2] : vector<2x8x8xf32> to vector<2x8xf32>
    %105 = vector.shape_cast %104 : vector<2x8xf32> to vector<2x8x1xf32>
    %106 = vector.broadcast %105 : vector<2x8x1xf32> to vector<2x8x8xf32>
    %107 = arith.subf %103, %106 : vector<2x8x8xf32>
    %108 = math.exp %107 : vector<2x8x8xf32>
    %cst_43 = arith.constant dense<0.000000e+00> : vector<2x8xf32>
    %109 = vector.multi_reduction <add>, %108, %cst_43 [2] : vector<2x8x8xf32> to vector<2x8xf32>
    %110 = vector.shape_cast %109 : vector<2x8xf32> to vector<2x8x1xf32>
    %111 = tpu.reciprocal %110 {approx = true} : vector<2x8x1xf32> -> vector<2x8x1xf32>
    %112 = vector.broadcast %111 : vector<2x8x1xf32> to vector<2x8x8xf32>
    %113 = arith.mulf %108, %112 : vector<2x8x8xf32>
    %114 = arith.truncf %113 : vector<2x8x8xf32> to vector<2x8x8xbf16>
    %115 = vector.extract_strided_slice %43 {offsets = [0, 0, 48], sizes = [2, 8, 16], strides = [1, 1, 1]} : vector<2x8x128xbf16> to vector<2x8x16xbf16>
    "tpu.trace_start"() <{level = 10 : i32, message = "bnm,bmd->bnd"}> : () -> ()
    %cst_44 = arith.constant dense<0.000000e+00> : vector<2x8x16xf32>
    %116 = tpu.matmul %114, %115, %cst_44 {dimension_numbers = #tpu.dot_dimension_numbers<[2], [1], [1], [2], [0, 0, 0, 1, 1, 2], [0], [0]>} : vector<2x8x8xbf16>, vector<2x8x16xbf16>, vector<2x8x16xf32> -> vector<2x8x16xf32>
    "tpu.trace_stop"() : () -> ()
    %117 = vector.shape_cast %116 : vector<2x8x16xf32> to vector<16x16xf32>
    %118 = arith.truncf %117 : vector<16x16xf32> to vector<16x16xbf16>
    %c0_45 = arith.constant 0 : index
    %c48 = arith.constant 48 : index
    %119 = vector.load %arg13[%c0_45, %c48] : memref<16x128xbf16, #tpu.memory_space<vmem>>, vector<16x16xbf16>
    tpu.vector_store %arg13[%c0_45, %c48], %118 {strides = array<i32>} : memref<16x128xbf16, #tpu.memory_space<vmem>>, vector<16x16xbf16>,
    %120 = vector.extract_strided_slice %39 {offsets = [0, 0, 64], sizes = [2, 8, 16], strides = [1, 1, 1]} : vector<2x8x128xbf16> to vector<2x8x16xbf16>
    %121 = vector.extract_strided_slice %41 {offsets = [0, 0, 64], sizes = [2, 8, 16], strides = [1, 1, 1]} : vector<2x8x128xbf16> to vector<2x8x16xbf16>
    "tpu.trace_start"() <{level = 10 : i32, message = "bnd,bmd->bnm"}> : () -> ()
    %cst_46 = arith.constant dense<0.000000e+00> : vector<2x8x8xf32>
    %122 = tpu.matmul %120, %121, %cst_46 {dimension_numbers = #tpu.dot_dimension_numbers<[2], [2], [1], [1], [0, 0, 0, 1, 1, 1], [0], [0]>} : vector<2x8x16xbf16>, vector<2x8x16xbf16>, vector<2x8x8xf32> -> vector<2x8x8xf32>
    "tpu.trace_stop"() : () -> ()
    %cst_47 = arith.constant dense<0xFF800000> : vector<2x8xf32>
    %123 = vector.multi_reduction <maximumf>, %122, %cst_47 [2] : vector<2x8x8xf32> to vector<2x8xf32>
    %124 = vector.shape_cast %123 : vector<2x8xf32> to vector<2x8x1xf32>
    %125 = vector.broadcast %124 : vector<2x8x1xf32> to vector<2x8x8xf32>
    %126 = arith.subf %122, %125 : vector<2x8x8xf32>
    %127 = math.exp %126 : vector<2x8x8xf32>
    %cst_48 = arith.constant dense<0.000000e+00> : vector<2x8xf32>
    %128 = vector.multi_reduction <add>, %127, %cst_48 [2] : vector<2x8x8xf32> to vector<2x8xf32>
    %129 = vector.shape_cast %128 : vector<2x8xf32> to vector<2x8x1xf32>
    %130 = tpu.reciprocal %129 {approx = true} : vector<2x8x1xf32> -> vector<2x8x1xf32>
    %131 = vector.broadcast %130 : vector<2x8x1xf32> to vector<2x8x8xf32>
    %132 = arith.mulf %127, %131 : vector<2x8x8xf32>
    %133 = arith.truncf %132 : vector<2x8x8xf32> to vector<2x8x8xbf16>
    %134 = vector.extract_strided_slice %43 {offsets = [0, 0, 64], sizes = [2, 8, 16], strides = [1, 1, 1]} : vector<2x8x128xbf16> to vector<2x8x16xbf16>
    "tpu.trace_start"() <{level = 10 : i32, message = "bnm,bmd->bnd"}> : () -> ()
    %cst_49 = arith.constant dense<0.000000e+00> : vector<2x8x16xf32>
    %135 = tpu.matmul %133, %134, %cst_49 {dimension_numbers = #tpu.dot_dimension_numbers<[2], [1], [1], [2], [0, 0, 0, 1, 1, 2], [0], [0]>} : vector<2x8x8xbf16>, vector<2x8x16xbf16>, vector<2x8x16xf32> -> vector<2x8x16xf32>
    "tpu.trace_stop"() : () -> ()
    %136 = vector.shape_cast %135 : vector<2x8x16xf32> to vector<16x16xf32>
    %137 = arith.truncf %136 : vector<16x16xf32> to vector<16x16xbf16>
    %c0_50 = arith.constant 0 : index
    %c64 = arith.constant 64 : index
    %138 = vector.load %arg13[%c0_50, %c64] : memref<16x128xbf16, #tpu.memory_space<vmem>>, vector<16x16xbf16>
    tpu.vector_store %arg13[%c0_50, %c64], %137 {strides = array<i32>} : memref<16x128xbf16, #tpu.memory_space<vmem>>, vector<16x16xbf16>,
    %139 = vector.extract_strided_slice %39 {offsets = [0, 0, 80], sizes = [2, 8, 16], strides = [1, 1, 1]} : vector<2x8x128xbf16> to vector<2x8x16xbf16>
    %140 = vector.extract_strided_slice %41 {offsets = [0, 0, 80], sizes = [2, 8, 16], strides = [1, 1, 1]} : vector<2x8x128xbf16> to vector<2x8x16xbf16>
    "tpu.trace_start"() <{level = 10 : i32, message = "bnd,bmd->bnm"}> : () -> ()
    %cst_51 = arith.constant dense<0.000000e+00> : vector<2x8x8xf32>
    %141 = tpu.matmul %139, %140, %cst_51 {dimension_numbers = #tpu.dot_dimension_numbers<[2], [2], [1], [1], [0, 0, 0, 1, 1, 1], [0], [0]>} : vector<2x8x16xbf16>, vector<2x8x16xbf16>, vector<2x8x8xf32> -> vector<2x8x8xf32>
    "tpu.trace_stop"() : () -> ()
    %cst_52 = arith.constant dense<0xFF800000> : vector<2x8xf32>
    %142 = vector.multi_reduction <maximumf>, %141, %cst_52 [2] : vector<2x8x8xf32> to vector<2x8xf32>
    %143 = vector.shape_cast %142 : vector<2x8xf32> to vector<2x8x1xf32>
    %144 = vector.broadcast %143 : vector<2x8x1xf32> to vector<2x8x8xf32>
    %145 = arith.subf %141, %144 : vector<2x8x8xf32>
    %146 = math.exp %145 : vector<2x8x8xf32>
    %cst_53 = arith.constant dense<0.000000e+00> : vector<2x8xf32>
    %147 = vector.multi_reduction <add>, %146, %cst_53 [2] : vector<2x8x8xf32> to vector<2x8xf32>
    %148 = vector.shape_cast %147 : vector<2x8xf32> to vector<2x8x1xf32>
    %149 = tpu.reciprocal %148 {approx = true} : vector<2x8x1xf32> -> vector<2x8x1xf32>
    %150 = vector.broadcast %149 : vector<2x8x1xf32> to vector<2x8x8xf32>
    %151 = arith.mulf %146, %150 : vector<2x8x8xf32>
    %152 = arith.truncf %151 : vector<2x8x8xf32> to vector<2x8x8xbf16>
    %153 = vector.extract_strided_slice %43 {offsets = [0, 0, 80], sizes = [2, 8, 16], strides = [1, 1, 1]} : vector<2x8x128xbf16> to vector<2x8x16xbf16>
    "tpu.trace_start"() <{level = 10 : i32, message = "bnm,bmd->bnd"}> : () -> ()
    %cst_54 = arith.constant dense<0.000000e+00> : vector<2x8x16xf32>
    %154 = tpu.matmul %152, %153, %cst_54 {dimension_numbers = #tpu.dot_dimension_numbers<[2], [1], [1], [2], [0, 0, 0, 1, 1, 2], [0], [0]>} : vector<2x8x8xbf16>, vector<2x8x16xbf16>, vector<2x8x16xf32> -> vector<2x8x16xf32>
    "tpu.trace_stop"() : () -> ()
    %155 = vector.shape_cast %154 : vector<2x8x16xf32> to vector<16x16xf32>
    %156 = arith.truncf %155 : vector<16x16xf32> to vector<16x16xbf16>
    %c0_55 = arith.constant 0 : index
    %c80 = arith.constant 80 : index
    %157 = vector.load %arg13[%c0_55, %c80] : memref<16x128xbf16, #tpu.memory_space<vmem>>, vector<16x16xbf16>
    tpu.vector_store %arg13[%c0_55, %c80], %156 {strides = array<i32>} : memref<16x128xbf16, #tpu.memory_space<vmem>>, vector<16x16xbf16>,
    %158 = vector.extract_strided_slice %39 {offsets = [0, 0, 96], sizes = [2, 8, 16], strides = [1, 1, 1]} : vector<2x8x128xbf16> to vector<2x8x16xbf16>
    %159 = vector.extract_strided_slice %41 {offsets = [0, 0, 96], sizes = [2, 8, 16], strides = [1, 1, 1]} : vector<2x8x128xbf16> to vector<2x8x16xbf16>
    "tpu.trace_start"() <{level = 10 : i32, message = "bnd,bmd->bnm"}> : () -> ()
    %cst_56 = arith.constant dense<0.000000e+00> : vector<2x8x8xf32>
    %160 = tpu.matmul %158, %159, %cst_56 {dimension_numbers = #tpu.dot_dimension_numbers<[2], [2], [1], [1], [0, 0, 0, 1, 1, 1], [0], [0]>} : vector<2x8x16xbf16>, vector<2x8x16xbf16>, vector<2x8x8xf32> -> vector<2x8x8xf32>
    "tpu.trace_stop"() : () -> ()
    %cst_57 = arith.constant dense<0xFF800000> : vector<2x8xf32>
    %161 = vector.multi_reduction <maximumf>, %160, %cst_57 [2] : vector<2x8x8xf32> to vector<2x8xf32>
    %162 = vector.shape_cast %161 : vector<2x8xf32> to vector<2x8x1xf32>
    %163 = vector.broadcast %162 : vector<2x8x1xf32> to vector<2x8x8xf32>
    %164 = arith.subf %160, %163 : vector<2x8x8xf32>
    %165 = math.exp %164 : vector<2x8x8xf32>
    %cst_58 = arith.constant dense<0.000000e+00> : vector<2x8xf32>
    %166 = vector.multi_reduction <add>, %165, %cst_58 [2] : vector<2x8x8xf32> to vector<2x8xf32>
    %167 = vector.shape_cast %166 : vector<2x8xf32> to vector<2x8x1xf32>
    %168 = tpu.reciprocal %167 {approx = true} : vector<2x8x1xf32> -> vector<2x8x1xf32>
    %169 = vector.broadcast %168 : vector<2x8x1xf32> to vector<2x8x8xf32>
    %170 = arith.mulf %165, %169 : vector<2x8x8xf32>
    %171 = arith.truncf %170 : vector<2x8x8xf32> to vector<2x8x8xbf16>
    %172 = vector.extract_strided_slice %43 {offsets = [0, 0, 96], sizes = [2, 8, 16], strides = [1, 1, 1]} : vector<2x8x128xbf16> to vector<2x8x16xbf16>
    "tpu.trace_start"() <{level = 10 : i32, message = "bnm,bmd->bnd"}> : () -> ()
    %cst_59 = arith.constant dense<0.000000e+00> : vector<2x8x16xf32>
    %173 = tpu.matmul %171, %172, %cst_59 {dimension_numbers = #tpu.dot_dimension_numbers<[2], [1], [1], [2], [0, 0, 0, 1, 1, 2], [0], [0]>} : vector<2x8x8xbf16>, vector<2x8x16xbf16>, vector<2x8x16xf32> -> vector<2x8x16xf32>
    "tpu.trace_stop"() : () -> ()
    %174 = vector.shape_cast %173 : vector<2x8x16xf32> to vector<16x16xf32>
    %175 = arith.truncf %174 : vector<16x16xf32> to vector<16x16xbf16>
    %c0_60 = arith.constant 0 : index
    %c96 = arith.constant 96 : index
    %176 = vector.load %arg13[%c0_60, %c96] : memref<16x128xbf16, #tpu.memory_space<vmem>>, vector<16x16xbf16>
    tpu.vector_store %arg13[%c0_60, %c96], %175 {strides = array<i32>} : memref<16x128xbf16, #tpu.memory_space<vmem>>, vector<16x16xbf16>,
    %177 = vector.extract_strided_slice %39 {offsets = [0, 0, 112], sizes = [2, 8, 16], strides = [1, 1, 1]} : vector<2x8x128xbf16> to vector<2x8x16xbf16>
    %178 = vector.extract_strided_slice %41 {offsets = [0, 0, 112], sizes = [2, 8, 16], strides = [1, 1, 1]} : vector<2x8x128xbf16> to vector<2x8x16xbf16>
    "tpu.trace_start"() <{level = 10 : i32, message = "bnd,bmd->bnm"}> : () -> ()
    %cst_61 = arith.constant dense<0.000000e+00> : vector<2x8x8xf32>
    %179 = tpu.matmul %177, %178, %cst_61 {dimension_numbers = #tpu.dot_dimension_numbers<[2], [2], [1], [1], [0, 0, 0, 1, 1, 1], [0], [0]>} : vector<2x8x16xbf16>, vector<2x8x16xbf16>, vector<2x8x8xf32> -> vector<2x8x8xf32>
    "tpu.trace_stop"() : () -> ()
    %cst_62 = arith.constant dense<0xFF800000> : vector<2x8xf32>
    %180 = vector.multi_reduction <maximumf>, %179, %cst_62 [2] : vector<2x8x8xf32> to vector<2x8xf32>
    %181 = vector.shape_cast %180 : vector<2x8xf32> to vector<2x8x1xf32>
    %182 = vector.broadcast %181 : vector<2x8x1xf32> to vector<2x8x8xf32>
    %183 = arith.subf %179, %182 : vector<2x8x8xf32>
    %184 = math.exp %183 : vector<2x8x8xf32>
    %cst_63 = arith.constant dense<0.000000e+00> : vector<2x8xf32>
    %185 = vector.multi_reduction <add>, %184, %cst_63 [2] : vector<2x8x8xf32> to vector<2x8xf32>
    %186 = vector.shape_cast %185 : vector<2x8xf32> to vector<2x8x1xf32>
    %187 = tpu.reciprocal %186 {approx = true} : vector<2x8x1xf32> -> vector<2x8x1xf32>
    %188 = vector.broadcast %187 : vector<2x8x1xf32> to vector<2x8x8xf32>
    %189 = arith.mulf %184, %188 : vector<2x8x8xf32>
    %190 = arith.truncf %189 : vector<2x8x8xf32> to vector<2x8x8xbf16>
    %191 = vector.extract_strided_slice %43 {offsets = [0, 0, 112], sizes = [2, 8, 16], strides = [1, 1, 1]} : vector<2x8x128xbf16> to vector<2x8x16xbf16>
    "tpu.trace_start"() <{level = 10 : i32, message = "bnm,bmd->bnd"}> : () -> ()
    %cst_64 = arith.constant dense<0.000000e+00> : vector<2x8x16xf32>
    %192 = tpu.matmul %190, %191, %cst_64 {dimension_numbers = #tpu.dot_dimension_numbers<[2], [1], [1], [2], [0, 0, 0, 1, 1, 2], [0], [0]>} : vector<2x8x8xbf16>, vector<2x8x16xbf16>, vector<2x8x16xf32> -> vector<2x8x16xf32>
    "tpu.trace_stop"() : () -> ()
    %193 = vector.shape_cast %192 : vector<2x8x16xf32> to vector<16x16xf32>
    %194 = arith.truncf %193 : vector<16x16xf32> to vector<16x16xbf16>
    %c0_65 = arith.constant 0 : index
    %c112 = arith.constant 112 : index
    %195 = vector.load %arg13[%c0_65, %c112] : memref<16x128xbf16, #tpu.memory_space<vmem>>, vector<16x16xbf16>
    tpu.vector_store %arg13[%c0_65, %c112], %194 {strides = array<i32>} : memref<16x128xbf16, #tpu.memory_space<vmem>>, vector<16x16xbf16>,
    %c0_66 = arith.constant 0 : index
    %c0_67 = arith.constant 0 : index
    %196 = vector.load %arg12[%c0_66, %c0_67] : memref<16x128xf32, #tpu.memory_space<vmem>>, vector<16x128xf32>
    %c0_68 = arith.constant 0 : index
    %c0_69 = arith.constant 0 : index
    %197 = vector.load %arg13[%c0_68, %c0_69] : memref<16x128xbf16, #tpu.memory_space<vmem>>, vector<16x128xbf16>
    %c0_70 = arith.constant 0 : index
    %c0_71 = arith.constant 0 : index
    %c0_72 = arith.constant 0 : index
    %198 = vector.load %arg6[%c0_70, %c0_71, %c0_72] : memref<1x128x128xbf16, #tpu.memory_space<vmem>>, vector<1x128x128xbf16>
    %199 = vector.shape_cast %198 : vector<1x128x128xbf16> to vector<128x128xbf16>
    %cst_73 = arith.constant dense<0.000000e+00> : vector<16x128xf32>
    %200 = tpu.matmul %197, %199, %cst_73 {dimension_numbers = #tpu.dot_dimension_numbers<[1], [0], [0], [1], [0, 0, 1, 1], [], []>} : vector<16x128xbf16>, vector<128x128xbf16>, vector<16x128xf32> -> vector<16x128xf32>
    %201 = arith.addf %196, %200 : vector<16x128xf32>
    %c0_74 = arith.constant 0 : index
    %c0_75 = arith.constant 0 : index
    %c0_76 = arith.constant 0 : index
    %202 = vector.load %arg7[%c0_74, %c0_75, %c0_76] : memref<1x1x128xf32, #tpu.memory_space<vmem>>, vector<1x1x128xf32>
    %203 = vector.shape_cast %202 : vector<1x1x128xf32> to vector<1x128xf32>
    %204 = vector.broadcast %203 : vector<1x128xf32> to vector<16x128xf32>
    %205 = arith.addf %201, %204 : vector<16x128xf32>
    %cst_77 = arith.constant dense<0.000000e+00> : vector<16xf32>
    %206 = vector.multi_reduction <add>, %205, %cst_77 [1] : vector<16x128xf32> to vector<16xf32>
    %207 = vector.shape_cast %206 : vector<16xf32> to vector<16x1xf32>
    %cst_78 = arith.constant 1.280000e+02 : f32
    %208 = vector.broadcast %cst_78 : f32 to vector<16x1xf32>
    %209 = arith.divf %207, %208 : vector<16x1xf32>
    %210 = vector.broadcast %209 : vector<16x1xf32> to vector<16x128xf32>
    %211 = arith.subf %205, %210 : vector<16x128xf32>
    %212 = arith.mulf %211, %211 : vector<16x128xf32>
    %cst_79 = arith.constant dense<0.000000e+00> : vector<16xf32>
    %213 = vector.multi_reduction <add>, %212, %cst_79 [1] : vector<16x128xf32> to vector<16xf32>
    %214 = vector.shape_cast %213 : vector<16xf32> to vector<16x1xf32>
    %cst_80 = arith.constant 1.280000e+02 : f32
    %215 = vector.broadcast %cst_80 : f32 to vector<16x1xf32>
    %216 = arith.divf %214, %215 : vector<16x1xf32>
    %cst_81 = arith.constant 9.99999974E-6 : f32
    %217 = vector.broadcast %cst_81 : f32 to vector<16x1xf32>
    %218 = arith.addf %216, %217 : vector<16x1xf32>
    %219 = math.rsqrt %218 : vector<16x1xf32>
    %220 = vector.broadcast %219 : vector<16x1xf32> to vector<16x128xf32>
    %221 = arith.mulf %211, %220 : vector<16x128xf32>
    %222 = arith.truncf %221 : vector<16x128xf32> to vector<16x128xbf16>
    %c0_82 = arith.constant 0 : index
    %c0_83 = arith.constant 0 : index
    %c0_84 = arith.constant 0 : index
    %223 = vector.load %arg9[%c0_82, %c0_83, %c0_84] : memref<1x1x512xf32, #tpu.memory_space<vmem>>, vector<1x1x512xf32>
    %224 = vector.shape_cast %223 : vector<1x1x512xf32> to vector<1x512xf32>
    %c0_85 = arith.constant 0 : index
    %c0_86 = arith.constant 0 : index
    %c0_87 = arith.constant 0 : index
    %225 = vector.load %arg8[%c0_85, %c0_86, %c0_87] : memref<1x128x512xbf16, #tpu.memory_space<vmem>>, vector<1x128x512xbf16>
    %226 = vector.shape_cast %225 : vector<1x128x512xbf16> to vector<128x512xbf16>
    %cst_88 = arith.constant dense<0.000000e+00> : vector<16x512xf32>
    %227 = tpu.matmul %222, %226, %cst_88 {dimension_numbers = #tpu.dot_dimension_numbers<[1], [0], [0], [1], [0, 0, 1, 1], [], []>} : vector<16x128xbf16>, vector<128x512xbf16>, vector<16x512xf32> -> vector<16x512xf32>
    %228 = vector.broadcast %224 : vector<1x512xf32> to vector<16x512xf32>
    %229 = arith.addf %227, %228 : vector<16x512xf32>
    %cst_89 = arith.constant 5.000000e-01 : f32
    %230 = vector.broadcast %cst_89 : f32 to vector<16x512xf32>
    %231 = arith.mulf %230, %229 : vector<16x512xf32>
    %cst_90 = arith.constant 0.707106769 : f32
    %232 = vector.broadcast %cst_90 : f32 to vector<16x512xf32>
    %233 = arith.mulf %229, %232 : vector<16x512xf32>
    %234 = math.erf %233 : vector<16x512xf32>
    %cst_91 = arith.constant 1.000000e+00 : f32
    %235 = vector.broadcast %cst_91 : f32 to vector<16x512xf32>
    %236 = arith.addf %235, %234 : vector<16x512xf32>
    %237 = arith.mulf %231, %236 : vector<16x512xf32>
    %238 = arith.truncf %237 : vector<16x512xf32> to vector<16x512xbf16>
    %c0_92 = arith.constant 0 : index
    %c0_93 = arith.constant 0 : index
    %c0_94 = arith.constant 0 : index
    %239 = vector.load %arg10[%c0_92, %c0_93, %c0_94] : memref<1x512x128xbf16, #tpu.memory_space<vmem>>, vector<1x512x128xbf16>
    %240 = vector.shape_cast %239 : vector<1x512x128xbf16> to vector<512x128xbf16>
    %cst_95 = arith.constant dense<0.000000e+00> : vector<16x128xf32>
    %241 = tpu.matmul %238, %240, %cst_95 {dimension_numbers = #tpu.dot_dimension_numbers<[1], [0], [0], [1], [0, 0, 1, 1], [], []>} : vector<16x512xbf16>, vector<512x128xbf16>, vector<16x128xf32> -> vector<16x128xf32>
    %242 = arith.addf %205, %241 : vector<16x128xf32>
    %c0_96 = arith.constant 0 : index
    %c0_97 = arith.constant 0 : index
    %c0_98 = arith.constant 0 : index
    %243 = vector.load %arg11[%c0_96, %c0_97, %c0_98] : memref<1x1x128xf32, #tpu.memory_space<vmem>>, vector<1x1x128xf32>
    %244 = vector.shape_cast %243 : vector<1x1x128xf32> to vector<1x128xf32>
    %245 = vector.broadcast %244 : vector<1x128xf32> to vector<16x128xf32>
    %246 = arith.addf %242, %245 : vector<16x128xf32>
    %c0_99 = arith.constant 0 : index
    %c0_100 = arith.constant 0 : index
    %247 = vector.load %arg12[%c0_99, %c0_100] : memref<16x128xf32, #tpu.memory_space<vmem>>, vector<16x128xf32>
    tpu.vector_store %arg12[%c0_99, %c0_100], %246 {strides = array<i32>} : memref<16x128xf32, #tpu.memory_space<vmem>>, vector<16x128xf32>,
    return
  }
  func.func @transform_1(%arg0: i32, %arg1: i32) -> (i32, i32, i32, i32) {
    %c0_i32 = arith.constant 0 : i32
    %c0_i32_0 = arith.constant 0 : i32
    %c0_i32_1 = arith.constant 0 : i32
    %c0_i32_2 = arith.constant 0 : i32
    return %arg1, %c0_i32, %c0_i32_0, %c0_i32_1 : i32, i32, i32, i32
  }
  func.func @transform_2(%arg0: i32, %arg1: i32) -> (i32, i32, i32) {
    %c0_i32 = arith.constant 0 : i32
    %c0_i32_0 = arith.constant 0 : i32
    %c0_i32_1 = arith.constant 0 : i32
    return %arg1, %c0_i32, %c0_i32_0 : i32, i32, i32
  }
  func.func @transform_3(%arg0: i32, %arg1: i32) -> (i32, i32, i32) {
    %c0_i32 = arith.constant 0 : i32
    %c0_i32_0 = arith.constant 0 : i32
    %c0_i32_1 = arith.constant 0 : i32
    return %arg1, %c0_i32, %c0_i32_0 : i32, i32, i32
  }
  func.func @transform_4(%arg0: i32, %arg1: i32) -> (i32, i32, i32) {
    %c0_i32 = arith.constant 0 : i32
    %c0_i32_0 = arith.constant 0 : i32
    %c0_i32_1 = arith.constant 0 : i32
    return %arg1, %c0_i32, %c0_i32_0 : i32, i32, i32
  }
  func.func @transform_5(%arg0: i32, %arg1: i32) -> (i32, i32, i32) {
    %c0_i32 = arith.constant 0 : i32
    %c0_i32_0 = arith.constant 0 : i32
    %c0_i32_1 = arith.constant 0 : i32
    return %arg1, %c0_i32, %c0_i32_0 : i32, i32, i32
  }
  func.func @transform_6(%arg0: i32, %arg1: i32) -> (i32, i32, i32) {
    %c0_i32 = arith.constant 0 : i32
    %c0_i32_0 = arith.constant 0 : i32
    %c0_i32_1 = arith.constant 0 : i32
    return %arg1, %c0_i32, %c0_i32_0 : i32, i32, i32
  }
  func.func @transform_7(%arg0: i32, %arg1: i32) -> (i32, i32, i32) {
    %c0_i32 = arith.constant 0 : i32
    %c0_i32_0 = arith.constant 0 : i32
    %c0_i32_1 = arith.constant 0 : i32
    return %arg1, %c0_i32, %c0_i32_0 : i32, i32, i32
  }
  func.func @transform_8(%arg0: i32, %arg1: i32) -> (i32, i32, i32) {
    %c0_i32 = arith.constant 0 : i32
    %c0_i32_0 = arith.constant 0 : i32
    %c0_i32_1 = arith.constant 0 : i32
    return %arg1, %c0_i32, %c0_i32_0 : i32, i32, i32
  }
  func.func @transform_9(%arg0: i32, %arg1: i32) -> (i32, i32, i32) {
    %c0_i32 = arith.constant 0 : i32
    %c0_i32_0 = arith.constant 0 : i32
    %c0_i32_1 = arith.constant 0 : i32
    return %arg1, %c0_i32, %c0_i32_0 : i32, i32, i32
  }
  func.func @transform_10(%arg0: i32, %arg1: i32) -> (i32, i32) {
    %c0_i32 = arith.constant 0 : i32
    %c0_i32_0 = arith.constant 0 : i32
    return %arg0, %c0_i32 : i32, i32
  }
}

</mosaic_0001>

<bundles_post_ra>
// kernel: tpu_custom_call.1
= control target key start
LH: loop header
LB: loop body
LE: loop exit
PB: predicated region body
PF: predicated region fallthrough
CT: control target
= control target key end

     0   :  { %s5455_s0 = inlined_call_operand.hbm [shape: f32[1,16,128], index: 0, kind: input, shape index: {}]   ;;  %s5456_s1 = inlined_call_operand.hbm [shape: bf16[2,3,128,128], index: 1, kind: input, shape index: {}]   ;;  %s5457_s2 = inlined_call_operand.hbm [shape: f32[2,1,128], index: 2, kind: input, shape index: {}]   ;;  %s5458_s3 = inlined_call_operand.vmem [shape: f32[2,1,128], index: 3, kind: input, shape index: {}]   ;;  %s5459_s4 = inlined_call_operand.hbm [shape: bf16[2,128,128], index: 4, kind: input, shape index: {}]   ;;  %s5460_s5 = inlined_call_operand.vmem [shape: f32[2,1,128], index: 5, kind: input, shape index: {}]   ;;  %s5461_s6 = inlined_call_operand.hbm [shape: bf16[2,128,512], index: 6, kind: input, shape index: {}]   ;;  %s5462_s7 = inlined_call_operand.hbm [shape: f32[2,1,512], index: 7, kind: input, shape index: {}]   ;;  %s5463_s8 = inlined_call_operand.hbm [shape: bf16[2,512,128], index: 8, kind: input, shape index: {}]   ;;  %s5464_s9 = inlined_call_operand.vmem [shape: f32[2,1,128], index: 9, kind: input, shape index: {}]   ;;  %s5465_s10 = inlined_call_operand.hbm [shape: f32[16,128], index: 10, kind: output, shape index: {}]  }
   0x1   :  { %5471 = sst [smem:[#allocation30_spill]] %s5455_s0 }
   0x2   :  { %5472 = sst [smem:[#allocation31_spill]] %s5456_s1 }
   0x3   :  { %5473 = sst [smem:[#allocation32_spill]] %s5457_s2 }
   0x4   :  { %5474 = sst [smem:[#allocation33_spill]] %s5460_s5 }
   0x5   :  { %5475 = sst [smem:[#allocation34_spill]] %s5461_s6 }
   0x6   :  { %5476 = sst [smem:[#allocation35_spill]] %s5464_s9 }
   0x7   :  { %5477 = sst [smem:[#allocation36_spill]] %s5465_s10 }
   0x8   :  { %15 = vsyncpa [#allocation4], 0 }
   0x9   :  { %17 = vsyncpa [#allocation4 + $0x1], 0 }
   0xa   :  { %18 = vsyncpa [#allocation7], 0 }
   0xb   :  { %20 = vsyncpa [#allocation7 + $0x1], 0 }
   0xc   :  { %21 = vsyncpa [#allocation10], 0 }
   0xd   :  { %23 = vsyncpa [#allocation10 + $0x1], 0 }
   0xe   :  { %24 = vsyncpa [#allocation13], 0 }
   0xf   :  { %26 = vsyncpa [#allocation13 + $0x1], 0 }
  0x10   :  { %27 = vsyncpa [#allocation5], 0  ;;  %s4363_s13 = smov 0   ;;  %s4365_s14 = smov 0  }
  0x11   :  { %s4367_s15 = smov 0   ;;  %s4369_s16 = smov 0  }
  0x12   :  { %s4371_s17 = smov 0   ;;  %s4373_s18 = smov 0  }
  0x13 LB: > { %5478 = sst [smem:[#allocation26_spill]] %s4278_s15  ;;  %s4392_s19 = sadd.s32 4294967295, %s4290_s18   ;;  %s4290_s18 = sphi %s4373_s18, %s33_s18   ;;  %s4286_s17 = sphi %s4371_s17, %s5515_s17   ;;  %s4282_s16 = sphi %s4369_s16, %s5514_s16   ;;  %s4278_s15 = sphi %s4367_s15, %s5510_s15   ;;  %s4274_s14 = sphi %s4365_s14, %s5513_s14   ;;  %s4270_s13 = sphi %s4363_s13, %s5512_s13  }
  0x14   : > { %5479 = sst [smem:[#allocation27_spill]] %s4290_s18  ;;  %s42_s20 = sadd.s32 1, %s4286_s17 }
  0x15   : > { %p43_p0 = scmp.ge.s32.totalorder %s42_s20, 2  ;;  %s52_s21 = sadd.s32 1, %s4278_s15 }
  0x16   : > { %p59_p1 = scmp.ne.s32.totalorder %s4278_s15, %s4274_s14  ;;  %p60_p2 = scmp.eq.s32.totalorder %s4290_s18, 0 }
  0x17   : > { %s5517_s20 = smov (%p43_p0, %s42_s20), 0  ;;  %p65_p4 = scmp.ne.s32.totalorder %s4274_s14, %s4270_s13 }
  0x18   : > { %5480 = sst [smem:[#allocation28_spill]] %s5517_s20  ;;  %p61_p3 = por %p60_p2, %p59_p1 }
  0x19   : > { %s49_s22 = ssub.s32 %s4286_s17, %s5517_s20  ;;  %p66_p5 = scmp.eq.s32.totalorder %s4392_s19, 0 }
  0x1a   : > { %p50_p6 = scmp.eq.s32.totalorder %s49_s22, 0  ;;  %p3829_p8 = scmp.lt.s32.totalorder %s4290_s18, 2 }
  0x1b   : > { %p4405_p7 = por %p66_p5, %p65_p4  ;;  %s4414_s25 = sand.u32 1, %s4278_s15  }
  0x1c   : > { %s4411_s24 = scalar_select %p50_p6, %s4278_s15, %s52_s21  }
  0x1d   : > { %p4416_p9 = pnand %p3829_p8, %p61_p3  ;;  %s345_s27 = sand.u32 1, %s4290_s18  }
  0x1e   : > { %5482 = sst [smem:[#allocation29_spill]] %s4411_s24  ;;  %s348_s11 = scalar_lea.vmem [#allocation6], %s4414_s25 }
  0x1f   : > { %s5484_s2 = sld [smem:[#allocation32_spill]]  ;;  %s355_s12 = sshll.u32 %s348_s11, 4  ;;  %s356_s12 = int_to_ptr.vmem [resolvable:$true] %s355_s12 }
  0x20   : > { %s4426_s21 = scalar_lea.sflag [#allocation7], %s345_s27  ;;  %p3221_p10 = scmp.ge.s32.totalorder %s4290_s18, 1 }
  0x21   : > { %p463_p11 = scmp.lt.s32.totalorder %s4290_s18, 3  ;;  %s5470_s22 = sshll.u32 %s4414_s25, 8 }
  0x22   : > { %s5469_s20 = sshll.u32 %s4286_s17, 8  ;;  %s5486_s6 = sld [smem:[#allocation34_spill]] }
  0x23   : > { %p4435_p12 = pnand %p3221_p10, %p463_p11  ;;  %s4292_s15 = smov 256  }
  0x24   : > { %s4293_s18 = smov 16   ;;  %s3791_s10 = smul.u32 192, %s4414_s25 }
  0x25   : > { %s351_s30 = scalar_lea.hbm %s5484_s2, %s4286_s17  ;;  %s400_s2 = scalar_lea.vmem [#allocation9], %s5470_s22 }
  0x26   : > { %s353_s13 = sshll.u32 %s351_s30, 4  ;;  %s408_s24 = sshll.u32 %s400_s2, 4  ;;  %s354_s13 = int_to_ptr.hbm [resolvable:$true] %s353_s13  ;;  %s409_s24 = int_to_ptr.vmem [resolvable:$true] %s408_s24 }
  0x27   : > { %3816 = dma.hbm_to_vmem [thread:$0]  (!%p4416_p9), %s354_s13, 16, %s356_s12, %s4426_s21  }
  0x28   : > { %s405_s11 = scalar_lea.hbm %s5486_s6, %s5469_s20  ;;  %s4446_s13 = scalar_lea.sflag [#allocation10], %s345_s27 }
  0x29   : > { %s406_s12 = sshll.u32 %s405_s11, 4  ;;  %s3792_s0 = smul.u32 192, %s4286_s17  ;;  %s407_s12 = int_to_ptr.hbm [resolvable:$true] %s406_s12 }
  0x2a   : > { %3822 = dma.hbm_to_vmem [thread:$0]  (!%p4416_p9), %s407_s12, 4096, %s409_s24, %s4446_s13, %s4292_s15, %s4292_s15, %s4293_s18  }
  0x2b   : > { %s3210_s29 = sshll.u32 %s4414_s25, 6  ;;  %s5487_s1 = sld [smem:[#allocation31_spill]] }
  0x2c   : > { %s327_s11 = scalar_lea.vmem [#allocation3], %s3791_s10  ;;  %s324_s6 = scalar_lea.sflag [#allocation4], %s4414_s25 }
  0x2d   : > { %s335_s22 = sshll.u32 %s327_s11, 4  ;;  %s4294_s9 = smov 64   ;;  %s336_s22 = int_to_ptr.vmem [resolvable:$true] %s335_s22 }
  0x2e   : > { %s4295_s5 = smov 4   ;;  %s3691_s15 = sshll.u32 %s4286_s17, 6 }
  0x2f   : > { %s377_s24 = scalar_lea.hbm %s5459_s4, %s3691_s15  ;;  %s3216_s30 = sshll.u32 %s4414_s25, 2 }
  0x30   : > { %s378_s12 = sshll.u32 %s377_s24, 4  ;;  %s379_s12 = int_to_ptr.hbm [resolvable:$true] %s378_s12 }
  0x31   : > { %s332_s2 = scalar_lea.hbm %s5487_s1, %s3792_s0  ;;  %s372_s0 = scalar_lea.vmem [#allocation8], %s3210_s29 }
  0x32   : > { %s333_s27 = sshll.u32 %s332_s2, 4  ;;  %s380_s10 = sshll.u32 %s372_s0, 4  ;;  %s334_s27 = int_to_ptr.hbm [resolvable:$true] %s333_s27  ;;  %s381_s10 = int_to_ptr.vmem [resolvable:$true] %s380_s10 }
  0x33   : > { %3813 = dma.hbm_to_vmem [thread:$0]  (!%p4416_p9), %s334_s27, 3072, %s336_s22, %s324_s6, %s4294_s9, %s4294_s9, %s4295_s5  }
  0x34   : > { %3819 = dma.hbm_to_vmem [thread:$0]  (!%p4416_p9), %s379_s12, 1024, %s381_s10, %s4426_s21, %s4294_s9, %s4294_s9, %s4295_s5  }
  0x35   : > { %s3217_s6 = sshll.u32 %s4286_s17, 2  ;;  %s422_s22 = scalar_lea.vmem [#allocation11], %s3216_s30 }
  0x36   : > { %s430_s29 = sshll.u32 %s422_s22, 4  ;;  %s426_s27 = scalar_lea.hbm %s5462_s7, %s3217_s6  ;;  %s431_s29 = int_to_ptr.vmem [resolvable:$true] %s430_s29 }
  0x37   : > { %s428_s15 = sshll.u32 %s426_s27, 4  ;;  %s5488_s0 = sshll.u32 %s4286_s17, 8  ;;  %s429_s15 = int_to_ptr.hbm [resolvable:$true] %s428_s15 }
  0x38   : > { %3825 = dma.hbm_to_vmem [thread:$0]  (!%p4416_p9), %s429_s15, 64, %s431_s29, %s4446_s13  }
  0x39   : > { %s446_s24 = scalar_lea.hbm %s5463_s8, %s5488_s0  ;;  %s5489_s1 = sshll.u32 %s4414_s25, 8 }
  0x3a   : > { %s441_s21 = scalar_lea.vmem [#allocation12], %s5489_s1  ;;  %s447_s12 = sshll.u32 %s446_s24, 4  ;;  %s448_s12 = int_to_ptr.hbm [resolvable:$true] %s447_s12 }
  0x3b   : > { %s449_s10 = sshll.u32 %s441_s21, 4  ;;  %s438_s30 = scalar_lea.sflag [#allocation13], %s4414_s25  ;;  %s450_s10 = int_to_ptr.vmem [resolvable:$true] %s449_s10 }
  0x3c   : > { %3828 = dma.hbm_to_vmem [thread:$0]  (!%p4416_p9), %s448_s12, 4096, %s450_s10, %s438_s30, %s4294_s9, %s4294_s9, %s4295_s5  }
  0x3d   : > { %467 = sbr.rel (%p4435_p12) target bundleno = 2224 (0x8b0), region = 56  ;;  %s4497_s13 = sand.u32 (!%p4435_p12), 1, %s4274_s14  }
  0x3e   : > { %s3793_s1 = smul.u32 (!%p4435_p12), 192, %s4497_s13  ;;  %s470_s6 = scalar_lea.sflag (!%p4435_p12), [#allocation4], %s4497_s13 }
  0x40   : > { %s4501_s22 = scalar_lea.vmem (!%p4435_p12), [#allocation3], %s3793_s1 }
  0x42   : > { %4247 = dma.done.wait (%p4405_p7), %s470_s6, 3072  }
  0x43   : > { %4249 = vsyncadd (%p4405_p7), %s470_s6, 4294964224  ;;  %s479_s5 = sand.u32 1, %s4392_s19   ;;  %s482_s25 = scalar_lea.vmem [#allocation6], %s4497_s13 }
  0x44   : > { %s480_s9 = scalar_lea.sflag [#allocation7], %s479_s5 }
  0x45   : > { %4251 = dma.done.wait (%p4405_p7), %s480_s9, 1040  }
  0x46   : > { %4253 = vsyncadd (%p4405_p7), %s480_s9, 4294966256  ;;  %s3222_s26 = sshll.u32 %s4497_s13, 6  ;;  %s3223_s28 = sshll.u32 %s4497_s13, 8 }
  0x47   : > { %s4515_s29 = scalar_lea.vmem [#allocation8], %s3222_s26  ;;  %s499_s2 = scalar_lea.sflag [#allocation10], %s479_s5 }
  0x48   : > { %s4517_s11 = scalar_lea.vmem [#allocation9], %s3223_s28 }
  0x49   : > { %4255 = dma.done.wait (%p4405_p7), %s499_s2, 4160  }
  0x4a   : > { %4257 = vsyncadd (%p4405_p7), %s499_s2, 4294963136  ;;  %s3224_s27 = sshll.u32 %s4497_s13, 2  ;;  %s519_s0 = scalar_lea.sflag [#allocation13], %s4497_s13 }
  0x4b   : > { %s4524_s15 = scalar_lea.vmem [#allocation11], %s3224_s27  ;;  %s4527_s18 = scalar_lea.vmem [#allocation12], %s3223_s28 }
  0x4c   : > { %4259 = dma.done.wait (%p4405_p7), %s519_s0, 4096  }
  0x4d   : > { %4261 = vsyncadd (%p4405_p7), %s519_s0, 4294963200  ;;  %p586_p13 = scmp.lt.s32.totalorder %s4282_s16, 1  ;;  %s5490_s1 = sld [smem:[#allocation33_spill]] }
  0x4e   : > { %s5491_s23 = sld [smem:[#allocation35_spill]]  ;;  %p3226_p0 = scmp.ne.s32.totalorder %s4282_s16, 0 }
  0x4f   : > { %s4535_s20 = scalar_select %p586_p13, %s4282_s16, 1 }
  0x50   : > { %600 = sbr.rel (%p3226_p0) target bundleno = 95 (0x5f), region = 84 }
  0x51   : > { %s588_s10 = scalar_lea.vmem %s5458_s3, %s4535_s20 }
  0x53   : > { %s591_s6 = scalar_lea.vmem %s5490_s1, %s4535_s20 }
  0x54   : > { %s594_s26 = scalar_lea.vmem %s5491_s23, %s4535_s20 }
  0x55   : > { %s5492_s27 = sld [smem:[#allocation30_spill]]  ;;  %s4296_s24 = smov [#allocation14]  }
  0x56   : > { %s612_s21 = sshll.u32 %s4296_s24, 4  ;;  %s613_s21 = int_to_ptr.vmem [resolvable:$true] %s612_s21 }
  0x5b   : > { %s610_s0 = sshll.u32 %s5492_s27, 4  ;;  %s611_s0 = int_to_ptr.hbm [resolvable:$true] %s610_s0 }
  0x5c   : > { %615 = dma.hbm_to_vmem [thread:$0]  %s611_s0, 256, %s613_s21, [#allocation15] }
  0x5d   : > { %4262 = dma.done.wait [#allocation15], 256 }
  0x5e   : > { %4263 = vsyncadd [#allocation15], 4294967040 }
  0x5f PF: > { %v619_v0 = vld [vmem:[#allocation14] sm:$0xff]  ;;  %v620_v1 = vld [vmem:[#allocation14 + $0x8] sm:$0xff]  ;;  %v4297_v2 = vmov 128.0   ;;  %v3698_v26 = vld [vmem:[%s4501_s22 + $0x20] sm:$0xff]  ;;  %vm923_vm7 = vcmask 130048   ;;  %s4298_s13 = smov 112  }
  0x60   : > { %623 = vadd.xlane.f32.xlu0 %v619_v0  ;;  %3900 = vrcp.f32 %v4297_v2  ;;  %v3701_v17 = vld [vmem:[%s4501_s22 + $0x38] sm:$0xff]  ;;  %v3700_v20 = vld [vmem:[%s4501_s22 + $0x30] sm:$0xff]  ;;  %v3699_v23 = vld [vmem:[%s4501_s22 + $0x28] sm:$0xff]  ;;  %vm990_vm8 = vcmask 1043456   ;;  %s4301_s12 = smov 64   ;;  %s4302_s30 = smov 48  }
  0x61   : > { %v3709_v18 = vld [vmem:[%s4501_s22 + $0x78] sm:$0xff]  ;;  %745 = vmatpush.bf16.msra.mxu0 %v3701_v17  ;;  %v3708_v21 = vld [vmem:[%s4501_s22 + $0x70] sm:$0xff]  ;;  %v3707_v24 = vld [vmem:[%s4501_s22 + $0x68] sm:$0xff]  ;;  %s4303_s1 = smov 32   ;;  %s4304_s5 = smov 16   ;;  %vm962_vm9 = vcmask 64512  }
  0x62   : > { %v3717_v19 = vld [vmem:[%s4501_s22 + $0xb8] sm:$0xff]  ;;  %824 = vmatpush.bf16.msra.mxu1 %v3709_v18  ;;  %v3716_v22 = vld [vmem:[%s4501_s22 + $0xb0] sm:$0xff]  ;;  %v3715_v25 = vld [vmem:[%s4501_s22 + $0xa8] sm:$0xff]  ;;  %vm1028_vm10 = vcmask 125952   ;;  %vm1171_vm11 = vcmask 257152   ;;  %vm1296_vm12 = vcmask 388352  }
  0x63   : > { %903 = vmatpush.bf16.msra.mxu2 %v3717_v19  ;;  %v3706_v27 = vld [vmem:[%s4501_s22 + $0x60] sm:$0xff]  ;;  %v3697_v29 = vld [vmem:[%s4501_s22 + $0x18] sm:$0xff]  ;;  %v3696_v32 = vld [vmem:[%s4501_s22 + $0x10] sm:$0xff]  ;;  %vm1421_vm13 = vcmask 519552   ;;  %vm1546_vm14 = vcmask 650752   ;;  %vm1671_vm15 = vcmask 781952  }
  0x64   : > { %v3714_v28 = vld [vmem:[%s4501_s22 + $0xa0] sm:$0xff]  ;;  %v3705_v30 = vld [vmem:[%s4501_s22 + $0x58] sm:$0xff]  ;;  %v3704_v33 = vld [vmem:[%s4501_s22 + $0x50] sm:$0xff]  ;;  %s5507_s0 = sld [smem:[#allocation36_spill]]  ;;  %p3830_p1 = scmp.eq.s32.totalorder %s4392_s19, 1 }
  0x65   : > { %746 = vmatpush.bf16.msra.mxu0 %v3700_v20  ;;  %v3713_v31 = vld [vmem:[%s4501_s22 + $0x98] sm:$0xff]  ;;  %v3712_v34 = vld [vmem:[%s4501_s22 + $0x90] sm:$0xff]  ;;  %v3695_v35 = vld [vmem:[%s4501_s22 + $0x8] sm:$0xff]  ;;  %s4306_s20 = smov 128  }
  0x66   : > { %v3901_v3 = vpop.eup %3900  ;;  %825 = vmatpush.bf16.msra.mxu1 %v3708_v21  ;;  %v3703_v36 = vld [vmem:[%s4501_s22 + $0x48] sm:$0xff]  ;;  %v3694_v39 = vld [vmem:[%s4501_s22] sm:$0xff]  ;;  %v3896_v60 = vld [vmem:[%s482_s25] ss:$0 sm:$0xff]  ;;  %s4299_s25 = smov 96  }
  0x67   : > { %v628_v4 = vmul.f32 128.0, %v3901_v3  ;;  %vm632_vm0 = vweird.f32 %v3901_v3  ;;  %904 = vmatpush.bf16.msra.mxu2 %v3716_v22  ;;  %v3711_v37 = vld [vmem:[%s4501_s22 + $0x88] sm:$0xff]  ;;  %v3702_v40 = vld [vmem:[%s4501_s22 + $0x40] sm:$0xff] }
  0x68   : > { %625 = vadd.xlane.f32.xlu0 %v620_v1  ;;  %v3710_v42 = vld [vmem:[%s4501_s22 + $0x80] sm:$0xff] }
  0x69   : > { %v629_v5 = vsub.f32 1.0, %v628_v4  ;;  %747 = vmatpush.bf16.msra.mxu0 %v3699_v23 }
  0x6a   : > { %826 = vmatpush.bf16.msra.mxu1 %v3707_v24  ;;  %s3007_s24 = sshll.u32 %s5507_s0, 4  ;;  %s3008_s24 = int_to_ptr.hbm [resolvable:$true] %s3007_s24 }
  0x6b   : > { %v630_v6 = vmul.f32 %v3901_v3, %v629_v5  ;;  %905 = vmatpush.bf16.msra.mxu2 %v3715_v25 }
  0x6d   : > { %v631_v7 = vadd.f32 %v3901_v3, %v630_v6  ;;  %748 = vmatpush.bf16.msra.mxu0 %v3698_v26 }
  0x6e   : > { %827 = vmatpush.bf16.msra.mxu1 %v3706_v27 }
  0x6f   : > { %v4553_v8 = vsel %vm632_vm0, %v3901_v3, %v631_v7  ;;  %906 = vmatpush.bf16.msra.mxu2 %v3714_v28  ;;  %vm1796_vm0 = vcmask 913152  }
  0x71   : > { %749 = vmatpush.bf16.msra.mxu0 %v3697_v29 }
  0x72   : > { %828 = vmatpush.bf16.msra.mxu1 %v3705_v30 }
  0x73   : > { %907 = vmatpush.bf16.msra.mxu2 %v3713_v31 }
  0x75   : > { %750 = vmatpush.bf16.msra.mxu0 %v3696_v32 }
  0x76   : > { %829 = vmatpush.bf16.msra.mxu1 %v3704_v33 }
  0x77   : > { %908 = vmatpush.bf16.msra.mxu2 %v3712_v34 }
  0x79   : > { %751 = vmatpush.bf16.msra.mxu0 %v3695_v35 }
  0x7a   : > { %830 = vmatpush.bf16.msra.mxu1 %v3703_v36 }
  0x7b   : > { %909 = vmatpush.bf16.msra.mxu2 %v3711_v37 }
  0x7d   : > { %752 = vmatpush.bf16.msra.mxu0 %v3694_v39 }
  0x7e   : > { %831 = vmatpush.bf16.msra.mxu1 %v3702_v40 }
  0x7f   : > { %910 = vmatpush.bf16.msra.mxu2 %v3710_v42 }
  0xd3   : > { %v624_v9 = vpop.xlane.xlu0 %623 }
  0xd4   : > { %v634_v10 = vmul.f32 %v4553_v8, %v624_v9 }
  0xd6   : > { %v4556_v11 = vsub.f32 %v619_v0, %v634_v10 }
  0xd8   : > { %v638_v12 = vmul.f32 %v4556_v11, %v4556_v11 }
  0xda   : > { %640 = vadd.xlane.f32.xlu1 %v638_v12 }
  0xdb   : > { %v626_v13 = vpop.xlane.xlu0 %625 }
  0xdc   : > { %v635_v14 = vmul.f32 %v4553_v8, %v626_v13 }
  0xde   : > { %v4561_v15 = vsub.f32 %v620_v1, %v635_v14  ;;  %v3897_v1 = vld [vmem:[%s588_s10] ss:$0 sm:$0xff]  ;;  %s4300_s10 = smov 80  }
  0xe0   : > { %v639_v16 = vmul.f32 %v4561_v15, %v4561_v15 }
  0xe2   : > { %642 = vadd.xlane.f32.xlu1 %v639_v16 }
 0x14d   : > { %v641_v38 = vpop.xlane.xlu1 %640 }
 0x14e   : > { %v644_v41 = vmul.f32 %v641_v38, %v4553_v8 }
 0x150   : > { %v646_v43 = vadd.f32 1e-05, %v644_v41 }
 0x152   : > { %3902 = vrsqrt.f32 %v646_v43  ;;  %vm654_vm2 = vweird.f32 %v646_v43 }
 0x155   : > { %v643_v44 = vpop.xlane.xlu1 %642 }
 0x156   : > { %v645_v45 = vmul.f32 %v643_v44, %v4553_v8 }
 0x158   : > { %v3903_v46 = vpop.eup %3902  ;;  %v647_v47 = vadd.f32 1e-05, %v645_v45 }
 0x159   : > { %v649_v48 = vmul.f32 %v3903_v46, %v646_v43  ;;  %vm655_vm1 = vweird.f32 %v3903_v46 }
 0x15a   : > { %3904 = vrsqrt.f32 %v647_v47  ;;  %vm656_vm3 = vmor %vm654_vm2, %vm655_vm1  ;;  %vm664_vm5 = vweird.f32 %v647_v47  ;;  %vm1921_vm1 = vcmask 1044352  }
 0x15b   : > { %v650_v49 = vmul.f32 %v3903_v46, %v649_v48 }
 0x15d   : > { %v651_v50 = vmul.f32 0.5, %v650_v49 }
 0x15f   : > { %v652_v51 = vsub.f32 1.5, %v651_v50 }
 0x160   : > { %v3905_v52 = vpop.eup %3904 }
 0x161   : > { %v653_v53 = vmul.f32 %v3903_v46, %v652_v51  ;;  %v659_v54 = vmul.f32 %v3905_v52, %v647_v47  ;;  %vm665_vm4 = vweird.f32 %v3905_v52 }
 0x162   : > { %vm666_vm6 = vmor %vm664_vm5, %vm665_vm4 }
 0x163   : > { %v660_v55 = vmul.f32 %v3905_v52, %v659_v54  ;;  %v657_v56 = vsel %vm656_vm3, %v3903_v46, %v653_v53 }
 0x164   : > { %v668_v59 = vmul.f32 %v657_v56, %v4556_v11 }
 0x165   : > { %v661_v57 = vmul.f32 0.5, %v660_v55 }
 0x166   : > { %v673_v0 = vmul.f32 %v3896_v60, %v668_v59 }
 0x167   : > { %v662_v58 = vsub.f32 1.5, %v661_v57 }
 0x168   : > { %v678_v3 = vadd.f32 %v3897_v1, %v673_v0 }
 0x169   : > { %v663_v61 = vmul.f32 %v3905_v52, %v662_v58 }
 0x16b   : > { %v667_v62 = vsel %vm666_vm6, %v3905_v52, %v663_v61 }
 0x16c   : > { %v669_v63 = vmul.f32 %v667_v62, %v4561_v15 }
 0x16e   : > { %v674_v2 = vmul.f32 %v3896_v60, %v669_v63 }
 0x170   : > { %v679_v4 = vadd.f32 %v3897_v1, %v674_v2 }
 0x172   : > { %v680_v5 = vpack.c.bf16 %v679_v4, %v678_v3 }
 0x174   : > { %753 = vmatmul.bf16.vlgmr.msra.gmra.mxu0 %v680_v5  ;;  %832 = vmatmul.bf16.vlgmr.msra.gmra.mxu1 %v680_v5 }
 0x175   : > { %911 = vmatmul.bf16.vlgmr.msra.gmra.mxu2 %v680_v5 }
 0x1f1   : > { %v754_v6 = vpop.f32.mrf.mxu0  ;;  %v833_v7 = vpop.f32.mrf.mxu1 }
 0x1f2   : > { %v919_v9 = vpack.c.bf16 %v833_v7, %v833_v7  ;;  %v917_v12 = vpack.c.bf16 %v754_v6, %v754_v6 }
 0x1f4   : > { %v1037_v10 = vunpack.c.l.b16 %v919_v9  ;;  %v928_v11 = vsel %vm923_vm7, %v919_v9, 0  ;;  %v1032_v18 = vunpack.c.l.b16 %v917_v12 }
 0x1f5   : > { %937 = vmatpush.bf16.xpose.msra.mxu3 %v928_v11 }
 0x1f6   : > { %v1038_v13 = vpack.c.b16 %v1037_v10, %v1037_v10  ;;  %v1033_v25 = vpack.c.b16 %v1032_v18, %v1032_v18 }
 0x1f8   : > { %v912_v14 = vpop.f32.mrf.mxu2  ;;  %1039 = vrot.lane.b32.xlu2 %v1038_v13, %s4298_s13 }
 0x1f9   : > { %v921_v15 = vpack.c.bf16 %v912_v14, %v912_v14  ;;  %v756_v16 = vpop.f32.mrf.mxu0  ;;  %v835_v17 = vpop.f32.mrf.mxu1 }
 0x1fa   : > { %v918_v19 = vpack.c.bf16 %v756_v16, %v756_v16  ;;  %v920_v20 = vpack.c.bf16 %v835_v17, %v835_v17 }
 0x1fb   : > { %v992_v24 = vsel %vm990_vm8, %v921_v15, 0  ;;  %v1114_v31 = vunpack.c.l.b16 %v921_v15 }
 0x1fc   : > { %v1061_v21 = vunpack.c.l.b16 %v918_v19  ;;  %v1066_v22 = vunpack.c.l.b16 %v920_v20  ;;  %3355 = vmatmul.msk.bf16.vlgmr.msra.gmra.mxu3 %vm923_vm7, %v917_v12  ;;  %v947_v23 = vsel %vm923_vm7, %v920_v20, 0 }
 0x1fd   : > { %956 = vmatpush.bf16.xpose.msrb.mxu3 %v947_v23  ;;  %v4631_v32 = vpack.c.b16 %v1114_v31, %v1114_v31 }
 0x1fe   : > { %v1062_v26 = vpack.c.b16 %v1061_v21, %v1061_v21  ;;  %v1067_v27 = vpack.c.b16 %v1066_v22, %v1066_v22 }
 0x200   : > { %v914_v28 = vpop.f32.mrf.mxu2  ;;  %1068 = vrot.lane.b32.xlu0 %v1067_v27, %s4298_s13  ;;  %1034 = vrot.lane.b32.xlu2 %v1033_v25, %s4298_s13 }
 0x201   : > { %v922_v29 = vpack.c.bf16 %v914_v28, %v914_v28  ;;  %1063 = vrot.lane.b32.xlu1 %v1062_v26, %s4298_s13 }
 0x203   : > { %v1011_v30 = vsel %vm990_vm8, %v922_v29, 0  ;;  %v1138_v33 = vunpack.c.l.b16 %v922_v29 }
 0x204   : > { %1020 = vmatpush.bf16.msrb.mxu0 %v1011_v30 }
 0x205   : > { %1001 = vmatpush.bf16.msra.mxu3 %v992_v24  ;;  %v4638_v34 = vpack.c.b16 %v1138_v33, %v1138_v33 }
 0x208   : > { %1176 = vrot.lane.b32.xlu2 %v1038_v13, %s4299_s25  ;;  %1197 = vrot.lane.b32.xlu0 %v1062_v26, %s4299_s25 }
 0x209   : > { %1324 = vrot.lane.b32.xlu1 %v1067_v27, %s4300_s10 }
 0x20c   : > { %3356 = vmatmul.msk.bf16.vlgmr.msrb.gmra.mxu3 %vm923_vm7, %v918_v19 }
 0x210   : > { %1174 = vrot.lane.b32.xlu2 %v1033_v25, %s4299_s25  ;;  %1299 = vrot.lane.b32.xlu0 %v1033_v25, %s4300_s10 }
 0x211   : > { %1426 = vrot.lane.b32.xlu1 %v1038_v13, %s4301_s12 }
 0x218   : > { %1199 = vrot.lane.b32.xlu2 %v1067_v27, %s4299_s25  ;;  %1449 = vrot.lane.b32.xlu0 %v1067_v27, %s4301_s12 }
 0x219   : > { %1447 = vrot.lane.b32.xlu1 %v1062_v26, %s4301_s12 }
 0x220   : > { %1301 = vrot.lane.b32.xlu2 %v1038_v13, %s4300_s10  ;;  %1551 = vrot.lane.b32.xlu0 %v1038_v13, %s4302_s30 }
 0x221   : > { %1549 = vrot.lane.b32.xlu1 %v1033_v25, %s4302_s30 }
 0x228   : > { %1424 = vrot.lane.b32.xlu2 %v1033_v25, %s4301_s12  ;;  %1572 = vrot.lane.b32.xlu0 %v1062_v26, %s4302_s30 }
 0x229   : > { %1699 = vrot.lane.b32.xlu1 %v1067_v27, %s4303_s1 }
 0x230   : > { %1322 = vrot.lane.b32.xlu2 %v1062_v26, %s4300_s10  ;;  %1674 = vrot.lane.b32.xlu0 %v1033_v25, %s4303_s1 }
 0x231   : > { %1801 = vrot.lane.b32.xlu1 %v1038_v13, %s4304_s5 }
 0x238   : > { %1676 = vrot.lane.b32.xlu2 %v1038_v13, %s4303_s1  ;;  %1824 = vrot.lane.b32.xlu0 %v1067_v27, %s4304_s5 }
 0x239   : > { %1822 = vrot.lane.b32.xlu1 %v1062_v26, %s4304_s5 }
 0x240   : > { %1574 = vrot.lane.b32.xlu2 %v1067_v27, %s4302_s30  ;;  %1244 = vrot.lane.b32.xlu0 %v4631_v32, %s4299_s25 }
 0x241   : > { %1116 = vrot.lane.b32.xlu1 %v4631_v32, %s4298_s13 }
 0x248   : > { %1799 = vrot.lane.b32.xlu2 %v1033_v25, %s4304_s5  ;;  %1265 = vrot.lane.b32.xlu0 %v4638_v34, %s4299_s25 }
 0x249   : > { %1369 = vrot.lane.b32.xlu1 %v4631_v32, %s4300_s10 }
 0x250   : > { %1697 = vrot.lane.b32.xlu2 %v1062_v26, %s4303_s1 }
 0x252   : > { %v1040_v35 = vpop.permute.xlu2 %1039 }
 0x253   : > { %v1045_v36 = vsel %vm923_vm7, %v1040_v35, 0 }
 0x254   : > { %1054 = vmatpush.bf16.xpose.msrb.mxu2 %v1045_v36 }
 0x258   : > { %1494 = vrot.lane.b32.xlu2 %v4631_v32, %s4301_s12 }
 0x25a   : > { %v1035_v37 = vpop.permute.xlu2 %1034 }
 0x25b   : > { %3359 = vmatmul.msk.bf16.vlgmr.msrb.gmra.mxu2 %vm923_vm7, %v1035_v37 }
 0x260   : > { %1140 = vrot.lane.b32.xlu2 %v4638_v34, %s4298_s13 }
 0x262   : > { %v1177_v38 = vpop.permute.xlu2 %1176 }
 0x263   : > { %v1182_v39 = vsel %vm923_vm7, %v1177_v38, 0 }
 0x264   : > { %1191 = vmatpush.bf16.xpose.msrb.mxu1 %v1182_v39 }
 0x268   : > { %1390 = vrot.lane.b32.xlu2 %v4638_v34, %s4300_s10 }
 0x26a   : > { %v1175_v40 = vpop.permute.xlu2 %1174 }
 0x26b   : > { %3363 = vmatmul.msk.bf16.vlgmr.msrb.gmra.mxu1 %vm923_vm7, %v1175_v40 }
 0x272   : > { %v1069_v41 = vpop.permute.xlu0 %1068  ;;  %v1200_v42 = vpop.permute.xlu2 %1199 }
 0x273   : > { %v1074_v43 = vsel %vm923_vm7, %v1069_v41, 0  ;;  %v1205_v44 = vsel %vm923_vm7, %v1200_v42, 0  ;;  %v1064_v45 = vpop.permute.xlu1 %1063 }
 0x274   : > { %1083 = vmatpush.bf16.xpose.msra.mxu2 %v1074_v43 }
 0x27a   : > { %v1302_v46 = vpop.permute.xlu2 %1301  ;;  %v1198_v47 = vpop.permute.xlu0 %1197 }
 0x27b   : > { %v1307_v48 = vsel %vm923_vm7, %v1302_v46, 0  ;;  %v1325_v49 = vpop.permute.xlu1 %1324  ;;  %3360 = vmatmul.msk.bf16.vlgmr.msra.gmra.mxu2 %vm923_vm7, %v1064_v45 }
 0x27c   : > { %1214 = vmatpush.bf16.xpose.msrb.mxu2 %v1205_v44  ;;  %v1330_v50 = vsel %vm923_vm7, %v1325_v49, 0  ;;  %1316 = vmatpush.bf16.xpose.msra.mxu1 %v1307_v48 }
 0x27f   : > { %v4661_v51 = vpop.f32.mrf.mxu3 }
 0x280   : > { %v963_v52 = vsel %vm962_vm9, %v4661_v51, -inf }
 0x281   : > { %964 = vmax.xlane.f32.xlu0 %v963_v52 }
 0x282   : > { %v1425_v53 = vpop.permute.xlu2 %1424  ;;  %v1300_v54 = vpop.permute.xlu0 %1299 }
 0x283   : > { %v1427_v55 = vpop.permute.xlu1 %1426  ;;  %3367 = vmatmul.msk.bf16.vlgmr.msra.gmra.mxu1 %vm923_vm7, %v1300_v54 }
 0x284   : > { %1339 = vmatpush.bf16.xpose.msra.mxu2 %v1330_v50  ;;  %v1432_v56 = vsel %vm923_vm7, %v1427_v55, 0 }
 0x285   : > { %1441 = vmatpush.bf16.xpose.msrb.mxu1 %v1432_v56 }
 0x287   : > { %v941_v57 = vpop.f32.mrf.mxu3 }
 0x28a   : > { %v1323_v58 = vpop.permute.xlu2 %1322  ;;  %v1450_v59 = vpop.permute.xlu0 %1449 }
 0x28b   : > { %v1455_v60 = vsel %vm923_vm7, %v1450_v59, 0  ;;  %v1448_v61 = vpop.permute.xlu1 %1447  ;;  %3364 = vmatmul.msk.bf16.vlgmr.msrb.gmra.mxu2 %vm923_vm7, %v1198_v47 }
 0x28c   : > { %1464 = vmatpush.bf16.xpose.msrb.mxu2 %v1455_v60 }
 0x28f   : > { %v4669_v62 = vpop.f32.mrf.mxu3 }
 0x290   : > { %v966_v63 = vsel %vm962_vm9, %v4669_v62, -inf }
 0x291   : > { %967 = vmax.xlane.f32.xlu2 %v966_v63 }
 0x292   : > { %v1677_v0 = vpop.permute.xlu2 %1676  ;;  %v1552_v1 = vpop.permute.xlu0 %1551 }
 0x293   : > { %v1682_v2 = vsel %vm923_vm7, %v1677_v0, 0  ;;  %v1557_v3 = vsel %vm923_vm7, %v1552_v1, 0  ;;  %v1550_v4 = vpop.permute.xlu1 %1549  ;;  %3371 = vmatmul.msk.bf16.vlgmr.msrb.gmra.mxu1 %vm923_vm7, %v1425_v53 }
 0x294   : > { %1566 = vmatpush.bf16.xpose.msra.mxu1 %v1557_v3 }
 0x297   : > { %v960_v5 = vpop.f32.mrf.mxu3 }
 0x29a   : > { %v1575_v6 = vpop.permute.xlu2 %1574  ;;  %v1573_v12 = vpop.permute.xlu0 %1572 }
 0x29b   : > { %v1580_v7 = vsel %vm923_vm7, %v1575_v6, 0  ;;  %v1700_v9 = vpop.permute.xlu1 %1699  ;;  %3368 = vmatmul.msk.bf16.vlgmr.msra.gmra.mxu2 %vm923_vm7, %v1323_v58 }
 0x29c   : > { %1691 = vmatpush.bf16.xpose.msrb.mxu1 %v1682_v2  ;;  %1589 = vmatpush.bf16.xpose.msra.mxu2 %v1580_v7  ;;  %v1705_v15 = vsel %vm923_vm7, %v1700_v9, 0 }
 0x2a2   : > { %v1800_v10 = vpop.permute.xlu2 %1799  ;;  %v1675_v17 = vpop.permute.xlu0 %1674 }
 0x2a3   : > { %v1802_v11 = vpop.permute.xlu1 %1801  ;;  %3375 = vmatmul.msk.bf16.vlgmr.msra.gmra.mxu1 %vm923_vm7, %v1550_v4 }
 0x2a4   : > { %v1807_v13 = vsel %vm923_vm7, %v1802_v11, 0 }
 0x2a5   : > { %1816 = vmatpush.bf16.xpose.msra.mxu1 %v1807_v13 }
 0x2aa   : > { %v1698_v14 = vpop.permute.xlu2 %1697  ;;  %v1825_v21 = vpop.permute.xlu0 %1824 }
 0x2ab   : > { %v1823_v16 = vpop.permute.xlu1 %1822  ;;  %3372 = vmatmul.msk.bf16.vlgmr.msrb.gmra.mxu2 %vm923_vm7, %v1448_v61  ;;  %v1830_v23 = vsel %vm923_vm7, %v1825_v21, 0 }
 0x2ac   : > { %1714 = vmatpush.bf16.xpose.msrb.mxu2 %v1705_v15 }
 0x2b2   : > { %v4682_v18 = vpop.permute.xlu2 %1494  ;;  %v4696_v27 = vpop.permute.xlu0 %1244 }
 0x2b3   : > { %v1117_v19 = vpop.permute.xlu1 %1116  ;;  %3379 = vmatmul.msk.bf16.vlgmr.msrb.gmra.mxu1 %vm923_vm7, %v1675_v17 }
 0x2b4   : > { %v1122_v20 = vsel %vm990_vm8, %v1117_v19, 0 }
 0x2b5   : > { %1131 = vmatpush.bf16.msrb.mxu3 %v1122_v20 }
 0x2ba   : > { %v1141_v22 = vpop.permute.xlu2 %1140  ;;  %v4702_v31 = vpop.permute.xlu0 %1265 }
 0x2bb   : > { %v1146_v24 = vsel %vm990_vm8, %v1141_v22, 0  ;;  %3376 = vmatmul.msk.bf16.vlgmr.msra.gmra.mxu2 %vm923_vm7, %v1573_v12 }
 0x2bc   : > { %1839 = vmatpush.bf16.xpose.msra.mxu2 %v1830_v23  ;;  %1155 = vmatpush.bf16.msra.mxu0 %v1146_v24 }
 0x2c2   : > { %v4733_v57 = vpop.permute.xlu2 %1390 }
 0x2c3   : > { %3383 = vmatmul.msk.bf16.vlgmr.msra.gmra.mxu1 %vm923_vm7, %v1800_v10 }
 0x2cb   : > { %3380 = vmatmul.msk.bf16.vlgmr.msrb.gmra.mxu2 %vm923_vm7, %v1698_v14 }
 0x2db   : > { %3384 = vmatmul.msk.bf16.vlgmr.msra.gmra.mxu2 %vm923_vm7, %v1823_v16 }
 0x2de   : > { %v4692_v25 = vpop.f32.mrf.mxu2 }
 0x2df   : > { %v1089_v26 = vsel %vm962_vm9, %v4692_v25, -inf }
 0x2e0   : > { %1090 = vmax.xlane.f32.xlu1 %v1089_v26 }
 0x2e6   : > { %v1058_v28 = vpop.f32.mrf.mxu2 }
 0x2e8   : > { %v4698_v29 = vpop.f32.mrf.mxu1 }
 0x2e9   : > { %v1220_v30 = vsel %vm962_vm9, %v4698_v29, -inf }
 0x2ea   : > { %1221 = vmax.xlane.f32.xlu2 %v1220_v30 }
 0x2f0   : > { %v1195_v33 = vpop.f32.mrf.mxu1 }
 0x2f4   : > { %v965_v35 = vpop.xlane.xlu0 %964 }
 0x2f5   : > { %v969_v36 = vsub.f32 %v4661_v51, %v965_v35 }
 0x2f7   : > { %v971_v37 = vmul.f32 1.442695, %v969_v36 }
 0x2f9   : > { %3906 = vpow2.f32 %v971_v37 }
 0x2fe   : > { %v4705_v38 = vpop.f32.mrf.mxu2 }
 0x2ff   : > { %v4707_v39 = vpop.eup %3906  ;;  %v1092_v45 = vsel %vm962_vm9, %v4705_v38, -inf }
 0x300   : > { %v4709_v40 = vpop.f32.mrf.mxu1  ;;  %v975_v41 = vsel %vm962_vm9, %v4707_v39, 0.0 }
 0x301   : > { %976 = vadd.xlane.f32.xlu2 %v975_v41  ;;  %v1345_v42 = vsel %vm962_vm9, %v4709_v40, -inf }
 0x302   : > { %1346 = vmax.xlane.f32.xlu0 %v1345_v42 }
 0x304   : > { %v968_v61 = vpop.xlane.xlu2 %967 }
 0x305   : > { %v970_v63 = vsub.f32 %v4669_v62, %v968_v61  ;;  %v4752_v62 = vpop.permute.xlu1 %1369 }
 0x306   : > { %v1087_v43 = vpop.f32.mrf.mxu2 }
 0x307   : > { %v973_v2 = vmul.f32 1.442695, %v970_v63 }
 0x308   : > { %v1320_v44 = vpop.f32.mrf.mxu1 }
 0x309   : > { %3908 = vpow2.f32 %v973_v2 }
 0x30a   : > { %1093 = vmax.xlane.f32.xlu0 %v1092_v45 }
 0x30e   : > { %v4717_v46 = vpop.f32.mrf.mxu2 }
 0x30f   : > { %v1223_v47 = vsel %vm962_vm9, %v4717_v46, -inf  ;;  %v4748_v6 = vpop.eup %3908 }
 0x310   : > { %1224 = vmax.xlane.f32.xlu1 %v1223_v47  ;;  %v4721_v48 = vpop.f32.mrf.mxu1  ;;  %v978_v9 = vsel %vm962_vm9, %v4748_v6, 0.0 }
 0x311   : > { %v1470_v49 = vsel %vm962_vm9, %v4721_v48, -inf }
 0x312   : > { %1471 = vmax.xlane.f32.xlu2 %v1470_v49 }
 0x316   : > { %v1218_v50 = vpop.f32.mrf.mxu2 }
 0x317   : > { %v1250_v50 = vsel %vm990_vm8, %v4696_v27, 0 }
 0x318   : > { %v1445_v51 = vpop.f32.mrf.mxu1 }
 0x31e   : > { %1515 = vrot.lane.b32.xlu0 %v4638_v34, %s4301_s12  ;;  %v4727_v52 = vpop.f32.mrf.mxu2 }
 0x31f   : > { %v1348_v53 = vsel %vm962_vm9, %v4727_v52, -inf }
 0x320   : > { %1349 = vmax.xlane.f32.xlu1 %v1348_v53  ;;  %v4731_v54 = vpop.f32.mrf.mxu1 }
 0x321   : > { %v1595_v13 = vsel %vm962_vm9, %v4731_v54, -inf }
 0x326   : > { %v1343_v55 = vpop.f32.mrf.mxu2 }
 0x328   : > { %v1570_v56 = vpop.f32.mrf.mxu1 }
 0x32e   : > { %v4735_v58 = vpop.f32.mrf.mxu2 }
 0x32f   : > { %v1473_v17 = vsel %vm962_vm9, %v4735_v58, -inf }
 0x330   : > { %v4737_v59 = vpop.f32.mrf.mxu1 }
 0x331   : > { %v1720_v60 = vsel %vm962_vm9, %v4737_v59, -inf }
 0x332   : > { %1721 = vmax.xlane.f32.xlu2 %v1720_v60 }
 0x336   : > { %v1468_v0 = vpop.f32.mrf.mxu2 }
 0x338   : > { %v1695_v1 = vpop.f32.mrf.mxu1 }
 0x33e   : > { %v4742_v3 = vpop.f32.mrf.mxu2 }
 0x33f   : > { %v1598_v24 = vsel %vm962_vm9, %v4742_v3, -inf }
 0x340   : > { %v4744_v4 = vpop.f32.mrf.mxu1 }
 0x341   : > { %v1845_v5 = vsel %vm962_vm9, %v4744_v4, -inf }
 0x342   : > { %1846 = vmax.xlane.f32.xlu2 %v1845_v5 }
 0x346   : > { %v1593_v7 = vpop.f32.mrf.mxu2 }
 0x348   : > { %v1820_v10 = vpop.f32.mrf.mxu1  ;;  %979 = vadd.xlane.f32.xlu0 %v978_v9 }
 0x34e   : > { %v4754_v11 = vpop.f32.mrf.mxu2 }
 0x34f   : > { %v1723_v12 = vsel %vm962_vm9, %v4754_v11, -inf }
 0x350   : > { %1724 = vmax.xlane.f32.xlu1 %v1723_v12  ;;  %1596 = vmax.xlane.f32.xlu0 %v1595_v13 }
 0x353   : > { %v1091_v14 = vpop.xlane.xlu1 %1090 }
 0x354   : > { %v1095_v15 = vsub.f32 %v4692_v25, %v1091_v14 }
 0x356   : > { %v1718_v16 = vpop.f32.mrf.mxu2  ;;  %v1097_v19 = vmul.f32 1.442695, %v1095_v15 }
 0x358   : > { %1474 = vmax.xlane.f32.xlu0 %v1473_v17  ;;  %3910 = vpow2.f32 %v1097_v19  ;;  %v1271_v19 = vsel %vm990_vm8, %v4702_v31, 0 }
 0x35d   : > { %v1222_v20 = vpop.xlane.xlu2 %1221 }
 0x35e   : > { %v1226_v21 = vsub.f32 %v4698_v29, %v1222_v20  ;;  %v4764_v22 = vpop.f32.mrf.mxu2  ;;  %v4770_v25 = vpop.eup %3910 }
 0x35f   : > { %v1848_v23 = vsel %vm962_vm9, %v4764_v22, -inf  ;;  %v1101_v30 = vsel %vm962_vm9, %v4770_v25, 0.0 }
 0x360   : > { %v1228_v26 = vmul.f32 1.442695, %v1226_v21  ;;  %1849 = vmax.xlane.f32.xlu1 %v1848_v23  ;;  %1599 = vmax.xlane.f32.xlu0 %v1598_v24 }
 0x362   : > { %3912 = vpow2.f32 %v1228_v26 }
 0x366   : > { %v1843_v28 = vpop.f32.mrf.mxu2 }
 0x368   : > { %v4774_v33 = vpop.eup %3912  ;;  %1102 = vadd.xlane.f32.xlu1 %v1101_v30 }
 0x369   : > { %v1232_v29 = vsel %vm962_vm9, %v4774_v33, 0.0 }
 0x36a   : > { %1233 = vadd.xlane.f32.xlu0 %v1232_v29 }
 0x374   : > { %v977_v35 = vpop.xlane.xlu2 %976 }
 0x375   : > { %3914 = vrcp.f32 %v977_v35  ;;  %v1347_v36 = vpop.xlane.xlu0 %1346 }
 0x376   : > { %v1351_v37 = vsub.f32 %v4709_v40, %v1347_v36 }
 0x378   : > { %v1353_v41 = vmul.f32 1.442695, %v1351_v37 }
 0x37a   : > { %3916 = vpow2.f32 %v1353_v41 }
 0x37b   : > { %v3915_v42 = vpop.eup %3914 }
 0x37c   : > { %v983_v43 = vmul.f32 %v3915_v42, %v4707_v39 }
 0x37d   : > { %v1094_v44 = vpop.xlane.xlu0 %1093 }
 0x37e   : > { %v985_v45 = vpack.c.bf16 %v983_v43, %v983_v43  ;;  %v1096_v47 = vsub.f32 %v4705_v38, %v1094_v44 }
 0x380   : > { %v4781_v49 = vpop.eup %3916  ;;  %v1099_v51 = vmul.f32 1.442695, %v1096_v47  ;;  %3357 = vmatmul.msk.bf16.vlgmr.msra.gmra.mxu3 %vm962_vm9, %v985_v45 }
 0x381   : > { %1259 = vmatpush.bf16.msra.mxu3 %v1250_v50  ;;  %v1357_v40 = vsel %vm962_vm9, %v4781_v49, 0.0 }
 0x382   : > { %3918 = vpow2.f32 %v1099_v51  ;;  %1358 = vadd.xlane.f32.xlu0 %v1357_v40 }
 0x383   : > { %v1225_v53 = vpop.xlane.xlu1 %1224 }
 0x384   : > { %v1227_v39 = vsub.f32 %v4717_v46, %v1225_v53  ;;  %v1375_v53 = vsel %vm990_vm8, %v4752_v62, 0 }
 0x385   : > { %v1472_v55 = vpop.xlane.xlu2 %1471 }
 0x386   : > { %v1230_v56 = vmul.f32 1.442695, %v1227_v39  ;;  %v1476_v38 = vsub.f32 %v4721_v48, %v1472_v55 }
 0x388   : > { %v4790_v60 = vpop.eup %3918  ;;  %3920 = vpow2.f32 %v1230_v56  ;;  %v1478_v27 = vmul.f32 1.442695, %v1476_v38 }
 0x389   : > { %v1104_v61 = vsel %vm962_vm9, %v4790_v60, 0.0 }
 0x38a   : > { %3922 = vpow2.f32 %v1478_v27  ;;  %1105 = vadd.xlane.f32.xlu2 %v1104_v61  ;;  %v1500_v27 = vsel %vm990_vm8, %v4682_v18, 0 }
 0x38e   : > { %v4794_v63 = vpop.eup %3920 }
 0x38f   : > { %v1235_v0 = vsel %vm962_vm9, %v4794_v63, 0.0 }
 0x390   : > { %v4798_v1 = vpop.eup %3922  ;;  %1236 = vadd.xlane.f32.xlu1 %v1235_v0  ;;  %v4806_v48 = vpop.permute.xlu0 %1515 }
 0x391   : > { %v1482_v46 = vsel %vm962_vm9, %v4798_v1, 0.0 }
 0x392   : > { %1483 = vadd.xlane.f32.xlu0 %v1482_v46 }
 0x393   : > { %v1350_v10 = vpop.xlane.xlu1 %1349 }
 0x394   : > { %v1352_v20 = vsub.f32 %v4727_v52, %v1350_v10 }
 0x3a2   : > { %1640 = vrot.lane.b32.xlu2 %v4638_v34, %s4302_s30 }
 0x3a5   : > { %v1722_v5 = vpop.xlane.xlu2 %1721 }
 0x3a6   : > { %v1726_v7 = vsub.f32 %v4737_v59, %v1722_v5  ;;  %v1355_v59 = vmul.f32 1.442695, %v1352_v20 }
 0x3a8   : > { %v1728_v14 = vmul.f32 1.442695, %v1726_v7 }
 0x3a9   : > { %1619 = vrot.lane.b32.xlu1 %v4631_v32, %s4302_s30 }
 0x3b5   : > { %v1847_v56 = vpop.xlane.xlu2 %1846 }
 0x3bb   : > { %v980_v2 = vpop.xlane.xlu0 %979 }
 0x3bc   : > { %3924 = vrcp.f32 %v980_v2 }
 0x3bd   : > { %3926 = vpow2.f32 %v1728_v14 }
 0x3c2   : > { %v3925_v9 = vpop.eup %3924 }
 0x3c3   : > { %v984_v12 = vmul.f32 %v3925_v9, %v4748_v6  ;;  %v1597_v13 = vpop.xlane.xlu0 %1596  ;;  %v1725_v21 = vpop.xlane.xlu1 %1724 }
 0x3c4   : > { %v1601_v15 = vsub.f32 %v4731_v54, %v1597_v13  ;;  %v4816_v24 = vpop.eup %3926  ;;  %v1727_v37 = vsub.f32 %v4754_v11, %v1725_v21 }
 0x3c5   : > { %v986_v16 = vpack.c.bf16 %v984_v12, %v984_v12  ;;  %v1732_v52 = vsel %vm962_vm9, %v4816_v24, 0.0 }
 0x3c6   : > { %v1603_v17 = vmul.f32 1.442695, %v1601_v15  ;;  %v1730_v43 = vmul.f32 1.442695, %v1727_v37 }
 0x3c7   : > { %3358 = vmatmul.msk.bf16.vlgmr.msrb.gmra.mxu0 %vm962_vm9, %v986_v16 }
 0x3c8   : > { %1280 = vmatpush.bf16.msrb.mxu0 %v1271_v19  ;;  %3928 = vpow2.f32 %v1603_v17 }
 0x3c9   : > { %3930 = vpow2.f32 %v1355_v59  ;;  %v1521_v59 = vsel %vm990_vm8, %v4806_v48, 0 }
 0x3cb   : > { %v1475_v23 = vpop.xlane.xlu0 %1474 }
 0x3cc   : > { %v1477_v6 = vsub.f32 %v4735_v58, %v1475_v23 }
 0x3ce   : > { %v1480_v54 = vmul.f32 1.442695, %v1477_v6  ;;  %v4818_v26 = vpop.eup %3928 }
 0x3cf   : > { %v1607_v31 = vsel %vm962_vm9, %v4818_v26, 0.0  ;;  %v4827_v29 = vpop.eup %3930 }
 0x3d0   : > { %3932 = vpow2.f32 %v1480_v54  ;;  %1608 = vadd.xlane.f32.xlu2 %v1607_v31  ;;  %v1360_v42 = vsel %vm962_vm9, %v4827_v29, 0.0 }
 0x3d3   : > { %v4824_v28 = vpop.xlane.xlu1 %1849  ;;  %v1600_v30 = vpop.xlane.xlu0 %1599  ;;  %1733 = vadd.xlane.f32.xlu1 %v1732_v52 }
 0x3d4   : > { %v1602_v58 = vsub.f32 %v4742_v3, %v1600_v30 }
 0x3d6   : > { %v4829_v35 = vpop.eup %3932  ;;  %v1605_v36 = vmul.f32 1.442695, %v1602_v58 }
 0x3d7   : > { %v1485_v41 = vsel %vm962_vm9, %v4829_v35, 0.0 }
 0x3d8   : > { %1486 = vadd.xlane.f32.xlu0 %v1485_v41  ;;  %3934 = vpow2.f32 %v1605_v36  ;;  %1361 = vadd.xlane.f32.xlu2 %v1360_v42 }
 0x3db   : > { %v1103_v44 = vpop.xlane.xlu1 %1102 }
 0x3dc   : > { %3936 = vrcp.f32 %v1103_v44 }
 0x3dd   : > { %3938 = vpow2.f32 %v1730_v43  ;;  %v1234_v40 = vpop.xlane.xlu0 %1233 }
 0x3de   : > { %v4836_v3 = vpop.eup %3934  ;;  %3940 = vrcp.f32 %v1234_v40 }
 0x3df   : > { %v1610_v45 = vsel %vm962_vm9, %v4836_v3, 0.0 }
 0x3e0   : > { %1611 = vadd.xlane.f32.xlu0 %v1610_v45 }
 0x3e2   : > { %v3937_v11 = vpop.eup %3936 }
 0x3e3   : > { %v1109_v47 = vmul.f32 %v3937_v11, %v4770_v25  ;;  %v4841_v50 = vpop.eup %3938 }
 0x3e4   : > { %v1735_v39 = vsel %vm962_vm9, %v4841_v50, 0.0  ;;  %v3941_v55 = vpop.eup %3940 }
 0x3e5   : > { %v1111_v51 = vpack.c.bf16 %v1109_v47, %v1109_v47  ;;  %v1240_v25 = vmul.f32 %v3941_v55, %v4774_v33 }
 0x3e7   : > { %3361 = vmatmul.msk.bf16.vlgmr.msrb.gmra.mxu3 %vm962_vm9, %v1111_v51  ;;  %v1242_v38 = vpack.c.bf16 %v1240_v25, %v1240_v25 }
 0x3e8   : > { %1384 = vmatpush.bf16.msrb.mxu3 %v1375_v53  ;;  %1736 = vadd.xlane.f32.xlu0 %v1735_v39 }
 0x3ec   : > { %1869 = vrot.lane.b32.xlu1 %v4631_v32, %s4304_s5 }
 0x3f0   : > { %1765 = vrot.lane.b32.xlu2 %v4638_v34, %s4303_s1 }
 0x3f5   : > { %v1359_v62 = vpop.xlane.xlu0 %1358 }
 0x3f6   : > { %3942 = vrcp.f32 %v1359_v62 }
 0x3f7   : > { %3365 = vmatmul.msk.bf16.vlgmr.msra.gmra.mxu3 %vm962_vm9, %v1242_v38 }
 0x3f8   : > { %1509 = vmatpush.bf16.msra.mxu3 %v1500_v27 }
 0x3fc   : > { %1744 = vrot.lane.b32.xlu0 %v4631_v32, %s4303_s1  ;;  %v3943_v0 = vpop.eup %3942  ;;  %v1851_v32 = vsub.f32 %v4744_v4, %v1847_v56  ;;  %v1852_v4 = vsub.f32 %v4764_v22, %v4824_v28 }
 0x3fd   : > { %v1106_v61 = vpop.xlane.xlu2 %1105  ;;  %v1365_v33 = vmul.f32 %v3943_v0, %v4781_v49  ;;  %v1396_v49 = vsel %vm990_vm8, %v4733_v57, 0 }
 0x3fe   : > { %3944 = vrcp.f32 %v1106_v61  ;;  %v1853_v14 = vmul.f32 1.442695, %v1851_v32  ;;  %v1855_v21 = vmul.f32 1.442695, %v1852_v4 }
 0x3ff   : > { %v1367_v7 = vpack.c.bf16 %v1365_v33, %v1365_v33 }
 0x403   : > { %v1003_v46 = vpop.f32.mrf.mxu3  ;;  %v1237_v12 = vpop.xlane.xlu1 %1236 }
 0x404   : > { %v3945_v2 = vpop.eup %3944  ;;  %v1026_v5 = vpack.c.bf16 %v1003_v46, %v1003_v46 }
 0x405   : > { %v1110_v9 = vmul.f32 %v3945_v2, %v4790_v60  ;;  %v1484_v18 = vpop.xlane.xlu0 %1483  ;;  %v1641_v48 = vpop.permute.xlu2 %1640 }
 0x406   : > { %1029 = vst.msk [vmem:[#allocation2] sm:$0xf] %vm1028_vm10, %v1026_v5  ;;  %3946 = vrcp.f32 %v1484_v18  ;;  %v1646_v44 = vsel %vm990_vm8, %v1641_v48, 0 }
 0x407   : > { %v1112_v10 = vpack.c.bf16 %v1110_v9, %v1110_v9  ;;  %3369 = vmatmul.msk.bf16.vlgmr.msrb.gmra.mxu3 %vm962_vm9, %v1367_v7  ;;  %3948 = vrcp.f32 %v1237_v12 }
 0x408   : > { %3950 = vpow2.f32 %v1853_v14 }
 0x409   : > { %3362 = vmatmul.msk.bf16.vlgmr.msra.gmra.mxu0 %vm962_vm9, %v1112_v10  ;;  %3952 = vpow2.f32 %v1855_v21 }
 0x40a   : > { %1405 = vmatpush.bf16.msra.mxu0 %v1396_v49 }
 0x40b   : > { %v1005_v13 = vpop.f32.mrf.mxu3 }
 0x40c   : > { %v3947_v60 = vpop.eup %3946 }
 0x40d   : > { %v3949_v15 = vpop.eup %3948  ;;  %v1490_v16 = vmul.f32 %v3947_v60, %v4798_v1 }
 0x40e   : > { %v1241_v17 = vmul.f32 %v3949_v15, %v4794_v63  ;;  %v4870_v20 = vpop.eup %3950 }
 0x40f   : > { %v1492_v19 = vpack.c.bf16 %v1490_v16, %v1490_v16  ;;  %v1857_v23 = vsel %vm962_vm9, %v4870_v20, 0.0  ;;  %v4879_v1 = vpop.eup %3952 }
 0x410   : > { %v1243_v57 = vpack.c.bf16 %v1241_v17, %v1241_v17  ;;  %v1860_v6 = vsel %vm962_vm9, %v4879_v1, 0.0 }
 0x417   : > { %3373 = vmatmul.msk.bf16.vlgmr.msra.gmra.mxu3 %vm962_vm9, %v1492_v19 }
 0x419   : > { %3366 = vmatmul.msk.bf16.vlgmr.msrb.gmra.mxu0 %vm962_vm9, %v1243_v57  ;;  %1858 = vadd.xlane.f32.xlu2 %v1857_v23 }
 0x41a   : > { %1530 = vmatpush.bf16.msrb.mxu0 %v1521_v59 }
 0x41b   : > { %v1620_v63 = vpop.permute.xlu1 %1619 }
 0x41c   : > { %v1625_v22 = vsel %vm990_vm8, %v1620_v63, 0 }
 0x41d   : > { %1634 = vmatpush.bf16.msrb.mxu3 %v1625_v22 }
 0x426   : > { %1861 = vadd.xlane.f32.xlu0 %v1860_v6 }
 0x431   : > { %1890 = vrot.lane.b32.xlu2 %v4638_v34, %s4304_s5 }
 0x443   : > { %v1609_v54 = vpop.xlane.xlu2 %1608 }
 0x444   : > { %v1022_v31 = vpop.f32.mrf.mxu0  ;;  %3954 = vrcp.f32 %v1609_v54 }
 0x445   : > { %v1027_v52 = vpack.c.bf16 %v1022_v31, %v1022_v31 }
 0x447   : > { %1030 = vst.msk [vmem:[#allocation2 + $0x4] sm:$0xf] %vm1028_vm10, %v1027_v52 }
 0x44a   : > { %v3955_v28 = vpop.eup %3954 }
 0x44b   : > { %v1615_v30 = vmul.f32 %v3955_v28, %v4818_v26  ;;  %v1362_v58 = vpop.xlane.xlu2 %1361  ;;  %v1487_v42 = vpop.xlane.xlu0 %1486 }
 0x44c   : > { %v1024_v36 = vpop.f32.mrf.mxu0  ;;  %3956 = vrcp.f32 %v1362_v58  ;;  %v1734_v26 = vpop.xlane.xlu1 %1733 }
 0x44d   : > { %v1617_v37 = vpack.c.bf16 %v1615_v30, %v1615_v30  ;;  %3958 = vrcp.f32 %v1487_v42 }
 0x44e   : > { %3960 = vrcp.f32 %v1734_v26 }
 0x44f   : > { %3377 = vmatmul.msk.bf16.vlgmr.msrb.gmra.mxu3 %vm962_vm9, %v1617_v37 }
 0x452   : > { %v3957_v41 = vpop.eup %3956 }
 0x453   : > { %v1366_v34 = vmul.f32 %v3957_v41, %v4827_v29  ;;  %v1612_v45 = vpop.xlane.xlu0 %1611  ;;  %v3959_v11 = vpop.eup %3958 }
 0x454   : > { %v1491_v47 = vmul.f32 %v3959_v11, %v4829_v35  ;;  %v1766_v51 = vpop.permute.xlu2 %1765  ;;  %3962 = vrcp.f32 %v1612_v45  ;;  %v3961_v55 = vpop.eup %3960 }
 0x455   : > { %v1368_v43 = vpack.c.bf16 %v1366_v34, %v1366_v34  ;;  %v1771_v39 = vsel %vm990_vm8, %v1766_v51, 0  ;;  %v1740_v56 = vmul.f32 %v3961_v55, %v4816_v24 }
 0x456   : > { %v1493_v40 = vpack.c.bf16 %v1491_v47, %v1491_v47 }
 0x457   : > { %3370 = vmatmul.msk.bf16.vlgmr.msra.gmra.mxu0 %vm962_vm9, %v1368_v43  ;;  %v1742_v0 = vpack.c.bf16 %v1740_v56, %v1740_v56 }
 0x458   : > { %1655 = vmatpush.bf16.msra.mxu0 %v1646_v44 }
 0x45a   : > { %v3963_v62 = vpop.eup %3962 }
 0x45b   : > { %v1737_v53 = vpop.xlane.xlu0 %1736  ;;  %v1616_v33 = vmul.f32 %v3963_v62, %v4836_v3 }
 0x45c   : > { %3964 = vrcp.f32 %v1737_v53 }
 0x45d   : > { %v1618_v2 = vpack.c.bf16 %v1616_v33, %v1616_v33 }
 0x45e   : > { %v1870_v38 = vpop.permute.xlu1 %1869 }
 0x45f   : > { %v1875_v61 = vsel %vm990_vm8, %v1870_v38, 0 }
 0x462   : > { %v3965_v7 = vpop.eup %3964 }
 0x463   : > { %v1741_v9 = vmul.f32 %v3965_v7, %v4841_v50  ;;  %v3723_v7 = vld [vmem:[%s4515_s29 + $0x20] sm:$0xff] }
 0x465   : > { %v1743_v10 = vpack.c.bf16 %v1741_v9, %v1741_v9  ;;  %v3722_v9 = vld [vmem:[%s4515_s29 + $0x18] sm:$0xff] }
 0x467   : > { %3374 = vmatmul.msk.bf16.vlgmr.msrb.gmra.mxu0 %vm962_vm9, %v1493_v40 }
 0x468   : > { %1780 = vmatpush.bf16.msrb.mxu0 %v1771_v39 }
 0x46a   : > { %v1133_v29 = vpop.f32.mrf.mxu3 }
 0x46b   : > { %v1161_v25 = vpack.c.bf16 %v1133_v29, %v1133_v29 }
 0x46d   : > { %1165 = vrot.lane.b32.xlu1 %v1161_v25, %s4304_s5 }
 0x46e   : > { %v1745_v35 = vpop.permute.xlu0 %1744 }
 0x46f   : > { %v1750_v27 = vsel %vm990_vm8, %v1745_v35, 0 }
 0x470   : > { %1759 = vmatpush.bf16.msra.mxu3 %v1750_v27 }
 0x472   : > { %v1135_v46 = vpop.f32.mrf.mxu3 }
 0x473   : > { %3381 = vmatmul.msk.bf16.vlgmr.msra.gmra.mxu3 %vm962_vm9, %v1742_v0 }
 0x474   : > { %1884 = vmatpush.bf16.msrb.mxu3 %v1875_v61 }
 0x477   : > { %3378 = vmatmul.msk.bf16.vlgmr.msra.gmra.mxu0 %vm962_vm9, %v1618_v2  ;;  %v3726_v2 = vld [vmem:[%s4515_s29 + $0x38] sm:$0xff] }
 0x478   : > { %1998 = vmatpush.bf16.msrb.mxu1 %v3726_v2  ;;  %v3748_v2 = vld [vmem:[%s4517_s11 + $0xac] sm:$0xf] }
 0x47a   : > { %v1261_v24 = vpop.f32.mrf.mxu3 }
 0x47b   : > { %v1286_v5 = vpack.c.bf16 %v1261_v24, %v1261_v24  ;;  %v3725_v24 = vld [vmem:[%s4515_s29 + $0x30] sm:$0xff] }
 0x47c   : > { %1999 = vmatpush.bf16.msrb.mxu1 %v3725_v24  ;;  %v3515_v24 = vld [vmem:[%s4517_s11 + $0xb8] sm:$0xf0] }
 0x47d   : > { %1290 = vrot.lane.b32.xlu0 %v1286_v5, %s4303_s1  ;;  %v3724_v5 = vld [vmem:[%s4515_s29 + $0x28] sm:$0xff] }
 0x480   : > { %2000 = vmatpush.bf16.msrb.mxu1 %v3724_v5  ;;  %v3518_v5 = vor.u32 %v3748_v2, %v3515_v24 }
 0x482   : > { %v1263_v18 = vpop.f32.mrf.mxu3 }
 0x484   : > { %2001 = vmatpush.bf16.msrb.mxu1 %v3723_v7  ;;  %v3489_v7 = vld [vmem:[%s4517_s11 + $0x80] sm:$0xf] }
 0x486   : > { %v1157_v12 = vpop.f32.mrf.mxu0 }
 0x487   : > { %v1162_v32 = vpack.c.bf16 %v1157_v12, %v1157_v12  ;;  %3382 = vmatmul.msk.bf16.vlgmr.msrb.gmra.mxu0 %vm962_vm9, %v1743_v10  ;;  %v3721_v10 = vld [vmem:[%s4515_s29 + $0x10] sm:$0xff]  ;;  %v3720_v12 = vld [vmem:[%s4515_s29 + $0x8] sm:$0xff] }
 0x488   : > { %2002 = vmatpush.bf16.msrb.mxu1 %v3722_v9  ;;  %v3745_v9 = vld [vmem:[%s4517_s11 + $0x8c] sm:$0xf0] }
 0x489   : > { %1167 = vrot.lane.b32.xlu1 %v1162_v32, %s4304_s5  ;;  %v3719_v32 = vld [vmem:[%s4515_s29] sm:$0xff] }
 0x48a   : > { %v1386_v3 = vpop.f32.mrf.mxu3 }
 0x48b   : > { %v1411_v49 = vpack.c.bf16 %v1386_v3, %v1386_v3 }
 0x48c   : > { %v1859_v13 = vpop.xlane.xlu2 %1858  ;;  %2003 = vmatpush.bf16.msrb.mxu1 %v3721_v10  ;;  %v3490_v10 = vor.u32 %v3745_v9, %v3489_v7  ;;  %v3435_v7 = vld [vmem:[%s4517_s11 + $0x18] sm:$0xf0] }
 0x48d   : > { %1415 = vrot.lane.b32.xlu2 %v1411_v49, %s4302_s30  ;;  %3966 = vrcp.f32 %v1859_v13 }
 0x48e   : > { %v1159_v14 = vpop.f32.mrf.mxu0 }
 0x490   : > { %2004 = vmatpush.bf16.msrb.mxu1 %v3720_v12  ;;  %v3491_v12 = vld [vmem:[%s4517_s11 + $0x90] sm:$0xf0] }
 0x492   : > { %v1388_v60 = vpop.f32.mrf.mxu3 }
 0x493   : > { %v3967_v15 = vpop.eup %3966  ;;  %v1924_v60 = vld [vmem:[#allocation14] sm:$0xff] }
 0x494   : > { %v1865_v16 = vmul.f32 %v3967_v15, %v4870_v20  ;;  %v1891_v50 = vpop.permute.xlu2 %1890  ;;  %2005 = vmatpush.bf16.msrb.mxu1 %v3719_v32  ;;  %v3898_v15 = vld [vmem:[%s591_s6] ss:$0 sm:$0xff]  ;;  %v3497_v32 = vld [vmem:[%s4517_s11 + $0x88] sm:$0xf] }
 0x495   : > { %v1896_v17 = vsel %vm990_vm8, %v1891_v50, 0 }
 0x496   : > { %v1282_v4 = vpop.f32.mrf.mxu0  ;;  %v1867_v19 = vpack.c.bf16 %v1865_v16, %v1865_v16  ;;  %1905 = vmatpush.bf16.msra.mxu0 %v1896_v17 }
 0x497   : > { %v1287_v57 = vpack.c.bf16 %v1282_v4, %v1282_v4  ;;  %v1925_v4 = vld [vmem:[#allocation14 + $0x8] sm:$0xff] }
 0x498   : > { %3385 = vmatmul.msk.bf16.vlgmr.msrb.gmra.mxu3 %vm962_vm9, %v1867_v19 }
 0x499   : > { %1292 = vrot.lane.b32.xlu1 %v1287_v57, %s4303_s1  ;;  %v1862_v59 = vpop.xlane.xlu0 %1861 }
 0x49a   : > { %v1511_v21 = vpop.f32.mrf.mxu3  ;;  %3968 = vrcp.f32 %v1862_v59 }
 0x49b   : > { %v1536_v23 = vpack.c.bf16 %v1511_v21, %v1511_v21 }
 0x49d   : > { %1540 = vrot.lane.b32.xlu0 %v1536_v23, %s4301_s12 }
 0x49e   : > { %v1284_v63 = vpop.f32.mrf.mxu0 }
 0x4a0   : > { %v3969_v22 = vpop.eup %3968 }
 0x4a1   : > { %v1866_v20 = vmul.f32 %v3969_v22, %v4879_v1 }
 0x4a2   : > { %v1513_v6 = vpop.f32.mrf.mxu3 }
 0x4a3   : > { %v1868_v48 = vpack.c.bf16 %v1866_v20, %v1866_v20 }
 0x4a5   : > { %3386 = vmatmul.msk.bf16.vlgmr.msra.gmra.mxu0 %vm962_vm9, %v1868_v48 }
 0x4d2   : > { %v1636_v54 = vpop.f32.mrf.mxu3 }
 0x4d3   : > { %v1661_v58 = vpack.c.bf16 %v1636_v54, %v1636_v54 }
 0x4d4   : > { %v1407_v31 = vpop.f32.mrf.mxu0 }
 0x4d5   : > { %v1412_v52 = vpack.c.bf16 %v1407_v31, %v1407_v31  ;;  %v3537_v31 = vld [vmem:[%s4517_s11 + $0xe0] sm:$0xf] }
 0x4d7   : > { %1417 = vrot.lane.b32.xlu1 %v1412_v52, %s4302_s30  ;;  %v3757_v52 = vld [vmem:[%s4517_s11 + $0xec] sm:$0xf0] }
 0x4da   : > { %v1638_v28 = vpop.f32.mrf.mxu3 }
 0x4db   : > { %v3755_v28 = vld [vmem:[%s4517_s11 + $0xe4] sm:$0xf] }
 0x4dc   : > { %v1409_v30 = vpop.f32.mrf.mxu0 }
 0x4dd   : > { %v3538_v30 = vor.u32 %v3757_v52, %v3537_v31  ;;  %v3457_v52 = vld [vmem:[%s4517_s11 + $0x40] sm:$0xf] }
 0x4df   : > { %v1166_v36 = vpop.permute.xlu1 %1165  ;;  %1665 = vrot.lane.b32.xlu1 %v1661_v58, %s4300_s10  ;;  %v3539_v58 = vld [vmem:[%s4517_s11 + $0xf0] sm:$0xf0]  ;;  %2263 = vmatpush.bf16.msrb.mxu2 %v3538_v30  ;;  %v3735_v30 = vld [vmem:[%s4517_s11 + $0x44] sm:$0xf] }
 0x4e0   : > { %1172 = vst.msk [vmem:[#allocation2] sm:$0xf] %vm1171_vm11, %v1166_v36  ;;  %v3545_v36 = vld [vmem:[%s4517_s11 + $0xe8] sm:$0xf] }
 0x4e4   : > { %v1532_v37 = vpop.f32.mrf.mxu0 }
 0x4e5   : > { %v1537_v1 = vpack.c.bf16 %v1532_v37, %v1532_v37  ;;  %v3758_v37 = vld [vmem:[%s4517_s11 + $0xf4] sm:$0xf0] }
 0x4e7   : > { %1542 = vrot.lane.b32.xlu2 %v1537_v1, %s4301_s12  ;;  %v1416_v34 = vpop.permute.xlu2 %1415  ;;  %v3542_v1 = vor.u32 %v3755_v28, %v3539_v58  ;;  %v3737_v28 = vld [vmem:[%s4517_s11 + $0x4c] sm:$0xf0] }
 0x4e8   : > { %v3458_v58 = vor.u32 %v3737_v28, %v3457_v52 }
 0x4e9   : > { %2277 = vmatpush.bf16.msra.mxu3 %v3542_v1  ;;  %v3738_v1 = vld [vmem:[%s4517_s11 + $0x54] sm:$0xf0] }
 0x4ec   : > { %v1534_v41 = vpop.f32.mrf.mxu0 }
 0x4ed   : > { %v3546_v41 = vor.u32 %v3758_v37, %v3545_v36  ;;  %v3459_v36 = vld [vmem:[%s4517_s11 + $0x50] sm:$0xf0]  ;;  %v3465_v37 = vld [vmem:[%s4517_s11 + $0x48] sm:$0xf] }
 0x4ef   : > { %v1291_v42 = vpop.permute.xlu0 %1290  ;;  %2291 = vmatpush.bf16.msrb.mxu0 %v3546_v41  ;;  %v3462_v41 = vor.u32 %v3735_v30, %v3459_v36 }
 0x4f0   : > { %1297 = vst.msk [vmem:[#allocation2] sm:$0xf] %vm1296_vm12, %v1291_v42  ;;  %v3756_v42 = vld [vmem:[%s4517_s11 + $0xec] sm:$0xf] }
 0x4f1   : > { %1422 = vst.msk [vmem:[#allocation2] sm:$0xf] %vm1421_vm13, %v1416_v34  ;;  %v3547_v34 = vld [vmem:[%s4517_s11 + $0xf8] sm:$0xf0] }
 0x4f4   : > { %v1657_v43 = vpop.f32.mrf.mxu0 }
 0x4f5   : > { %v1662_v44 = vpack.c.bf16 %v1657_v43, %v1657_v43  ;;  %v3550_v43 = vor.u32 %v3756_v42, %v3547_v34  ;;  %v3466_v42 = vor.u32 %v3738_v1, %v3465_v37  ;;  %v3736_v34 = vld [vmem:[%s4517_s11 + $0x4c] sm:$0xf] }
 0x4f6   : > { %v1761_v45 = vpop.f32.mrf.mxu3 }
 0x4f7   : > { %v1786_v11 = vpack.c.bf16 %v1761_v45, %v1761_v45  ;;  %1667 = vrot.lane.b32.xlu0 %v1662_v44, %s4300_s10  ;;  %v3521_v44 = vld [vmem:[%s4517_s11 + $0xc0] sm:$0xf]  ;;  %v3753_v45 = vld [vmem:[%s4517_s11 + $0xcc] sm:$0xf0]  ;;  %2305 = vmatpush.bf16.msra.mxu1 %v3550_v43  ;;  %v3467_v43 = vld [vmem:[%s4517_s11 + $0x58] sm:$0xf0] }
 0x4f9   : > { %1790 = vrot.lane.b32.xlu2 %v1786_v11, %s4299_s25  ;;  %v3751_v11 = vld [vmem:[%s4517_s11 + $0xc4] sm:$0xf] }
 0x4fb   : > { %v1168_v26 = vpop.permute.xlu1 %1167 }
 0x4fc   : > { %1173 = vst.msk [vmem:[#allocation2 + $0x4] sm:$0xf] %vm1171_vm11, %v1168_v26  ;;  %v1659_v47 = vpop.f32.mrf.mxu0  ;;  %v3522_v26 = vor.u32 %v3753_v45, %v3521_v44  ;;  %v3470_v44 = vor.u32 %v3736_v34, %v3467_v43  ;;  %v3441_v45 = vld [vmem:[%s4517_s11 + $0x20] sm:$0xf] }
 0x4fd   : > { %v3523_v47 = vld [vmem:[%s4517_s11 + $0xd0] sm:$0xf0] }
 0x4fe   : > { %v1763_v51 = vpop.f32.mrf.mxu3  ;;  %2264 = vmatpush.bf16.msrb.mxu2 %v3522_v26  ;;  %v3731_v26 = vld [vmem:[%s4517_s11 + $0x24] sm:$0xf] }
 0x4ff   : > { %v3529_v51 = vld [vmem:[%s4517_s11 + $0xc8] sm:$0xf] }
 0x504   : > { %v1782_v40 = vpop.f32.mrf.mxu0 }
 0x505   : > { %v1787_v53 = vpack.c.bf16 %v1782_v40, %v1782_v40  ;;  %v3754_v40 = vld [vmem:[%s4517_s11 + $0xd4] sm:$0xf0] }
 0x507   : > { %1792 = vrot.lane.b32.xlu1 %v1787_v53, %s4299_s25  ;;  %v3526_v53 = vor.u32 %v3751_v11, %v3523_v47  ;;  %v3733_v11 = vld [vmem:[%s4517_s11 + $0x2c] sm:$0xf0] }
 0x508   : > { %v3442_v47 = vor.u32 %v3733_v11, %v3441_v45 }
 0x509   : > { %2278 = vmatpush.bf16.msra.mxu3 %v3526_v53  ;;  %v3734_v53 = vld [vmem:[%s4517_s11 + $0x34] sm:$0xf0] }
 0x50b   : > { %v1293_v39 = vpop.permute.xlu1 %1292 }
 0x50c   : > { %1298 = vst.msk [vmem:[#allocation2 + $0x4] sm:$0xf] %vm1296_vm12, %v1293_v39  ;;  %v1784_v29 = vpop.f32.mrf.mxu0  ;;  %v3530_v39 = vor.u32 %v3754_v40, %v3529_v51  ;;  %v3443_v51 = vld [vmem:[%s4517_s11 + $0x30] sm:$0xf0]  ;;  %v3449_v40 = vld [vmem:[%s4517_s11 + $0x28] sm:$0xf] }
 0x50d   : > { %v3752_v29 = vld [vmem:[%s4517_s11 + $0xcc] sm:$0xf] }
 0x50e   : > { %2292 = vmatpush.bf16.msrb.mxu0 %v3530_v39  ;;  %v3446_v39 = vor.u32 %v3731_v26, %v3443_v51 }
 0x50f   : > { %v1541_v55 = vpop.permute.xlu0 %1540 }
 0x510   : > { %1547 = vst.msk [vmem:[#allocation2] sm:$0xf] %vm1546_vm14, %v1541_v55  ;;  %v3531_v55 = vld [vmem:[%s4517_s11 + $0xd8] sm:$0xf0] }
 0x51b   : > { %v1886_v25 = vpop.f32.mrf.mxu3 }
 0x51c   : > { %v1911_v56 = vpack.c.bf16 %v1886_v25, %v1886_v25  ;;  %v3534_v25 = vor.u32 %v3752_v29, %v3531_v55  ;;  %v3450_v29 = vor.u32 %v3734_v53, %v3449_v40  ;;  %v3732_v55 = vld [vmem:[%s4517_s11 + $0x2c] sm:$0xf] }
 0x51e   : > { %1915 = vrot.lane.b32.xlu0 %v1911_v56, %s4298_s13  ;;  %v3505_v56 = vld [vmem:[%s4517_s11 + $0xa0] sm:$0xf]  ;;  %2306 = vmatpush.bf16.msra.mxu1 %v3534_v25  ;;  %v3451_v25 = vld [vmem:[%s4517_s11 + $0x38] sm:$0xf0] }
 0x522   : > { %v1907_v38 = vpop.f32.mrf.mxu0  ;;  %2307 = vmatpush.bf16.msra.mxu1 %v3518_v5  ;;  %v3728_v5 = vld [vmem:[%s4517_s11 + $0xc] sm:$0xf] }
 0x523   : > { %v1912_v62 = vpack.c.bf16 %v1907_v38, %v1907_v38  ;;  %v1888_v35 = vpop.f32.mrf.mxu3  ;;  %v3749_v38 = vld [vmem:[%s4517_s11 + $0xac] sm:$0xf0] }
 0x524   : > { %v3506_v35 = vor.u32 %v3749_v38, %v3505_v56  ;;  %v3454_v56 = vor.u32 %v3732_v55, %v3451_v25  ;;  %v3425_v38 = vld [vmem:[%s4517_s11] sm:$0xf] }
 0x525   : > { %1917 = vrot.lane.b32.xlu2 %v1912_v62, %s4298_s13  ;;  %v3747_v62 = vld [vmem:[%s4517_s11 + $0xa4] sm:$0xf] }
 0x526   : > { %2265 = vmatpush.bf16.msrb.mxu2 %v3506_v35  ;;  %v3727_v35 = vld [vmem:[%s4517_s11 + $0x4] sm:$0xf] }
 0x52a   : > { %v1909_v27 = vpop.f32.mrf.mxu0  ;;  %2266 = vmatpush.bf16.msrb.mxu2 %v3490_v10 }
 0x52b   : > { %v3507_v27 = vld [vmem:[%s4517_s11 + $0xb0] sm:$0xf0] }
 0x541   : > { %v1543_v0 = vpop.permute.xlu2 %1542 }
 0x549   : > { %v1418_v61 = vpop.permute.xlu1 %1417 }
 0x54a   : > { %1423 = vst.msk [vmem:[#allocation2 + $0x4] sm:$0xf] %vm1421_vm13, %v1418_v61  ;;  %v3513_v61 = vld [vmem:[%s4517_s11 + $0xa8] sm:$0xf] }
 0x54b   : > { %1548 = vst.msk [vmem:[#allocation2 + $0x4] sm:$0xf] %vm1546_vm14, %v1543_v0  ;;  %v3750_v0 = vld [vmem:[%s4517_s11 + $0xb4] sm:$0xf0] }
 0x551   : > { %v1666_v33 = vpop.permute.xlu1 %1665 }
 0x552   : > { %1672 = vst.msk [vmem:[#allocation2] sm:$0xf] %vm1671_vm15, %v1666_v33  ;;  %v3510_v33 = vor.u32 %v3747_v62, %v3507_v27  ;;  %v3729_v62 = vld [vmem:[%s4517_s11 + $0xc] sm:$0xf0] }
 0x553   : > { %v1791_v46 = vpop.permute.xlu2 %1790  ;;  %v3426_v27 = vor.u32 %v3729_v62, %v3425_v38 }
 0x554   : > { %1797 = vst.msk [vmem:[#allocation2] sm:$0xf] %vm1796_vm0, %v1791_v46  ;;  %v3514_v46 = vor.u32 %v3750_v0, %v3513_v61  ;;  %2279 = vmatpush.bf16.msra.mxu3 %v3510_v33  ;;  %v3427_v61 = vld [vmem:[%s4517_s11 + $0x10] sm:$0xf0]  ;;  %v3433_v0 = vld [vmem:[%s4517_s11 + $0x8] sm:$0xf] }
 0x555   : > { %v3730_v33 = vld [vmem:[%s4517_s11 + $0x14] sm:$0xf0]  ;;  %v3430_v2 = vor.u32 %v3727_v35, %v3427_v61 }
 0x556   : > { %2293 = vmatpush.bf16.msrb.mxu0 %v3514_v46  ;;  %v3434_v24 = vor.u32 %v3730_v33, %v3433_v0 }
 0x569   : > { %v1668_v18 = vpop.permute.xlu0 %1667 }
 0x56a   : > { %1673 = vst.msk [vmem:[#allocation2 + $0x4] sm:$0xf] %vm1671_vm15, %v1668_v18  ;;  %v3743_v18 = vld [vmem:[%s4517_s11 + $0x84] sm:$0xf] }
 0x579   : > { %v1793_v3 = vpop.permute.xlu1 %1792 }
 0x57a   : > { %1798 = vst.msk [vmem:[#allocation2 + $0x4] sm:$0xf] %vm1796_vm0, %v1793_v3  ;;  %v3746_v3 = vld [vmem:[%s4517_s11 + $0x94] sm:$0xf0] }
 0x57f   : > { %v1918_v49 = vpop.permute.xlu2 %1917 }
 0x580   : > { %1923 = vst.msk [vmem:[#allocation2 + $0x4] sm:$0xf] %vm1921_vm1, %v1918_v49  ;;  %v3494_v49 = vor.u32 %v3743_v18, %v3491_v12  ;;  %v3438_v18 = vor.u32 %v3728_v5, %v3435_v7 }
 0x582   : > { %2280 = vmatpush.bf16.msra.mxu3 %v3494_v49 }
 0x590   : > { %v1916_v13 = vpop.permute.xlu0 %1915 }
 0x591   : > { %1922 = vst.msk [vmem:[#allocation2] sm:$0xf] %vm1921_vm1, %v1916_v13  ;;  %v3498_v13 = vor.u32 %v3746_v3, %v3497_v32 }
 0x593   : > { %2294 = vmatpush.bf16.msrb.mxu0 %v3498_v13 }
 0x598   : > { %v3718_v14 = vld [vmem:[#allocation2] sm:$0xff] }
 0x599   : > { %2006 = vmatmul.bf16.vlgmr.msrb.gmra.mxu1 %v3718_v14  ;;  %v3744_v14 = vld [vmem:[%s4517_s11 + $0x8c] sm:$0xf] }
 0x616   : > { %v2007_v16 = vpop.f32.mrf.mxu1 }
 0x617   : > { %v2012_v50 = vadd.f32 %v2007_v16, %v1924_v60  ;;  %v3499_v60 = vld [vmem:[%s4517_s11 + $0x98] sm:$0xf0]  ;;  %v3473_v16 = vld [vmem:[%s4517_s11 + $0x60] sm:$0xf] }
 0x619   : > { %v4944_v17 = vadd.f32 %v3898_v15, %v2012_v50  ;;  %v3741_v50 = vld [vmem:[%s4517_s11 + $0x6c] sm:$0xf0] }
 0x61b   : > { %2020 = vadd.xlane.f32.xlu1 %v4944_v17 }
 0x61e   : > { %v2009_v19 = vpop.f32.mrf.mxu1 }
 0x61f   : > { %v2013_v57 = vadd.f32 %v2009_v19, %v1925_v4  ;;  %v3739_v4 = vld [vmem:[%s4517_s11 + $0x64] sm:$0xf]  ;;  %v3474_v19 = vor.u32 %v3741_v50, %v3473_v16 }
 0x621   : > { %v4947_v59 = vadd.f32 %v3898_v15, %v2013_v57  ;;  %v3502_v15 = vor.u32 %v3744_v14, %v3499_v60  ;;  %v3475_v57 = vld [vmem:[%s4517_s11 + $0x70] sm:$0xf0]  ;;  %2267 = vmatpush.bf16.msrb.mxu2 %v3474_v19 }
 0x623   : > { %2022 = vadd.xlane.f32.xlu0 %v4947_v59  ;;  %2308 = vmatpush.bf16.msra.mxu1 %v3502_v15 }
 0x625   : > { %2268 = vmatpush.bf16.msrb.mxu2 %v3458_v58 }
 0x629   : > { %2269 = vmatpush.bf16.msrb.mxu2 %v3442_v47 }
 0x62d   : > { %2270 = vmatpush.bf16.msrb.mxu2 %v3426_v27 }
 0x68e   : > { %v2021_v21 = vpop.xlane.xlu1 %2020 }
 0x68f   : > { %v2024_v23 = vmul.f32 %v2021_v21, %v4553_v8  ;;  %v3481_v21 = vld [vmem:[%s4517_s11 + $0x68] sm:$0xf] }
 0x691   : > { %v4952_v63 = vsub.f32 %v4944_v17, %v2024_v23  ;;  %v3742_v23 = vld [vmem:[%s4517_s11 + $0x74] sm:$0xf0] }
 0x693   : > { %v2028_v22 = vmul.f32 %v4952_v63, %v4952_v63 }
 0x695   : > { %2030 = vadd.xlane.f32.xlu2 %v2028_v22  ;;  %v3478_v22 = vor.u32 %v3739_v4, %v3475_v57 }
 0x696   : > { %v2023_v20 = vpop.xlane.xlu0 %2022 }
 0x697   : > { %v2025_v6 = vmul.f32 %v2023_v20, %v4553_v8  ;;  %v3482_v20 = vor.u32 %v3742_v23, %v3481_v21  ;;  %2281 = vmatpush.bf16.msra.mxu3 %v3478_v22 }
 0x699   : > { %v4958_v48 = vsub.f32 %v4947_v59, %v2025_v6  ;;  %v3740_v6 = vld [vmem:[%s4517_s11 + $0x6c] sm:$0xf]  ;;  %2295 = vmatpush.bf16.msrb.mxu0 %v3482_v20 }
 0x69b   : > { %v2029_v54 = vmul.f32 %v4958_v48, %v4958_v48  ;;  %2282 = vmatpush.bf16.msra.mxu3 %v3462_v41 }
 0x69d   : > { %2032 = vadd.xlane.f32.xlu1 %v2029_v54  ;;  %v3483_v54 = vld [vmem:[%s4517_s11 + $0x78] sm:$0xf0]  ;;  %2296 = vmatpush.bf16.msrb.mxu0 %v3466_v42 }
 0x69e   : > { %v3486_v31 = vor.u32 %v3740_v6, %v3483_v54 }
 0x69f   : > { %2283 = vmatpush.bf16.msra.mxu3 %v3446_v39 }
 0x6a0   : > { %2309 = vmatpush.bf16.msra.mxu1 %v3486_v31  ;;  %v5031_v31 = vld [vmem:[%s4524_s15] sm:$0xf] }
 0x6a1   : > { %2297 = vmatpush.bf16.msrb.mxu0 %v3450_v29  ;;  %v2097_v52 = vperm.slane %v5031_v31, 2  ;;  %v2098_v28 = vperm.slane %v5031_v31, 3  ;;  %v2096_v41 = vperm.slane %v5031_v31, 1 }
 0x6a3   : > { %2284 = vmatpush.bf16.msra.mxu3 %v3430_v2 }
 0x6a4   : > { %2310 = vmatpush.bf16.msra.mxu1 %v3470_v44 }
 0x6a5   : > { %2298 = vmatpush.bf16.msrb.mxu0 %v3434_v24 }
 0x6a8   : > { %2311 = vmatpush.bf16.msra.mxu1 %v3454_v56 }
 0x6ac   : > { %2312 = vmatpush.bf16.msra.mxu1 %v3438_v18 }
 0x708   : > { %v2031_v46 = vpop.xlane.xlu2 %2030 }
 0x709   : > { %v2034_v9 = vmul.f32 %v2031_v46, %v4553_v8 }
 0x70b   : > { %v2036_v10 = vadd.f32 1e-05, %v2034_v9 }
 0x70d   : > { %3970 = vrsqrt.f32 %v2036_v10  ;;  %vm2044_vm3 = vweird.f32 %v2036_v10 }
 0x710   : > { %v2033_v12 = vpop.xlane.xlu1 %2032 }
 0x711   : > { %v2035_v32 = vmul.f32 %v2033_v12, %v4553_v8 }
 0x713   : > { %v3971_v3 = vpop.eup %3970  ;;  %v2037_v49 = vadd.f32 1e-05, %v2035_v32 }
 0x714   : > { %v2039_v13 = vmul.f32 %v3971_v3, %v2036_v10  ;;  %vm2045_vm2 = vweird.f32 %v3971_v3 }
 0x715   : > { %3972 = vrsqrt.f32 %v2037_v49  ;;  %vm2046_vm5 = vmor %vm2044_vm3, %vm2045_vm2  ;;  %vm2054_vm6 = vweird.f32 %v2037_v49 }
 0x716   : > { %v2040_v14 = vmul.f32 %v3971_v3, %v2039_v13 }
 0x718   : > { %v2041_v60 = vmul.f32 0.5, %v2040_v14 }
 0x71a   : > { %v2042_v16 = vsub.f32 1.5, %v2041_v60 }
 0x71b   : > { %v3973_v15 = vpop.eup %3972 }
 0x71c   : > { %v2049_v50 = vmul.f32 %v3973_v15, %v2037_v49  ;;  %v2043_v19 = vmul.f32 %v3971_v3, %v2042_v16  ;;  %vm2055_vm4 = vweird.f32 %v3973_v15 }
 0x71d   : > { %vm2056_vm7 = vmor %vm2054_vm6, %vm2055_vm4 }
 0x71e   : > { %v2050_v4 = vmul.f32 %v3973_v15, %v2049_v50  ;;  %v2047_v23 = vsel %vm2046_vm5, %v3971_v3, %v2043_v19 }
 0x71f   : > { %v2058_v20 = vmul.f32 %v2047_v23, %v4952_v63 }
 0x720   : > { %v2051_v57 = vmul.f32 0.5, %v2050_v4 }
 0x722   : > { %v2052_v21 = vsub.f32 1.5, %v2051_v57 }
 0x724   : > { %v2053_v8 = vmul.f32 %v3973_v15, %v2052_v21 }
 0x726   : > { %v2057_v22 = vsel %vm2056_vm7, %v3973_v15, %v2053_v8 }
 0x727   : > { %v2059_v6 = vmul.f32 %v2057_v22, %v4958_v48  ;;  %v2095_v48 = vperm.slane %v5031_v31, 0 }
 0x729   : > { %v2060_v54 = vpack.c.bf16 %v2059_v6, %v2058_v20 }
 0x72b   : > { %2271 = vmatmul.bf16.vlgmr.msrb.gmra.mxu2 %v2060_v54  ;;  %2285 = vmatmul.bf16.vlgmr.msra.gmra.mxu3 %v2060_v54 }
 0x72c   : > { %2299 = vmatmul.bf16.vlgmr.msrb.gmra.mxu0 %v2060_v54  ;;  %2313 = vmatmul.bf16.vlgmr.msra.gmra.mxu1 %v2060_v54 }
 0x7a9   : > { %v2300_v30 = vpop.f32.mrf.mxu0  ;;  %v2314_v58 = vpop.f32.mrf.mxu1 }
 0x7aa   : > { %v5035_v36 = vadd.f32 %v2300_v30, %v2097_v52  ;;  %v5039_v63 = vadd.f32 %v2314_v58, %v2098_v28 }
 0x7ac   : > { %v5043_v37 = vmul.f32 0.70710677, %v5035_v36  ;;  %v5046_v1 = vmul.f32 0.70710677, %v5039_v63 }
 0x7ae   : > { %v2415_v42 = vmul.f32 %v5043_v37, %v5043_v37  ;;  %v2455_v34 = vmul.f32 %v5046_v1, %v5046_v1  ;;  %v2272_v43 = vpop.f32.mrf.mxu2  ;;  %v2286_v44 = vpop.f32.mrf.mxu3 }
 0x7af   : > { %v5055_v45 = vadd.f32 %v2272_v43, %v2095_v48  ;;  %v5063_v47 = vadd.f32 %v2286_v44, %v2096_v41 }
 0x7b0   : > { %v5057_v11 = vmin.f32 %v2415_v42, 16.0  ;;  %v5059_v26 = vmin.f32 %v2455_v34, 16.0 }
 0x7b1   : > { %v5066_v51 = vmul.f32 0.70710677, %v5055_v45  ;;  %v5075_v56 = vmul.f32 0.70710677, %v5063_v47  ;;  %v2302_v32 = vpop.f32.mrf.mxu0 }
 0x7b2   : > { %v2428_v40 = vmul.f32 3.8918573e-05, %v5057_v11  ;;  %v2417_v53 = vmul.f32 2.1237322e-06, %v5057_v11  ;;  %v2457_v39 = vmul.f32 2.1237322e-06, %v5059_v26  ;;  %v5093_v16 = vadd.f32 %v2302_v32, %v2097_v52 }
 0x7b3   : > { %v2468_v29 = vmul.f32 3.8918573e-05, %v5059_v26  ;;  %v2335_v55 = vmul.f32 %v5066_v51, %v5066_v51  ;;  %v2375_v2 = vmul.f32 %v5075_v56, %v5075_v56 }
 0x7b4   : > { %v2429_v25 = vadd.f32 0.001143296, %v2428_v40  ;;  %v2418_v27 = vadd.f32 0.00028619796, %v2417_v53  ;;  %v2458_v61 = vadd.f32 0.00028619796, %v2457_v39  ;;  %v2316_v40 = vpop.f32.mrf.mxu1 }
 0x7b5   : > { %v2469_v38 = vadd.f32 0.001143296, %v2468_v29  ;;  %v5077_v62 = vmin.f32 %v2335_v55, 16.0  ;;  %v5089_v49 = vmin.f32 %v2375_v2, 16.0  ;;  %v5100_v20 = vmul.f32 0.70710677, %v5093_v16 }
 0x7b6   : > { %v2430_v35 = vmul.f32 %v2429_v25, %v5057_v11  ;;  %v2419_v9 = vmul.f32 %v2418_v27, %v5057_v11  ;;  %v2459_v18 = vmul.f32 %v2458_v61, %v5059_v26 }
 0x7b7   : > { %v2470_v0 = vmul.f32 %v2469_v38, %v5059_v26  ;;  %v2348_v33 = vmul.f32 3.8918573e-05, %v5077_v62  ;;  %v2337_v15 = vmul.f32 2.1237322e-06, %v5077_v62  ;;  %v2377_v21 = vmul.f32 2.1237322e-06, %v5089_v49 }
 0x7b8   : > { %v2431_v46 = vadd.f32 0.014752088, %v2430_v35  ;;  %v2420_v50 = vadd.f32 0.0036580483, %v2419_v9  ;;  %v2460_v4 = vadd.f32 0.0036580483, %v2459_v18  ;;  %v2575_v44 = vmul.f32 %v5100_v20, %v5100_v20 }
 0x7b9   : > { %v2471_v24 = vadd.f32 0.014752088, %v2470_v0  ;;  %v2349_v5 = vadd.f32 0.001143296, %v2348_v33  ;;  %v2338_v22 = vadd.f32 0.00028619796, %v2337_v15  ;;  %v5116_v35 = vadd.f32 %v2316_v40, %v2098_v28 }
 0x7ba   : > { %v2432_v7 = vmul.f32 %v2431_v46, %v5057_v11  ;;  %v2421_v6 = vmul.f32 %v2420_v50, %v5057_v11  ;;  %v2461_v54 = vmul.f32 %v2460_v4, %v5059_v26  ;;  %v2378_v30 = vadd.f32 0.00028619796, %v2377_v21 }
 0x7bb   : > { %v2472_v10 = vmul.f32 %v2471_v24, %v5059_v26  ;;  %v2350_v12 = vmul.f32 %v2349_v5, %v5077_v62  ;;  %v2388_v58 = vmul.f32 3.8918573e-05, %v5089_v49  ;;  %v2339_v43 = vmul.f32 %v2338_v22, %v5077_v62 }
 0x7bc   : > { %v2433_v3 = vadd.f32 0.112945676, %v2432_v7  ;;  %v2422_v53 = vadd.f32 0.05243302, %v2421_v6  ;;  %v2462_v39 = vadd.f32 0.05243302, %v2461_v54  ;;  %v2379_v55 = vmul.f32 %v2378_v30, %v5089_v49  ;;  %v2274_v7 = vpop.f32.mrf.mxu2 }
 0x7bd   : > { %v2473_v13 = vadd.f32 0.112945676, %v2472_v10  ;;  %v2351_v14 = vadd.f32 0.014752088, %v2350_v12  ;;  %v2389_v25 = vadd.f32 0.001143296, %v2388_v58 }
 0x7be   : > { %v2434_v60 = vmul.f32 %v2433_v3, %v5057_v11  ;;  %v2340_v27 = vadd.f32 0.0036580483, %v2339_v43  ;;  %v5118_v61 = vmin.f32 %v2575_v44, 16.0  ;;  %v2423_v0 = vmul.f32 %v2422_v53, %v5057_v11 }
 0x7bf   : > { %v2474_v57 = vmul.f32 %v2473_v13, %v5059_v26  ;;  %v2352_v23 = vmul.f32 %v2351_v14, %v5077_v62  ;;  %v2463_v33 = vmul.f32 %v2462_v39, %v5059_v26  ;;  %v2380_v2 = vadd.f32 0.0036580483, %v2379_v55 }
 0x7c0   : > { %v2435_v19 = vadd.f32 0.4994258, %v2434_v60  ;;  %v2390_v24 = vmul.f32 %v2389_v25, %v5089_v49  ;;  %v2577_v5 = vmul.f32 2.1237322e-06, %v5118_v61  ;;  %v2588_v18 = vmul.f32 3.8918573e-05, %v5118_v61 }
 0x7c1   : > { %v2475_v52 = vadd.f32 0.4994258, %v2474_v57  ;;  %v2353_v34 = vadd.f32 0.112945676, %v2352_v23  ;;  %v5128_v28 = vmul.f32 0.70710677, %v5116_v35  ;;  %v2341_v10 = vmul.f32 %v2340_v27, %v5077_v62 }
 0x7c2   : > { %v2436_v8 = vmul.f32 %v2435_v19, %v5057_v11  ;;  %v2424_v32 = vadd.f32 0.18741608, %v2423_v0  ;;  %v5135_v3 = vadd.f32 %v2274_v7, %v2095_v48  ;;  %v2464_v13 = vadd.f32 0.18741608, %v2463_v33 }
 0x7c3   : > { %v2476_v29 = vmul.f32 %v2475_v52, %v5059_v26  ;;  %v2354_v38 = vmul.f32 %v2353_v34, %v5077_v62  ;;  %v2381_v14 = vmul.f32 %v2380_v2, %v5089_v49  ;;  %v2391_v60 = vadd.f32 0.014752088, %v2390_v24 }
 0x7c4   : > { %v5105_v42 = vadd.f32 1.0, %v2436_v8  ;;  %v2578_v15 = vadd.f32 0.00028619796, %v2577_v5  ;;  %v2589_v4 = vadd.f32 0.001143296, %v2588_v18  ;;  %v2615_v19 = vmul.f32 %v5128_v28, %v5128_v28 }
 0x7c5   : > { %v5122_v46 = vadd.f32 1.0, %v2476_v29  ;;  %v2355_v9 = vadd.f32 0.4994258, %v2354_v38  ;;  %v2342_v21 = vadd.f32 0.05243302, %v2341_v10  ;;  %v2425_v48 = vmul.f32 %v2424_v32, %v5057_v11 }
 0x7c6   : > { %3974 = vrcp.f32 %v5105_v42  ;;  %v2579_v23 = vmul.f32 %v2578_v15, %v5118_v61  ;;  %v2465_v8 = vmul.f32 %v2464_v13, %v5059_v26  ;;  %v2382_v22 = vadd.f32 0.05243302, %v2381_v14  ;;  %v3782_v13 = vld [vmem:[%s4527_s18 + $0xb8] sm:$0xff] }
 0x7c7   : > { %3976 = vrcp.f32 %v5122_v46  ;;  %v2356_v50 = vmul.f32 %v2355_v9, %v5077_v62  ;;  %v2590_v6 = vmul.f32 %v2589_v4, %v5118_v61  ;;  %v2392_v52 = vmul.f32 %v2391_v60, %v5089_v49  ;;  %v3790_v14 = vld [vmem:[%s4527_s18 + $0xf8] sm:$0xff]  ;;  %2959 = vmatpush.bf16.msra.mxu0 %v3782_v13  ;;  %v2288_v13 = vpop.f32.mrf.mxu3 }
 0x7c8   : > { %v5151_v30 = vmin.f32 %v2615_v19, 16.0  ;;  %v5154_v58 = vmul.f32 0.70710677, %v5135_v3  ;;  %v5157_v34 = vmul.f32 0.5, %v5035_v36  ;;  %v2343_v43 = vmul.f32 %v2342_v21, %v5077_v62  ;;  %2973 = vmatpush.bf16.msrb.mxu1 %v3790_v14  ;;  %v3780_v14 = vld [vmem:[%s4527_s18 + $0xa8] sm:$0xff] }
 0x7c9   : > { %v5148_v54 = vadd.f32 1.0, %v2356_v50  ;;  %v2426_v26 = vadd.f32 1.1283791, %v2425_v48  ;;  %v5163_v40 = vmul.f32 0.5, %v5039_v63  ;;  %v5166_v53 = vmul.f32 0.5, %v5093_v16 }
 0x7ca   : > { %v2580_v39 = vadd.f32 0.0036580483, %v2579_v23  ;;  %v2447_v29 = vand.u32 2147483647, %v5105_v42  ;;  %v2466_v55 = vadd.f32 1.1283791, %v2465_v8  ;;  %v5170_v25 = vmul.f32 %v2382_v22, %v5089_v49 }
 0x7cb   : > { %v2591_v36 = vadd.f32 0.014752088, %v2590_v6  ;;  %3978 = vrcp.f32 %v5148_v54  ;;  %v2393_v38 = vadd.f32 0.112945676, %v2392_v52  ;;  %v2617_v27 = vmul.f32 2.1237322e-06, %v5151_v30 }
 0x7cc   : > { %v5131_v12 = vpop.eup %3974  ;;  %v2495_v63 = vmul.f32 %v5154_v58, %v5154_v58  ;;  %v2344_v33 = vadd.f32 0.18741608, %v2343_v43  ;;  %v5181_v24 = vmul.f32 %v2426_v26, %v5043_v37  ;;  %v2581_v5 = vmul.f32 %v2580_v39, %v5118_v61  ;;  %v3781_v43 = vld [vmem:[%s4527_s18 + $0xb0] sm:$0xff] }
 0x7cd   : > { %v2439_v57 = vmul.f32 %v5131_v12, %v5105_v42  ;;  %v5160_v44 = vpop.eup %3976  ;;  %v2592_v2 = vmul.f32 %v2591_v36, %v5118_v61  ;;  %v2628_v7 = vmul.f32 3.8918573e-05, %v5151_v30  ;;  %vm2443_vm8 = vweird.f32 %v5105_v42  ;;  %2960 = vmatpush.bf16.msra.mxu0 %v3781_v43 }
 0x7ce   : > { %v2479_v0 = vmul.f32 %v5160_v44, %v5122_v46  ;;  %v5185_v9 = vmin.f32 %v2495_v63, 16.0  ;;  %v2449_v18 = vand.u32 2147483648, %v5105_v42  ;;  %v5190_v10 = vmul.f32 %v2466_v55, %v5046_v1  ;;  %v3789_v42 = vld [vmem:[%s4527_s18 + $0xf0] sm:$0xff] }
 0x7cf   : > { %v2440_v11 = vsub.f32 1.0, %v2439_v57  ;;  %v2618_v32 = vadd.f32 0.00028619796, %v2617_v27  ;;  %vm5194_vm9 = vcmp.eq.f32.partialorder %v2447_v29, 8.507059e+37  ;;  %v2487_v37 = vand.u32 2147483647, %v5122_v46  ;;  %2974 = vmatpush.bf16.msrb.mxu1 %v3789_v42 }
 0x7d0   : > { %v2394_v15 = vmul.f32 %v2393_v38, %v5089_v49  ;;  %v2593_v50 = vadd.f32 0.112945676, %v2592_v2  ;;  %vm2444_vm10 = vweird.f32 %v5131_v12  ;;  %v2480_v19 = vsub.f32 1.0, %v2479_v0  ;;  %v3774_v0 = vld [vmem:[%s4527_s18 + $0x78] sm:$0xff] }
 0x7d1   : > { %v2441_v16 = vmul.f32 %v5131_v12, %v2440_v11  ;;  %v2489_v1 = vand.u32 2147483648, %v5122_v46  ;;  %v5203_v57 = vpop.eup %3978  ;;  %v2582_v21 = vadd.f32 0.05243302, %v2581_v5  ;;  %v2629_v23 = vadd.f32 0.001143296, %v2628_v7  ;;  %vm5216_vm12 = vmor %vm2443_vm8, %vm2444_vm10  ;;  %2945 = vmatpush.bf16.msrb.mxu3 %v3774_v0  ;;  %2961 = vmatpush.bf16.msra.mxu0 %v3780_v14  ;;  %v3772_v0 = vld [vmem:[%s4527_s18 + $0x68] sm:$0xff] }
 0x7d2   : > { %v2594_v48 = vmul.f32 %v2593_v50, %v5118_v61  ;;  %v2497_v8 = vmul.f32 2.1237322e-06, %v5185_v9  ;;  %v2450_v22 = vor.u32 1.1754944e-38, %v2449_v18  ;;  %vm2483_vm11 = vweird.f32 %v5122_v46 }
 0x7d3   : > { %v2442_v4 = vadd.f32 %v5131_v12, %v2441_v16  ;;  %v2345_v6 = vmul.f32 %v2344_v33, %v5077_v62  ;;  %v2619_v52 = vmul.f32 %v2618_v32, %v5151_v30  ;;  %v2508_v11 = vmul.f32 3.8918573e-05, %v5185_v9  ;;  %v3766_v16 = vld [vmem:[%s4527_s18 + $0x38] sm:$0xff] }
 0x7d4   : > { %v2395_v39 = vadd.f32 0.4994258, %v2394_v15  ;;  %v2595_v29 = vadd.f32 0.4994258, %v2594_v48  ;;  %v2630_v55 = vmul.f32 %v2629_v23, %v5151_v30  ;;  %v2498_v36 = vadd.f32 0.00028619796, %v2497_v8  ;;  %2931 = vmatpush.bf16.msra.mxu2 %v3766_v16 }
 0x7d5   : > { %v2446_v62 = vsel %vm5216_vm12, %v5131_v12, %v2442_v4  ;;  %v2481_v38 = vmul.f32 %v5160_v44, %v2480_v19  ;;  %v2359_v27 = vmul.f32 %v5203_v57, %v5148_v54  ;;  %v2509_v63 = vadd.f32 0.001143296, %v2508_v11  ;;  %v3788_v15 = vld [vmem:[%s4527_s18 + $0xe8] sm:$0xff]  ;;  %v3773_v11 = vld [vmem:[%s4527_s18 + $0x70] sm:$0xff] }
 0x7d6   : > { %v2583_v33 = vmul.f32 %v2582_v21, %v5118_v61  ;;  %v2596_v2 = vmul.f32 %v2595_v29, %v5118_v61  ;;  %v2631_v5 = vadd.f32 0.014752088, %v2630_v55  ;;  %v2499_v7 = vmul.f32 %v2498_v36, %v5185_v9  ;;  %2975 = vmatpush.bf16.msrb.mxu1 %v3788_v15  ;;  %v3779_v36 = vld [vmem:[%s4527_s18 + $0xa0] sm:$0xff]  ;;  %2946 = vmatpush.bf16.msrb.mxu3 %v3773_v11  ;;  %v3764_v16 = vld [vmem:[%s4527_s18 + $0x28] sm:$0xff] }
 0x7d7   : > { %vm2484_vm13 = vweird.f32 %v5160_v44  ;;  %vm5234_vm14 = vcmp.eq.f32.partialorder %v2487_v37, 8.507059e+37  ;;  %v2620_v18 = vadd.f32 0.0036580483, %v2619_v52  ;;  %v2510_v32 = vmul.f32 %v2509_v63, %v5185_v9  ;;  %v3765_v52 = vld [vmem:[%s4527_s18 + $0x30] sm:$0xff]  ;;  %2962 = vmatpush.bf16.msra.mxu0 %v3779_v36 }
 0x7d8   : > { %v2369_v50 = vand.u32 2147483648, %v5148_v54  ;;  %v2396_v4 = vmul.f32 %v2395_v39, %v5089_v49  ;;  %v5243_v19 = vadd.f32 1.0, %v2596_v2  ;;  %v2632_v37 = vmul.f32 %v2631_v5, %v5151_v30  ;;  %2932 = vmatpush.bf16.msra.mxu2 %v3765_v52  ;;  %vm5264_vm15 = vmor %vm2483_vm11, %vm2484_vm13  ;;  %v3777_v36 = vld [vmem:[%s4527_s18 + $0x90] sm:$0xff] }
 0x7d9   : > { %v2451_v21 = vsel %vm5194_vm9, %v2450_v22, %v2446_v62  ;;  %v2482_v48 = vadd.f32 %v5160_v44, %v2481_v38  ;;  %v2500_v23 = vadd.f32 0.0036580483, %v2499_v7  ;;  %v2511_v8 = vadd.f32 0.014752088, %v2510_v32  ;;  %v3787_v38 = vld [vmem:[%s4527_s18 + $0xe0] sm:$0xff]  ;;  %v3786_v32 = vld [vmem:[%s4527_s18 + $0xd8] sm:$0xff] }
 0x7da   : > { %v2360_v43 = vsub.f32 1.0, %v2359_v27  ;;  %v2584_v26 = vadd.f32 0.18741608, %v2583_v33  ;;  %3980 = vrcp.f32 %v5243_v19  ;;  %v5254_v39 = vadd.f32 %v2288_v13, %v2096_v41  ;;  %2976 = vmatpush.bf16.msrb.mxu1 %v3787_v38  ;;  %2947 = vmatpush.bf16.msrb.mxu3 %v3772_v0  ;;  %v3785_v62 = vld [vmem:[%s4527_s18 + $0xd0] sm:$0xff]  ;;  %v3770_v0 = vld [vmem:[%s4527_s18 + $0x58] sm:$0xff] }
 0x7db   : > { %v2490_v29 = vor.u32 1.1754944e-38, %v2489_v1  ;;  %v5256_v60 = vadd.f32 1.1283791, %v2345_v6  ;;  %v2621_v22 = vmul.f32 %v2620_v18, %v5151_v30  ;;  %v2633_v55 = vadd.f32 0.112945676, %v2632_v37  ;;  %v3778_v18 = vld [vmem:[%s4527_s18 + $0x98] sm:$0xff] }
 0x7dc   : > { %v2367_v31 = vand.u32 2147483647, %v5148_v54  ;;  %v5269_v41 = vor.u32 1.1754944e-38, %v2369_v50  ;;  %v5271_v1 = vadd.f32 1.0, %v2396_v4  ;;  %v2512_v6 = vmul.f32 %v2511_v8, %v5185_v9  ;;  %2933 = vmatpush.bf16.msra.mxu2 %v3764_v16  ;;  %2963 = vmatpush.bf16.msra.mxu0 %v3778_v18  ;;  %v3762_v16 = vld [vmem:[%s4527_s18 + $0x18] sm:$0xff]  ;;  %v3783_v4 = vld [vmem:[%s4527_s18 + $0xc0] sm:$0xff] }
 0x7dd   : > { %v5276_v27 = vmul.f32 %v2451_v21, %v5181_v24  ;;  %v2486_v46 = vsel %vm5264_vm15, %v5160_v44, %v2482_v48  ;;  %v2634_v63 = vmul.f32 %v2633_v55, %v5151_v30  ;;  %v2501_v42 = vmul.f32 %v2500_v23, %v5185_v9  ;;  %v3763_v48 = vld [vmem:[%s4527_s18 + $0x20] sm:$0xff] }
 0x7de   : > { %v2361_v33 = vmul.f32 %v5203_v57, %v2360_v43  ;;  %v2585_v2 = vmul.f32 %v2584_v26, %v5118_v61  ;;  %v2513_v5 = vadd.f32 0.112945676, %v2512_v6  ;;  %v5288_v24 = vmul.f32 0.70710677, %v5254_v39  ;;  %v3771_v23 = vld [vmem:[%s4527_s18 + $0x60] sm:$0xff]  ;;  %2977 = vmatpush.bf16.msrb.mxu1 %v3786_v32 }
 0x7df   : > { %vm2363_vm0 = vweird.f32 %v5148_v54  ;;  %vm2364_vm1 = vweird.f32 %v5203_v57  ;;  %v2622_v44 = vadd.f32 0.05243302, %v2621_v22  ;;  %v2635_v7 = vadd.f32 0.4994258, %v2634_v63  ;;  %2948 = vmatpush.bf16.msrb.mxu3 %v3771_v23 }
 0x7e0   : > { %v5294_v13 = vpop.eup %3980  ;;  %v2491_v61 = vsel %vm5234_vm14, %v2490_v29, %v2486_v46  ;;  %3982 = vrcp.f32 %v5271_v1  ;;  %v2514_v14 = vmul.f32 %v2513_v5, %v5185_v9  ;;  %v2535_v15 = vmul.f32 %v5288_v24, %v5288_v24  ;;  %2934 = vmatpush.bf16.msra.mxu2 %v3763_v48  ;;  %vm5329_vm3 = vmor %vm2363_vm0, %vm2364_vm1  ;;  %2964 = vmatpush.bf16.msra.mxu0 %v3777_v36 }
 0x7e1   : > { %v3553_v50 = vclamps-f32 %v5276_v27, 1.0  ;;  %vm5303_vm2 = vcmp.eq.f32.partialorder %v2367_v31, 8.507059e+37  ;;  %v2599_v37 = vmul.f32 %v5294_v13, %v5243_v19  ;;  %v2636_v12 = vmul.f32 %v2635_v7, %v5151_v30 }
 0x7e2   : > { %v2502_v21 = vadd.f32 0.05243302, %v2501_v42  ;;  %v2362_v8 = vadd.f32 %v5203_v57, %v2361_v33  ;;  %v2586_v52 = vadd.f32 1.1283791, %v2585_v2  ;;  %v2515_v11 = vadd.f32 0.4994258, %v2514_v14  ;;  %2978 = vmatpush.bf16.msrb.mxu1 %v3785_v62 }
 0x7e3   : > { %v5313_v43 = vmin.f32 %v2535_v15, 16.0  ;;  %v2600_v26 = vsub.f32 1.0, %v2599_v37  ;;  %v2607_v29 = vand.u32 2147483647, %v5243_v19  ;;  %v2623_v22 = vmul.f32 %v2622_v44, %v5151_v30  ;;  %v3776_v14 = vld [vmem:[%s4527_s18 + $0x88] sm:$0xff]  ;;  %2949 = vmatpush.bf16.msrb.mxu3 %v3770_v0 }
 0x7e4   : > { %v5317_v55 = vadd.f32 1.0, %v2636_v12  ;;  %v2609_v31 = vand.u32 2147483648, %v5243_v19  ;;  %v2516_v6 = vmul.f32 %v2515_v11, %v5185_v9  ;;  %vm2604_vm4 = vweird.f32 %v5294_v13  ;;  %2935 = vmatpush.bf16.msra.mxu2 %v3762_v16  ;;  %2965 = vmatpush.bf16.msra.mxu0 %v3776_v14 }
 0x7e5   : > { %v2537_v38 = vmul.f32 2.1237322e-06, %v5313_v43  ;;  %v2548_v27 = vmul.f32 3.8918573e-05, %v5313_v43  ;;  %v2601_v63 = vmul.f32 %v5294_v13, %v2600_v26  ;;  %v2503_v42 = vmul.f32 %v2502_v21, %v5185_v9  ;;  %v3761_v21 = vld [vmem:[%s4527_s18 + $0x10] sm:$0xff] }
 0x7e6   : > { %3984 = vrcp.f32 %v5317_v55  ;;  %v5339_v33 = vpop.eup %3982  ;;  %v5342_v54 = vmul.f32 %v2491_v61, %v5190_v10  ;;  %v2366_v2 = vsel %vm5329_vm3, %v5203_v57, %v2362_v8  ;;  %v5347_v5 = vadd.f32 1.0, %v2516_v6  ;;  %v3784_v10 = vld [vmem:[%s4527_s18 + $0xc8] sm:$0xff] }
 0x7e7   : > { %v2538_v44 = vadd.f32 0.00028619796, %v2537_v38  ;;  %v2602_v7 = vadd.f32 %v5294_v13, %v2601_v63  ;;  %vm2603_vm5 = vweird.f32 %v5243_v19  ;;  %v2624_v18 = vadd.f32 0.18741608, %v2623_v22  ;;  %2979 = vmatpush.bf16.msrb.mxu1 %v3784_v10  ;;  %v3768_v38 = vld [vmem:[%s4527_s18 + $0x48] sm:$0xff]  ;;  %v3759_v10 = vld [vmem:[%s4527_s18] sm:$0xff] }
 0x7e8   : > { %v2549_v32 = vadd.f32 0.001143296, %v2548_v27  ;;  %v2657_v61 = vadd.f32 1.0, %v3553_v50  ;;  %v2587_v15 = vmul.f32 %v2586_v52, %v5100_v20  ;;  %vm2605_vm6 = vmor %vm2603_vm5, %vm2604_vm4  ;;  %v2610_v57 = vor.u32 1.1754944e-38, %v2609_v31  ;;  %v3769_v50 = vld [vmem:[%s4527_s18 + $0x50] sm:$0xff]  ;;  %2936 = vmatpush.bf16.msra.mxu2 %v3761_v21 }
 0x7e9   : > { %3986 = vrcp.f32 %v5347_v5  ;;  %v2606_v19 = vsel %vm2605_vm6, %v5294_v13, %v2602_v7  ;;  %vm2608_vm7 = vcmp.eq.f32.partialorder %v2607_v29, 8.507059e+37  ;;  %v2504_v37 = vadd.f32 0.18741608, %v2503_v42  ;;  %2950 = vmatpush.bf16.msrb.mxu3 %v3769_v50 }
 0x7ea   : > { %v2539_v12 = vmul.f32 %v2538_v44, %v5313_v43  ;;  %v2371_v20 = vsel %vm5303_vm2, %v5269_v41, %v2366_v2  ;;  %v5366_v48 = vmul.f32 %v5339_v33, %v5271_v1  ;;  %v2611_v23 = vsel %vm2608_vm7, %v2610_v57, %v2606_v19  ;;  %v3775_v41 = vld [vmem:[%s4527_s18 + $0x80] sm:$0xff] }
 0x7eb   : > { %v2550_v13 = vmul.f32 %v2549_v32, %v5313_v43  ;;  %v2347_v52 = vmul.f32 %v5256_v60, %v5066_v51  ;;  %v5372_v11 = vadd.f32 0.18741608, %v5170_v25  ;;  %v2612_v26 = vmul.f32 %v2611_v23, %v2587_v15  ;;  %2966 = vmatpush.bf16.msra.mxu0 %v3775_v41  ;;  %2980 = vmatpush.bf16.msrb.mxu1 %v3783_v4 }
 0x7ec   : > { %v3985_v8 = vpop.eup %3984  ;;  %v2625_v29 = vmul.f32 %v2624_v18, %v5151_v30  ;;  %v2665_v22 = vmul.f32 %v2657_v61, %v5157_v34  ;;  %v3554_v36 = vclamps-f32 %v5342_v54, 1.0  ;;  %v2505_v60 = vmul.f32 %v2504_v37, %v5185_v9  ;;  %v3760_v30 = vld [vmem:[%s4527_s18 + $0x8] sm:$0xff]  ;;  %v3767_v61 = vld [vmem:[%s4527_s18 + $0x40] sm:$0xff]  ;;  %s4305_s18 = smov [#allocation14]  }
 0x7ed   : > { %v2639_v62 = vmul.f32 %v3985_v8, %v5317_v55  ;;  %v2551_v31 = vadd.f32 0.014752088, %v2550_v13  ;;  %v5380_v51 = vmul.f32 %v2371_v20, %v2347_v52  ;;  %v3557_v25 = vclamps-f32 %v2612_v26, 1.0  ;;  %2937 = vmatpush.bf16.msra.mxu2 %v3760_v30  ;;  %2951 = vmatpush.bf16.msrb.mxu3 %v3768_v38  ;;  %s3005_s6 = sshll.u32 %s4305_s18, 4  ;;  %s3006_s6 = int_to_ptr.vmem [resolvable:$true] %s3005_s6 }
 0x7ee   : > { %v2540_v6 = vadd.f32 0.0036580483, %v2539_v12  ;;  %v2400_v46 = vsub.f32 1.0, %v5366_v48  ;;  %v2649_v34 = vand.u32 2147483648, %v5317_v55  ;;  %v2626_v0 = vadd.f32 1.1283791, %v2625_v29 }
 0x7ef   : > { %v3987_v27 = vpop.eup %3986  ;;  %v2640_v63 = vsub.f32 1.0, %v2639_v62  ;;  %v2552_v42 = vmul.f32 %v2551_v31, %v5313_v43  ;;  %v2661_v16 = vadd.f32 1.0, %v3557_v25  ;;  %vm2643_vm8 = vweird.f32 %v5317_v55 }
 0x7f0   : > { %v2519_v9 = vmul.f32 %v3987_v27, %v5347_v5  ;;  %vm2644_vm9 = vweird.f32 %v3985_v8  ;;  %v2647_v2 = vand.u32 2147483647, %v5317_v55  ;;  %v2506_v18 = vadd.f32 1.1283791, %v2505_v60 }
 0x7f1   : > { %v2641_v54 = vmul.f32 %v3985_v8, %v2640_v63  ;;  %v2553_v44 = vadd.f32 0.112945676, %v2552_v42  ;;  %v2669_v7 = vmul.f32 %v2661_v16, %v5166_v53  ;;  %v2541_v14 = vmul.f32 %v2540_v6, %v5313_v43  ;;  %vm2645_vm10 = vmor %vm2643_vm8, %vm2644_vm9  ;;  %2938 = vmatpush.bf16.msra.mxu2 %v3759_v10  ;;  %2952 = vmatpush.bf16.msrb.mxu3 %v3767_v61 }
 0x7f2   : > { %v2520_v32 = vsub.f32 1.0, %v2519_v9  ;;  %v2650_v57 = vor.u32 1.1754944e-38, %v2649_v34  ;;  %v2529_v19 = vand.u32 2147483648, %v5347_v5  ;;  %vm2524_vm11 = vweird.f32 %v3987_v27 }
 0x7f3   : > { %v2642_v15 = vadd.f32 %v3985_v8, %v2641_v54  ;;  %v2554_v37 = vmul.f32 %v2553_v44, %v5313_v43  ;;  %v2673_v12 = vpack.c.bf16 %v2669_v7, %v2665_v22  ;;  %v2527_v53 = vand.u32 2147483647, %v5347_v5 }
 0x7f4   : > { %v2521_v21 = vmul.f32 %v3987_v27, %v2520_v32  ;;  %v2627_v50 = vmul.f32 %v2626_v0, %v5128_v28  ;;  %vm2648_vm12 = vcmp.eq.f32.partialorder %v2647_v2, 8.507059e+37  ;;  %vm2523_vm13 = vweird.f32 %v5347_v5 }
 0x7f5   : > { %v2646_v20 = vsel %vm2645_vm10, %v3985_v8, %v2642_v15  ;;  %v2555_v48 = vadd.f32 0.4994258, %v2554_v37  ;;  %v2542_v52 = vadd.f32 0.05243302, %v2541_v14  ;;  %2967 = vmatmul.bf16.vlgmr.msra.gmra.mxu0 %v2673_v12  ;;  %v2401_v55 = vmul.f32 %v5339_v33, %v2400_v46  ;;  %vm2525_vm14 = vmor %vm2523_vm13, %vm2524_vm11 }
 0x7f6   : > { %v2651_v23 = vsel %vm2648_vm12, %v2650_v57, %v2646_v20  ;;  %v2522_v13 = vadd.f32 %v3987_v27, %v2521_v21  ;;  %v2530_v29 = vor.u32 1.1754944e-38, %v2529_v19  ;;  %v3551_v28 = vclamps-f32 %v5380_v51, 1.0 }
 0x7f7   : > { %v2652_v26 = vmul.f32 %v2651_v23, %v2627_v50  ;;  %v2556_v41 = vmul.f32 %v2555_v48, %v5313_v43  ;;  %v2507_v8 = vmul.f32 %v2506_v18, %v5154_v58  ;;  %vm2528_vm15 = vcmp.eq.f32.partialorder %v2527_v53, 8.507059e+37 }
 0x7f8   : > { %v2526_v4 = vsel %vm2525_vm14, %v3987_v27, %v2522_v13  ;;  %v2658_v22 = vadd.f32 1.0, %v3554_v36  ;;  %v2385_v25 = vmul.f32 %v5372_v11, %v5089_v49  ;;  %v2326_v60 = vmul.f32 0.5, %v5116_v35 }
 0x7f9   : > { %v3558_v62 = vclamps-f32 %v2652_v26, 1.0  ;;  %v2531_v31 = vsel %vm2528_vm15, %v2530_v29, %v2526_v4  ;;  %v2557_v5 = vadd.f32 1.0, %v2556_v41  ;;  %v2543_v30 = vmul.f32 %v2542_v52, %v5313_v43 }
 0x7fa   : > { %v2532_v6 = vmul.f32 %v2531_v31, %v2507_v8  ;;  %v2402_v38 = vadd.f32 %v5339_v33, %v2401_v55  ;;  %vm2404_vm0 = vweird.f32 %v5339_v33  ;;  %v2655_v58 = vadd.f32 1.0, %v3551_v28 }
 0x7fb   : > { %v2662_v51 = vadd.f32 1.0, %v3558_v62  ;;  %3988 = vrcp.f32 %v2557_v5  ;;  %v2409_v36 = vand.u32 2147483648, %v5271_v1  ;;  %v2666_v46 = vmul.f32 %v2658_v22, %v5163_v40 }
 0x7fc   : > { %v3555_v27 = vclamps-f32 %v2532_v6, 1.0  ;;  %vm2403_vm1 = vweird.f32 %v5271_v1  ;;  %v2407_v49 = vand.u32 2147483647, %v5271_v1  ;;  %v2319_v11 = vmul.f32 0.5, %v5055_v45 }
 0x7fd   : > { %v2670_v35 = vmul.f32 %v2662_v51, %v2326_v60  ;;  %vm2405_vm2 = vmor %vm2403_vm1, %vm2404_vm0  ;;  %v2323_v63 = vmul.f32 0.5, %v5135_v3  ;;  %v2544_v42 = vadd.f32 0.18741608, %v2543_v30  ;;  %v2386_v16 = vadd.f32 1.1283791, %v2385_v25 }
 0x7fe   : > { %v2659_v34 = vadd.f32 1.0, %v3555_v27  ;;  %v2406_v0 = vsel %vm2405_vm2, %v5339_v33, %v2402_v38  ;;  %v2663_v54 = vmul.f32 %v2655_v58, %v2319_v11  ;;  %v2410_v2 = vor.u32 1.1754944e-38, %v2409_v36 }
 0x7ff   : > { %v2674_v9 = vpack.c.bf16 %v2670_v35, %v2666_v46  ;;  %vm2408_vm3 = vcmp.eq.f32.partialorder %v2407_v49, 8.507059e+37  ;;  %v2545_v18 = vmul.f32 %v2544_v42, %v5313_v43  ;;  %v2387_v32 = vmul.f32 %v2386_v16, %v5075_v56 }
 0x800   : > { %v2667_v44 = vmul.f32 %v2659_v34, %v2323_v63  ;;  %v2411_v7 = vsel %vm2408_vm3, %v2410_v2, %v2406_v0  ;;  %v2569_v10 = vand.u32 2147483648, %v2557_v5  ;;  %v2567_v15 = vand.u32 2147483647, %v2557_v5 }
 0x801   : > { %v3989_v40 = vpop.eup %3988  ;;  %2981 = vmatmul.bf16.vlgmr.msrb.gmra.mxu1 %v2674_v9  ;;  %v2412_v14 = vmul.f32 %v2411_v7, %v2387_v32  ;;  %v2546_v61 = vadd.f32 1.1283791, %v2545_v18  ;;  %vm2563_vm5 = vweird.f32 %v2557_v5  ;;  %v2320_v20 = vmul.f32 0.5, %v5063_v47  ;;  %v3899_v47 = vld [vmem:[%s594_s26] ss:$0 sm:$0xff]  ;;  %s4307_s26 = smov 8  }
 0x802   : > { %v2671_v1 = vpack.c.bf16 %v2667_v44, %v2663_v54  ;;  %v2559_v45 = vmul.f32 %v3989_v40, %v2557_v5  ;;  %vm2564_vm4 = vweird.f32 %v3989_v40  ;;  %v2570_v19 = vor.u32 1.1754944e-38, %v2569_v10 }
 0x803   : > { %vm2565_vm6 = vmor %vm2563_vm5, %vm2564_vm4  ;;  %v3552_v37 = vclamps-f32 %v2412_v14, 1.0  ;;  %v2547_v12 = vmul.f32 %v2546_v61, %v5288_v24  ;;  %vm2568_vm7 = vcmp.eq.f32.partialorder %v2567_v15, 8.507059e+37  ;;  %v2324_v48 = vmul.f32 0.5, %v5254_v39 }
 0x804   : > { %v2560_v3 = vsub.f32 1.0, %v2559_v45  ;;  %2939 = vmatmul.bf16.vlgmr.msra.gmra.mxu2 %v2671_v1 }
 0x805   : > { %v2656_v56 = vadd.f32 1.0, %v3552_v37 }
 0x806   : > { %v2561_v33 = vmul.f32 %v3989_v40, %v2560_v3 }
 0x807   : > { %v2664_v13 = vmul.f32 %v2656_v56, %v2320_v20 }
 0x808   : > { %v2562_v57 = vadd.f32 %v3989_v40, %v2561_v33 }
 0x80a   : > { %v2566_v21 = vsel %vm2565_vm6, %v3989_v40, %v2562_v57 }
 0x80b   : > { %v2571_v43 = vsel %vm2568_vm7, %v2570_v19, %v2566_v21 }
 0x80c   : > { %v2572_v53 = vmul.f32 %v2571_v43, %v2547_v12 }
 0x80e   : > { %v3556_v50 = vclamps-f32 %v2572_v53, 1.0 }
 0x810   : > { %v2660_v23 = vadd.f32 1.0, %v3556_v50 }
 0x812   : > { %v2668_v52 = vmul.f32 %v2660_v23, %v2324_v48 }
 0x814   : > { %v2672_v55 = vpack.c.bf16 %v2668_v52, %v2664_v13 }
 0x816   : > { %2953 = vmatmul.bf16.vlgmr.msrb.gmra.mxu3 %v2672_v55 }
 0x872   : > { %v2968_v29 = vpop.f32.mrf.mxu0 }
 0x87a   : > { %v2970_v25 = vpop.f32.mrf.mxu0 }
 0x87e   : > { %v2982_v28 = vpop.f32.mrf.mxu1 }
 0x886   : > { %v2984_v6 = vpop.f32.mrf.mxu1 }
 0x887   : > { %v2940_v26 = vpop.f32.mrf.mxu2 }
 0x88f   : > { %v2942_v22 = vpop.f32.mrf.mxu2 }
 0x899   : > { %v2954_v41 = vpop.f32.mrf.mxu3 }
 0x89a   : > { %v2955_v24 = vadd.f32 %v2954_v41, %v2940_v26 }
 0x89c   : > { %v2969_v8 = vadd.f32 %v2968_v29, %v2955_v24 }
 0x89e   : > { %v2983_v4 = vadd.f32 %v2982_v28, %v2969_v8 }
 0x8a0   : > { %v2987_v39 = vadd.f32 %v2983_v4, %v4944_v17 }
 0x8a1   : > { %v2956_v62 = vpop.f32.mrf.mxu3 }
 0x8a2   : > { %v2993_v31 = vadd.f32 %v3899_v47, %v2987_v39  ;;  %v2957_v5 = vadd.f32 %v2956_v62, %v2942_v22 }
 0x8a4   : > { %2995 = vst [vmem:[#allocation14] sm:$0xff] %v2993_v31  ;;  %v2971_v60 = vadd.f32 %v2970_v25, %v2957_v5 }
 0x8a6   : > { %v2985_v30 = vadd.f32 %v2984_v6, %v2971_v60 }
 0x8a8   : > { %v2988_v38 = vadd.f32 %v2985_v30, %v4947_v59 }
 0x8aa   : > { %v2994_v17 = vadd.f32 %v3899_v47, %v2988_v38 }
 0x8ac   : > { %2996 = vst [vmem:[#allocation14 + $0x8] sm:$0xff] %v2994_v17 }
 0x8ad   : > { %3807 = dma.vmem_to_hbm [thread:$0]  (%p3830_p1), %s3006_s6, 256, %s3008_s24, [#allocation5], %s4306_s20, %s4306_s20, %s4307_s26  }
 0x8ae   : > { %4265 = dma.done.wait (%p3830_p1), [#allocation5], 256  }
 0x8af   : > { %4267 = vsyncadd (%p3830_p1), [#allocation5], 4294967040 }
 0x8b0 PF: > { %s5508_s21 = sld [smem:[#allocation27_spill]]  ;;  %s5512_s13 = smov %s4274_s14 }
 0x8b1   : > { %s5509_s16 = sld [smem:[#allocation26_spill]] }
 0x8b2   : > { %s5510_s15 = sld [smem:[#allocation29_spill]] }
 0x8b3   : > { %s5511_s22 = sld [smem:[#allocation28_spill]] }
 0x8b6   : > { %s33_s18 = sadd.s32 1, %s5508_s21  }
 0x8b7   : > { %p30_p2 = scmp.ge.s32.totalorder %s33_s18, 4   ;;  %s5513_s14 = smov %s5509_s16 }
 0x8b8   : > { %s5514_s16 = smov %s4286_s17 }
 0x8b9   : > { %s5515_s17 = smov %s5511_s22  ;;  %32 = sbr.rel (!%p30_p2) target bundleno = 19 (0x13), region = 176 }
 0x8be   :  { %3024 = vsyncpa [#allocation4], 1 }
 0x8bf   :  { %3026 = vsyncpa [#allocation4 + $0x1], 1 }
 0x8c0   :  { %3027 = vsyncpa [#allocation7], 1 }
 0x8c1   :  { %3029 = vsyncpa [#allocation7 + $0x1], 1 }
 0x8c2   :  { %3030 = vsyncpa [#allocation10], 1 }
 0x8c3   :  { %3032 = vsyncpa [#allocation10 + $0x1], 1 }
 0x8c4   :  { %3033 = vsyncpa [#allocation13], 1 }
 0x8c5   :  { %3035 = vsyncpa [#allocation13 + $0x1], 1 }
 0x8c6   :  { %3036 = vsyncpa [#allocation5], 1 }
 0x8c7   :  { %3038 = vsyncpa [#allocation5 + $0x1], 1 }

</bundles_post_ra>
